<compile_context>
chip_gen: v7x
topology: tpu7x:2x2x1
jax: 0.10.0
libtpu: 0.0.40
codegen_flags: <defaults>
</compile_context>

<pallas_src>
import functools
import math

import jax
import jax.numpy as jnp
from jax.experimental import pallas as pl
from jax.experimental.pallas import tpu as pltpu


def _round_up(n, m):
    return ((n + m - 1) // m) * m


def _pad2d(a, rows, cols):
    r, c = a.shape
    return jnp.pad(a, ((0, rows - r), (0, cols - c)))


def _leaky_relu(x, slope=0.1):
    return jnp.where(x > 0, x, slope * x)


def _vmem_capacity_bytes():
    """Per-core VMEM capacity; conservative 64 MiB (v7x per-TC) fallback."""
    try:
        cap = int(pltpu.get_tpu_info().vmem_capacity_bytes)
        if cap > 0:
            return cap
    except Exception:
        pass
    return 64 * 1024 * 1024


def _num_parallel_tensorcores():
    """2 on multi-TensorCore parts (v7x / megacore), else 1 (v5e/v6e)."""
    try:
        kind = jax.devices()[0].device_kind.lower()
    except Exception:
        return 1
    if "v7" in kind or "7x" in kind:
        return 2
    if "v4" in kind or "v5p" in kind or (
            "v5" in kind and "lite" not in kind and "v5e" not in kind):
        return 2
    return 1


# ----------------------------------------------------------------------------
# Kernel
# ----------------------------------------------------------------------------
def feedforward_kernel(x_ref, w1_ref, w2_ref, w3_ref, w4_ref, wh_ref, b_ref,
                       heads_ref, *hid_refs):
    """Fused MLP: 4x(Linear+LeakyReLU) -> one fused [map | num] head matmul.

    b_ref packs all biases: rows 0..3 = hidden-layer biases, row 4 = fused head
    bias ([map | folded num]); all f32 so the bias-add/LeakyReLU epilogue stays
    on the VPU in f32 (safe on v5e's non-bf16 VPU).
    """
    cdt = w1_ref.dtype          # MXU operand dtype (bf16 default, or f32)
    h_p = w1_ref.shape[1]
    heads_p = wh_ref.shape[1]

    def layer(h_op, w_ref, bias_row):
        y = jnp.dot(h_op, w_ref[...], preferred_element_type=jnp.float32)
        return _leaky_relu(y + b_ref[bias_row:bias_row + 1, :h_p])

    h = layer(x_ref[...].astype(cdt), w1_ref, 0)
    h = layer(h.astype(cdt), w2_ref, 1)
    h = layer(h.astype(cdt), w3_ref, 2)
    h = layer(h.astype(cdt), w4_ref, 3)
    # Dropout: identity at inference time.
    if hid_refs:                # optional premap/hidden output
        hid_refs[0][...] = h.astype(hid_refs[0].dtype)

    # Single fused head matmul: columns [0:map) = map head, [map:map+out) = the
    # num head folded through w6.  One MXU push/pop, lane-dense output slab.
    y = jnp.dot(h.astype(cdt), wh_ref[...], preferred_element_type=jnp.float32)
    heads_ref[...] = (y + b_ref[4:5, :heads_p]).astype(heads_ref.dtype)


# ----------------------------------------------------------------------------
# Parameter preparation (fold + fuse + lane padding), done once outside kernel.
# ----------------------------------------------------------------------------
_PARAM_ORDER = ("w1", "w2", "w3", "w4", "wh", "b")


def prepare_params(params, compute_dtype=jnp.bfloat16):
    """Fold the num head, fuse it with the map head, pack biases, pad to 128.

    Zero padding is numerically exact (zero rows/cols contribute nothing and
    LeakyReLU(0)=0).  Weights are cast to `compute_dtype` (MXU operand dtype,
    bf16 by default on all generations); biases stay float32.  Note: the num
    head fold (w5 @ w6) is done in f32 and quantized once, so bf16 `num` bits
    differ slightly from an unfused two-matmul bf16 implementation.
    Returns (prepared_dict, (hidden, map_size, out_size)).
    """
    w = {k: jnp.asarray(params[k], jnp.float32) for k in params}
    in_size, hidden = w["w1"].shape
    map_size = w["w5"].shape[1]
    out_size = w["w6"].shape[1]
    heads = map_size + out_size
    h_p = _round_up(hidden, 128)
    heads_p = _round_up(heads, 128)

    # Fold the num-readout head (exact in f32):
    #   o = (h @ w5 + b5) @ w6 + b6 = h @ (w5 @ w6) + (b5 @ w6 + b6)
    w56 = w["w5"] @ w["w6"]
    b56 = w["b5"] @ w["w6"] + w["b6"]

    # Fused, lane-padded heads weight: [:, :map) = map head, [:, map:heads) = num.
    wh = jnp.zeros((h_p, heads_p), jnp.float32)
    wh = wh.at[:hidden, :map_size].set(w["w5"])
    wh = wh.at[:hidden, map_size:heads].set(w56)

    # All biases in one (8, W) f32 array -> a single kernel input ref / DMA.
    bw = max(h_p, heads_p)
    b_all = jnp.zeros((8, bw), jnp.float32)
    b_all = b_all.at[0, :hidden].set(w["b1"][0])
    b_all = b_all.at[1, :hidden].set(w["b2"][0])
    b_all = b_all.at[2, :hidden].set(w["b3"][0])
    b_all = b_all.at[3, :hidden].set(w["b4"][0])
    b_all = b_all.at[4, :map_size].set(w["b5"][0])
    b_all = b_all.at[4, map_size:heads].set(b56[0])

    prep = {
        "w1": _pad2d(w["w1"], in_size, h_p).astype(compute_dtype),
        "w2": _pad2d(w["w2"], h_p, h_p).astype(compute_dtype),
        "w3": _pad2d(w["w3"], h_p, h_p).astype(compute_dtype),
        "w4": _pad2d(w["w4"], h_p, h_p).astype(compute_dtype),
        "wh": wh.astype(compute_dtype),
        "b": b_all,
    }
    return prep, (hidden, map_size, out_size)


# ----------------------------------------------------------------------------
# Wrapper
# ----------------------------------------------------------------------------
@functools.partial(
    jax.jit,
    static_argnames=("sizes", "block_b", "return_hidden", "single_buffer_weights"))
def _feedforward_impl(x, prep, sizes, block_b, return_hidden,
                      single_buffer_weights):
    hidden, map_size, out_size = sizes
    B, in_size = x.shape
    h_p = prep["w1"].shape[1]
    heads_p = prep["wh"].shape[1]
    x_item = jnp.dtype(x.dtype).itemsize
    out_item = x_item                      # outputs are produced in x.dtype

    weight_bytes = sum(int(v.size) * jnp.dtype(v.dtype).itemsize
                       for v in prep.values())
    weight_copies = 1 if single_buffer_weights else 2

    capacity = _vmem_capacity_bytes()
    budget = (5 * capacity) // 8           # ~62% of per-core VMEM for sizing
    n_cores = _num_parallel_tensorcores()

    # Batch tiling.  Single-TC parts (v5e/v6e): one big tile when it fits
    # (per-step overhead > HBM time at these sizes).  Multi-TC parts (v7x):
    # >= 2 (even) tiles so the "parallel" axis can shard across TensorCores.
    if block_b is None:
        block_b = min(1024, B)
        if n_cores > 1 and B > 8:
            block_b = min(block_b, _round_up(pl.cdiv(B, 2), 8))
    block_b = max(8, min(block_b, B)) if B >= 8 else B

    def vmem_estimate(bb):
        io = bb * (in_size * x_item
                   + (heads_p + (h_p if return_hidden else 0)) * out_item)
        live = 3 * bb * h_p * 4            # f32 intermediate activations
        return 2 * io + live + weight_copies * weight_bytes

    while vmem_estimate(block_b) > budget and block_b > 8:
        block_b = max(8, _round_up(block_b // 2, 8))

    steps = pl.cdiv(B, block_b)
    if n_cores > 1 and steps > 1 and steps % 2 == 1:
        # Even step count so neither v7x TensorCore idles on the tail tile.
        block_b = max(8, _round_up(pl.cdiv(B, steps + 1), 8))
        steps = pl.cdiv(B, block_b)
    grid = (steps,)
    # NOTE: a partial last tile (B % block_b != 0) is fine today: every op is
    # row-wise and out-of-range rows are never stored.  Do NOT add any
    # batch-dimension reduction / row-mixing op without masking first.

    def x_map(i):
        return (i, 0)

    def const_map(i):
        return (0, 0)

    in_specs = [pl.BlockSpec((block_b, in_size), x_map)]
    for name in _PARAM_ORDER:
        if single_buffer_weights:
            # Constant blocks: fetched once -> no need to double-buffer them.
            in_specs.append(pl.BlockSpec(prep[name].shape, const_map,
                                         pipeline_mode=pl.Buffered(1)))
        else:
            in_specs.append(pl.BlockSpec(prep[name].shape, const_map))

    out_shapes = [jax.ShapeDtypeStruct((B, heads_p), x.dtype)]
    out_specs = [pl.BlockSpec((block_b, heads_p), x_map)]
    if return_hidden:
        out_shapes.append(jax.ShapeDtypeStruct((B, h_p), x.dtype))
        out_specs.append(pl.BlockSpec((block_b, h_p), x_map))

    flops = 2 * B * (in_size * h_p + 3 * h_p * h_p + h_p * heads_p)
    bytes_accessed = (B * in_size * x_item + weight_bytes
                      + B * (heads_p + (h_p if return_hidden else 0)) * out_item)

    f = pl.pallas_call(
        feedforward_kernel,
        out_shape=tuple(out_shapes),
        grid_spec=pltpu.PrefetchScalarGridSpec(
            num_scalar_prefetch=0,
            grid=grid,
            in_specs=in_specs,
            out_specs=out_specs,
        ),
        compiler_params=pltpu.CompilerParams(
            # TODO(synk): verify with xprof that this axis actually shards
            # across the 2 v7x TensorCores; if not, switch to
            # pltpu.CORE_PARALLEL / pl.core_map.
            dimension_semantics=("parallel",),
            vmem_limit_bytes=int(min((3 * capacity) // 4,
                                     max(32 * 1024 * 1024,
                                         2 * vmem_estimate(block_b)))),
        ),
        cost_estimate=pl.CostEstimate(
            flops=int(flops), transcendentals=0,
            bytes_accessed=int(bytes_accessed)),
    )
    outs = f(x, *[prep[n] for n in _PARAM_ORDER])
    heads = outs[0]
    num = heads[:, map_size:map_size + out_size]
    map_ = heads[:, :map_size]
    hid = outs[1][:, :hidden] if return_hidden else None
    return num, map_, hid


_SINGLE_BUFFER_WEIGHTS = None   # resolved on first call (pl.Buffered(1) support)


def feedforward(x, prep, sizes, block_b=None, return_hidden=True):
    """Runs the fused MLP.  Returns (num, map, hidden-or-None)."""
    global _SINGLE_BUFFER_WEIGHTS
    if _SINGLE_BUFFER_WEIGHTS is None:
        try:
            out = _feedforward_impl(x, prep, sizes, block_b, return_hidden, True)
            jax.block_until_ready(out)
            _SINGLE_BUFFER_WEIGHTS = True
            return out
        except Exception:
            # TODO(synk): pipeline_mode=pl.Buffered(1) (single-buffered resident
            # weights) rejected by this jax/libtpu; fall back to the default
            # double-buffered weight BlockSpecs.
            _SINGLE_BUFFER_WEIGHTS = False
    return _feedforward_impl(x, prep, sizes, block_b, return_hidden,
                             _SINGLE_BUFFER_WEIGHTS)


# ----------------------------------------------------------------------------
# Deterministic synthetic params + pure-JAX reference
# ----------------------------------------------------------------------------
def init_params(key, in_size, hidden_size, map_size, output_size,
                dtype=jnp.float32):
    """Deterministic synthetic parameters (weights stored (in, out))."""
    sizes = [
        (in_size, hidden_size),
        (hidden_size, hidden_size),
        (hidden_size, hidden_size),
        (hidden_size, hidden_size),
        (hidden_size, map_size),
        (map_size, output_size),
    ]
    params = {}
    for idx, (fan_in, fan_out) in enumerate(sizes, start=1):
        key, kw, kb = jax.random.split(key, 3)
        bound = 1.0 / math.sqrt(fan_in)
        params[f"w{idx}"] = jax.random.uniform(
            kw, (fan_in, fan_out), dtype=dtype, minval=-bound, maxval=bound)
        params[f"b{idx}"] = jax.random.uniform(
            kb, (1, fan_out), dtype=dtype, minval=-bound, maxval=bound)
    return params


def _reference(x, params):
    """Pure-JAX reference of the forward (eval mode)."""
    def lrelu(v):
        return jnp.where(v > 0, v, 0.1 * v)

    h = lrelu(x @ params["w1"] + params["b1"])
    h = lrelu(h @ params["w2"] + params["b2"])
    h = lrelu(h @ params["w3"] + params["b3"])
    h = lrelu(h @ params["w4"] + params["b4"])
    m = h @ params["w5"] + params["b5"]
    o = m @ params["w6"] + params["b6"]
    return o, m, h


if __name__ == "__main__":
    # Small shapes consistent with the module: pix/in=16, hidden=64, map=8, out=4.
    B, in_size, hidden, map_size, out_size = 256, 16, 64, 8, 4

    key = jax.random.PRNGKey(0)
    key, kx = jax.random.split(key)
    x = jax.random.normal(kx, (B, in_size), dtype=jnp.float32)
    params = init_params(key, in_size, hidden, map_size, out_size)

    ref_out, ref_map, ref_hid = _reference(x, params)

    # f32 MXU operands: exact check against the reference (hidden returned too).
    prep32, sizes = prepare_params(params, compute_dtype=jnp.float32)
    out, map_, hid = feedforward(x, prep32, sizes)
    jax.block_until_ready((out, map_, hid))
    assert jnp.allclose(hid, ref_hid, atol=1e-5, rtol=1e-5)
    assert jnp.allclose(map_, ref_map, atol=1e-5, rtol=1e-5)
    assert jnp.allclose(out, ref_out, atol=1e-4, rtol=1e-4)  # folded+fused head

    # Default bf16 MXU operands (f32 accumulation + f32 epilogue), hid skipped.
    prep16, sizes16 = prepare_params(params)   # compute_dtype defaults to bf16
    out16, map16, _ = feedforward(x, prep16, sizes16, return_hidden=False)
    jax.block_until_ready((out16, map16))
    assert jnp.allclose(out16, ref_out, atol=1e-1, rtol=1e-1)
    assert jnp.allclose(map16, ref_map, atol=1e-1, rtol=1e-1)

    print("KERNEL_OK")
</pallas_src>

<mosaic_0001>
module attributes {stable_mosaic.version = 11 : i64} {
  func.func @feedforward_kernel(%arg0: i32, %arg1: memref<256x16xf32, #tpu.memory_space<vmem>>, %arg2: memref<16x128xf32, #tpu.memory_space<vmem>>, %arg3: memref<128x128xf32, #tpu.memory_space<vmem>>, %arg4: memref<128x128xf32, #tpu.memory_space<vmem>>, %arg5: memref<128x128xf32, #tpu.memory_space<vmem>>, %arg6: memref<128x128xf32, #tpu.memory_space<vmem>>, %arg7: memref<8x128xf32, #tpu.memory_space<vmem>>, %arg8: memref<256x128xf32, #tpu.memory_space<vmem>>, %arg9: memref<256x128xf32, #tpu.memory_space<vmem>>) attributes {dimension_semantics = [#tpu.dimension_semantics<parallel>], iteration_bounds = array<i64: 1>, scalar_prefetch = 0 : i64, scratch_operands = 0 : i64, tpu.core_type = #tpu.core_type<tc>, window_params = [{transform_indices = @transform_0, window_bounds = array<i64: 256, 16>}, {pipeline_mode = #tpu.pipeline_mode<synchronous>, transform_indices = @transform_1, window_bounds = array<i64: 16, 128>}, {pipeline_mode = #tpu.pipeline_mode<synchronous>, transform_indices = @transform_2, window_bounds = array<i64: 128, 128>}, {pipeline_mode = #tpu.pipeline_mode<synchronous>, transform_indices = @transform_3, window_bounds = array<i64: 128, 128>}, {pipeline_mode = #tpu.pipeline_mode<synchronous>, transform_indices = @transform_4, window_bounds = array<i64: 128, 128>}, {pipeline_mode = #tpu.pipeline_mode<synchronous>, transform_indices = @transform_5, window_bounds = array<i64: 128, 128>}, {pipeline_mode = #tpu.pipeline_mode<synchronous>, transform_indices = @transform_6, window_bounds = array<i64: 8, 128>}, {transform_indices = @transform_7, window_bounds = array<i64: 256, 128>}, {transform_indices = @transform_8, window_bounds = array<i64: 256, 128>}]} {
    %c0 = arith.constant 0 : index
    %c0_0 = arith.constant 0 : index
    %0 = vector.load %arg1[%c0, %c0_0] : memref<256x16xf32, #tpu.memory_space<vmem>>, vector<256x16xf32>
    %c0_1 = arith.constant 0 : index
    %c0_2 = arith.constant 0 : index
    %1 = vector.load %arg2[%c0_1, %c0_2] : memref<16x128xf32, #tpu.memory_space<vmem>>, vector<16x128xf32>
    %cst = arith.constant dense<0.000000e+00> : vector<256x128xf32>
    %2 = tpu.matmul %0, %1, %cst {dimension_numbers = #tpu.dot_dimension_numbers<[1], [0], [0], [1], [0, 0, 1, 1], [], []>} : vector<256x16xf32>, vector<16x128xf32>, vector<256x128xf32> -> vector<256x128xf32>
    %c0_3 = arith.constant 0 : index
    %c0_4 = arith.constant 0 : index
    %3 = vector.load %arg7[%c0_3, %c0_4] : memref<8x128xf32, #tpu.memory_space<vmem>>, vector<1x128xf32>
    %4 = vector.broadcast %3 : vector<1x128xf32> to vector<256x128xf32>
    %5 = arith.addf %2, %4 : vector<256x128xf32>
    %cst_5 = arith.constant 0.000000e+00 : f32
    %6 = vector.broadcast %cst_5 : f32 to vector<256x128xf32>
    %7 = arith.cmpf ogt, %5, %6 : vector<256x128xf32>
    %cst_6 = arith.constant 1.000000e-01 : f32
    %8 = vector.broadcast %cst_6 : f32 to vector<256x128xf32>
    %9 = arith.mulf %8, %5 : vector<256x128xf32>
    %10 = arith.select %7, %5, %9 : vector<256x128xi1>, vector<256x128xf32>
    %c0_7 = arith.constant 0 : index
    %c0_8 = arith.constant 0 : index
    %11 = vector.load %arg3[%c0_7, %c0_8] : memref<128x128xf32, #tpu.memory_space<vmem>>, vector<128x128xf32>
    %cst_9 = arith.constant dense<0.000000e+00> : vector<256x128xf32>
    %12 = tpu.matmul %10, %11, %cst_9 {dimension_numbers = #tpu.dot_dimension_numbers<[1], [0], [0], [1], [0, 0, 1, 1], [], []>} : vector<256x128xf32>, vector<128x128xf32>, vector<256x128xf32> -> vector<256x128xf32>
    %c1 = arith.constant 1 : index
    %c0_10 = arith.constant 0 : index
    %13 = vector.load %arg7[%c1, %c0_10] : memref<8x128xf32, #tpu.memory_space<vmem>>, vector<1x128xf32>
    %14 = vector.broadcast %13 : vector<1x128xf32> to vector<256x128xf32>
    %15 = arith.addf %12, %14 : vector<256x128xf32>
    %cst_11 = arith.constant 0.000000e+00 : f32
    %16 = vector.broadcast %cst_11 : f32 to vector<256x128xf32>
    %17 = arith.cmpf ogt, %15, %16 : vector<256x128xf32>
    %cst_12 = arith.constant 1.000000e-01 : f32
    %18 = vector.broadcast %cst_12 : f32 to vector<256x128xf32>
    %19 = arith.mulf %18, %15 : vector<256x128xf32>
    %20 = arith.select %17, %15, %19 : vector<256x128xi1>, vector<256x128xf32>
    %c0_13 = arith.constant 0 : index
    %c0_14 = arith.constant 0 : index
    %21 = vector.load %arg4[%c0_13, %c0_14] : memref<128x128xf32, #tpu.memory_space<vmem>>, vector<128x128xf32>
    %cst_15 = arith.constant dense<0.000000e+00> : vector<256x128xf32>
    %22 = tpu.matmul %20, %21, %cst_15 {dimension_numbers = #tpu.dot_dimension_numbers<[1], [0], [0], [1], [0, 0, 1, 1], [], []>} : vector<256x128xf32>, vector<128x128xf32>, vector<256x128xf32> -> vector<256x128xf32>
    %c2 = arith.constant 2 : index
    %c0_16 = arith.constant 0 : index
    %23 = vector.load %arg7[%c2, %c0_16] : memref<8x128xf32, #tpu.memory_space<vmem>>, vector<1x128xf32>
    %24 = vector.broadcast %23 : vector<1x128xf32> to vector<256x128xf32>
    %25 = arith.addf %22, %24 : vector<256x128xf32>
    %cst_17 = arith.constant 0.000000e+00 : f32
    %26 = vector.broadcast %cst_17 : f32 to vector<256x128xf32>
    %27 = arith.cmpf ogt, %25, %26 : vector<256x128xf32>
    %cst_18 = arith.constant 1.000000e-01 : f32
    %28 = vector.broadcast %cst_18 : f32 to vector<256x128xf32>
    %29 = arith.mulf %28, %25 : vector<256x128xf32>
    %30 = arith.select %27, %25, %29 : vector<256x128xi1>, vector<256x128xf32>
    %c0_19 = arith.constant 0 : index
    %c0_20 = arith.constant 0 : index
    %31 = vector.load %arg5[%c0_19, %c0_20] : memref<128x128xf32, #tpu.memory_space<vmem>>, vector<128x128xf32>
    %cst_21 = arith.constant dense<0.000000e+00> : vector<256x128xf32>
    %32 = tpu.matmul %30, %31, %cst_21 {dimension_numbers = #tpu.dot_dimension_numbers<[1], [0], [0], [1], [0, 0, 1, 1], [], []>} : vector<256x128xf32>, vector<128x128xf32>, vector<256x128xf32> -> vector<256x128xf32>
    %c3 = arith.constant 3 : index
    %c0_22 = arith.constant 0 : index
    %33 = vector.load %arg7[%c3, %c0_22] : memref<8x128xf32, #tpu.memory_space<vmem>>, vector<1x128xf32>
    %34 = vector.broadcast %33 : vector<1x128xf32> to vector<256x128xf32>
    %35 = arith.addf %32, %34 : vector<256x128xf32>
    %cst_23 = arith.constant 0.000000e+00 : f32
    %36 = vector.broadcast %cst_23 : f32 to vector<256x128xf32>
    %37 = arith.cmpf ogt, %35, %36 : vector<256x128xf32>
    %cst_24 = arith.constant 1.000000e-01 : f32
    %38 = vector.broadcast %cst_24 : f32 to vector<256x128xf32>
    %39 = arith.mulf %38, %35 : vector<256x128xf32>
    %40 = arith.select %37, %35, %39 : vector<256x128xi1>, vector<256x128xf32>
    %c0_25 = arith.constant 0 : index
    %c0_26 = arith.constant 0 : index
    %41 = vector.load %arg9[%c0_25, %c0_26] : memref<256x128xf32, #tpu.memory_space<vmem>>, vector<256x128xf32>
    tpu.vector_store %arg9[%c0_25, %c0_26], %40 {strides = array<i32>} : memref<256x128xf32, #tpu.memory_space<vmem>>, vector<256x128xf32>,
    %c0_27 = arith.constant 0 : index
    %c0_28 = arith.constant 0 : index
    %42 = vector.load %arg6[%c0_27, %c0_28] : memref<128x128xf32, #tpu.memory_space<vmem>>, vector<128x128xf32>
    %cst_29 = arith.constant dense<0.000000e+00> : vector<256x128xf32>
    %43 = tpu.matmul %40, %42, %cst_29 {dimension_numbers = #tpu.dot_dimension_numbers<[1], [0], [0], [1], [0, 0, 1, 1], [], []>} : vector<256x128xf32>, vector<128x128xf32>, vector<256x128xf32> -> vector<256x128xf32>
    %c4 = arith.constant 4 : index
    %c0_30 = arith.constant 0 : index
    %44 = vector.load %arg7[%c4, %c0_30] : memref<8x128xf32, #tpu.memory_space<vmem>>, vector<1x128xf32>
    %45 = vector.broadcast %44 : vector<1x128xf32> to vector<256x128xf32>
    %46 = arith.addf %43, %45 : vector<256x128xf32>
    %c0_31 = arith.constant 0 : index
    %c0_32 = arith.constant 0 : index
    %47 = vector.load %arg8[%c0_31, %c0_32] : memref<256x128xf32, #tpu.memory_space<vmem>>, vector<256x128xf32>
    tpu.vector_store %arg8[%c0_31, %c0_32], %46 {strides = array<i32>} : memref<256x128xf32, #tpu.memory_space<vmem>>, vector<256x128xf32>,
    return
  }
  func.func @transform_0(%arg0: i32) -> (i32, i32) {
    %c0_i32 = arith.constant 0 : i32
    %c0_i32_0 = arith.constant 0 : i32
    return %arg0, %c0_i32 : i32, i32
  }
  func.func @transform_1(%arg0: i32) -> (i32, i32) {
    %c0_i32 = arith.constant 0 : i32
    %c0_i32_0 = arith.constant 0 : i32
    %c0_i32_1 = arith.constant 0 : i32
    return %c0_i32, %c0_i32_0 : i32, i32
  }
  func.func @transform_2(%arg0: i32) -> (i32, i32) {
    %c0_i32 = arith.constant 0 : i32
    %c0_i32_0 = arith.constant 0 : i32
    %c0_i32_1 = arith.constant 0 : i32
    return %c0_i32, %c0_i32_0 : i32, i32
  }
  func.func @transform_3(%arg0: i32) -> (i32, i32) {
    %c0_i32 = arith.constant 0 : i32
    %c0_i32_0 = arith.constant 0 : i32
    %c0_i32_1 = arith.constant 0 : i32
    return %c0_i32, %c0_i32_0 : i32, i32
  }
  func.func @transform_4(%arg0: i32) -> (i32, i32) {
    %c0_i32 = arith.constant 0 : i32
    %c0_i32_0 = arith.constant 0 : i32
    %c0_i32_1 = arith.constant 0 : i32
    return %c0_i32, %c0_i32_0 : i32, i32
  }
  func.func @transform_5(%arg0: i32) -> (i32, i32) {
    %c0_i32 = arith.constant 0 : i32
    %c0_i32_0 = arith.constant 0 : i32
    %c0_i32_1 = arith.constant 0 : i32
    return %c0_i32, %c0_i32_0 : i32, i32
  }
  func.func @transform_6(%arg0: i32) -> (i32, i32) {
    %c0_i32 = arith.constant 0 : i32
    %c0_i32_0 = arith.constant 0 : i32
    %c0_i32_1 = arith.constant 0 : i32
    return %c0_i32, %c0_i32_0 : i32, i32
  }
  func.func @transform_7(%arg0: i32) -> (i32, i32) {
    %c0_i32 = arith.constant 0 : i32
    %c0_i32_0 = arith.constant 0 : i32
    return %arg0, %c0_i32 : i32, i32
  }
  func.func @transform_8(%arg0: i32) -> (i32, i32) {
    %c0_i32 = arith.constant 0 : i32
    %c0_i32_0 = arith.constant 0 : i32
    return %arg0, %c0_i32 : i32, i32
  }
}

module attributes {stable_mosaic.version = 11 : i64} {
  func.func @feedforward_kernel(%arg0: i32, %arg1: memref<256x16xf32, #tpu.memory_space<vmem>>, %arg2: memref<16x128xf32, #tpu.memory_space<vmem>>, %arg3: memref<128x128xf32, #tpu.memory_space<vmem>>, %arg4: memref<128x128xf32, #tpu.memory_space<vmem>>, %arg5: memref<128x128xf32, #tpu.memory_space<vmem>>, %arg6: memref<128x128xf32, #tpu.memory_space<vmem>>, %arg7: memref<8x128xf32, #tpu.memory_space<vmem>>, %arg8: memref<256x128xf32, #tpu.memory_space<vmem>>, %arg9: memref<256x128xf32, #tpu.memory_space<vmem>>) attributes {dimension_semantics = [#tpu.dimension_semantics<parallel>], iteration_bounds = array<i64: 1>, scalar_prefetch = 0 : i64, scratch_operands = 0 : i64, tpu.core_type = #tpu.core_type<tc>, window_params = [{transform_indices = @transform_0, window_bounds = array<i64: 256, 16>}, {pipeline_mode = #tpu.pipeline_mode<synchronous>, transform_indices = @transform_1, window_bounds = array<i64: 16, 128>}, {pipeline_mode = #tpu.pipeline_mode<synchronous>, transform_indices = @transform_2, window_bounds = array<i64: 128, 128>}, {pipeline_mode = #tpu.pipeline_mode<synchronous>, transform_indices = @transform_3, window_bounds = array<i64: 128, 128>}, {pipeline_mode = #tpu.pipeline_mode<synchronous>, transform_indices = @transform_4, window_bounds = array<i64: 128, 128>}, {pipeline_mode = #tpu.pipeline_mode<synchronous>, transform_indices = @transform_5, window_bounds = array<i64: 128, 128>}, {pipeline_mode = #tpu.pipeline_mode<synchronous>, transform_indices = @transform_6, window_bounds = array<i64: 8, 128>}, {transform_indices = @transform_7, window_bounds = array<i64: 256, 128>}, {transform_indices = @transform_8, window_bounds = array<i64: 256, 128>}]} {
    %c0 = arith.constant 0 : index
    %c0_0 = arith.constant 0 : index
    %0 = vector.load %arg1[%c0, %c0_0] : memref<256x16xf32, #tpu.memory_space<vmem>>, vector<256x16xf32>
    %c0_1 = arith.constant 0 : index
    %c0_2 = arith.constant 0 : index
    %1 = vector.load %arg2[%c0_1, %c0_2] : memref<16x128xf32, #tpu.memory_space<vmem>>, vector<16x128xf32>
    %cst = arith.constant dense<0.000000e+00> : vector<256x128xf32>
    %2 = tpu.matmul %0, %1, %cst {dimension_numbers = #tpu.dot_dimension_numbers<[1], [0], [0], [1], [0, 0, 1, 1], [], []>} : vector<256x16xf32>, vector<16x128xf32>, vector<256x128xf32> -> vector<256x128xf32>
    %c0_3 = arith.constant 0 : index
    %c0_4 = arith.constant 0 : index
    %3 = vector.load %arg7[%c0_3, %c0_4] : memref<8x128xf32, #tpu.memory_space<vmem>>, vector<1x128xf32>
    %4 = vector.broadcast %3 : vector<1x128xf32> to vector<256x128xf32>
    %5 = arith.addf %2, %4 : vector<256x128xf32>
    %cst_5 = arith.constant 0.000000e+00 : f32
    %6 = vector.broadcast %cst_5 : f32 to vector<256x128xf32>
    %7 = arith.cmpf ogt, %5, %6 : vector<256x128xf32>
    %cst_6 = arith.constant 1.000000e-01 : f32
    %8 = vector.broadcast %cst_6 : f32 to vector<256x128xf32>
    %9 = arith.mulf %8, %5 : vector<256x128xf32>
    %10 = arith.select %7, %5, %9 : vector<256x128xi1>, vector<256x128xf32>
    %c0_7 = arith.constant 0 : index
    %c0_8 = arith.constant 0 : index
    %11 = vector.load %arg3[%c0_7, %c0_8] : memref<128x128xf32, #tpu.memory_space<vmem>>, vector<128x128xf32>
    %cst_9 = arith.constant dense<0.000000e+00> : vector<256x128xf32>
    %12 = tpu.matmul %10, %11, %cst_9 {dimension_numbers = #tpu.dot_dimension_numbers<[1], [0], [0], [1], [0, 0, 1, 1], [], []>} : vector<256x128xf32>, vector<128x128xf32>, vector<256x128xf32> -> vector<256x128xf32>
    %c1 = arith.constant 1 : index
    %c0_10 = arith.constant 0 : index
    %13 = vector.load %arg7[%c1, %c0_10] : memref<8x128xf32, #tpu.memory_space<vmem>>, vector<1x128xf32>
    %14 = vector.broadcast %13 : vector<1x128xf32> to vector<256x128xf32>
    %15 = arith.addf %12, %14 : vector<256x128xf32>
    %cst_11 = arith.constant 0.000000e+00 : f32
    %16 = vector.broadcast %cst_11 : f32 to vector<256x128xf32>
    %17 = arith.cmpf ogt, %15, %16 : vector<256x128xf32>
    %cst_12 = arith.constant 1.000000e-01 : f32
    %18 = vector.broadcast %cst_12 : f32 to vector<256x128xf32>
    %19 = arith.mulf %18, %15 : vector<256x128xf32>
    %20 = arith.select %17, %15, %19 : vector<256x128xi1>, vector<256x128xf32>
    %c0_13 = arith.constant 0 : index
    %c0_14 = arith.constant 0 : index
    %21 = vector.load %arg4[%c0_13, %c0_14] : memref<128x128xf32, #tpu.memory_space<vmem>>, vector<128x128xf32>
    %cst_15 = arith.constant dense<0.000000e+00> : vector<256x128xf32>
    %22 = tpu.matmul %20, %21, %cst_15 {dimension_numbers = #tpu.dot_dimension_numbers<[1], [0], [0], [1], [0, 0, 1, 1], [], []>} : vector<256x128xf32>, vector<128x128xf32>, vector<256x128xf32> -> vector<256x128xf32>
    %c2 = arith.constant 2 : index
    %c0_16 = arith.constant 0 : index
    %23 = vector.load %arg7[%c2, %c0_16] : memref<8x128xf32, #tpu.memory_space<vmem>>, vector<1x128xf32>
    %24 = vector.broadcast %23 : vector<1x128xf32> to vector<256x128xf32>
    %25 = arith.addf %22, %24 : vector<256x128xf32>
    %cst_17 = arith.constant 0.000000e+00 : f32
    %26 = vector.broadcast %cst_17 : f32 to vector<256x128xf32>
    %27 = arith.cmpf ogt, %25, %26 : vector<256x128xf32>
    %cst_18 = arith.constant 1.000000e-01 : f32
    %28 = vector.broadcast %cst_18 : f32 to vector<256x128xf32>
    %29 = arith.mulf %28, %25 : vector<256x128xf32>
    %30 = arith.select %27, %25, %29 : vector<256x128xi1>, vector<256x128xf32>
    %c0_19 = arith.constant 0 : index
    %c0_20 = arith.constant 0 : index
    %31 = vector.load %arg5[%c0_19, %c0_20] : memref<128x128xf32, #tpu.memory_space<vmem>>, vector<128x128xf32>
    %cst_21 = arith.constant dense<0.000000e+00> : vector<256x128xf32>
    %32 = tpu.matmul %30, %31, %cst_21 {dimension_numbers = #tpu.dot_dimension_numbers<[1], [0], [0], [1], [0, 0, 1, 1], [], []>} : vector<256x128xf32>, vector<128x128xf32>, vector<256x128xf32> -> vector<256x128xf32>
    %c3 = arith.constant 3 : index
    %c0_22 = arith.constant 0 : index
    %33 = vector.load %arg7[%c3, %c0_22] : memref<8x128xf32, #tpu.memory_space<vmem>>, vector<1x128xf32>
    %34 = vector.broadcast %33 : vector<1x128xf32> to vector<256x128xf32>
    %35 = arith.addf %32, %34 : vector<256x128xf32>
    %cst_23 = arith.constant 0.000000e+00 : f32
    %36 = vector.broadcast %cst_23 : f32 to vector<256x128xf32>
    %37 = arith.cmpf ogt, %35, %36 : vector<256x128xf32>
    %cst_24 = arith.constant 1.000000e-01 : f32
    %38 = vector.broadcast %cst_24 : f32 to vector<256x128xf32>
    %39 = arith.mulf %38, %35 : vector<256x128xf32>
    %40 = arith.select %37, %35, %39 : vector<256x128xi1>, vector<256x128xf32>
    %c0_25 = arith.constant 0 : index
    %c0_26 = arith.constant 0 : index
    %41 = vector.load %arg9[%c0_25, %c0_26] : memref<256x128xf32, #tpu.memory_space<vmem>>, vector<256x128xf32>
    tpu.vector_store %arg9[%c0_25, %c0_26], %40 {strides = array<i32>} : memref<256x128xf32, #tpu.memory_space<vmem>>, vector<256x128xf32>,
    %c0_27 = arith.constant 0 : index
    %c0_28 = arith.constant 0 : index
    %42 = vector.load %arg6[%c0_27, %c0_28] : memref<128x128xf32, #tpu.memory_space<vmem>>, vector<128x128xf32>
    %cst_29 = arith.constant dense<0.000000e+00> : vector<256x128xf32>
    %43 = tpu.matmul %40, %42, %cst_29 {dimension_numbers = #tpu.dot_dimension_numbers<[1], [0], [0], [1], [0, 0, 1, 1], [], []>} : vector<256x128xf32>, vector<128x128xf32>, vector<256x128xf32> -> vector<256x128xf32>
    %c4 = arith.constant 4 : index
    %c0_30 = arith.constant 0 : index
    %44 = vector.load %arg7[%c4, %c0_30] : memref<8x128xf32, #tpu.memory_space<vmem>>, vector<1x128xf32>
    %45 = vector.broadcast %44 : vector<1x128xf32> to vector<256x128xf32>
    %46 = arith.addf %43, %45 : vector<256x128xf32>
    %c0_31 = arith.constant 0 : index
    %c0_32 = arith.constant 0 : index
    %47 = vector.load %arg8[%c0_31, %c0_32] : memref<256x128xf32, #tpu.memory_space<vmem>>, vector<256x128xf32>
    tpu.vector_store %arg8[%c0_31, %c0_32], %46 {strides = array<i32>} : memref<256x128xf32, #tpu.memory_space<vmem>>, vector<256x128xf32>,
    return
  }
  func.func @transform_0(%arg0: i32) -> (i32, i32) {
    %c0_i32 = arith.constant 0 : i32
    %c0_i32_0 = arith.constant 0 : i32
    return %arg0, %c0_i32 : i32, i32
  }
  func.func @transform_1(%arg0: i32) -> (i32, i32) {
    %c0_i32 = arith.constant 0 : i32
    %c0_i32_0 = arith.constant 0 : i32
    %c0_i32_1 = arith.constant 0 : i32
    return %c0_i32, %c0_i32_0 : i32, i32
  }
  func.func @transform_2(%arg0: i32) -> (i32, i32) {
    %c0_i32 = arith.constant 0 : i32
    %c0_i32_0 = arith.constant 0 : i32
    %c0_i32_1 = arith.constant 0 : i32
    return %c0_i32, %c0_i32_0 : i32, i32
  }
  func.func @transform_3(%arg0: i32) -> (i32, i32) {
    %c0_i32 = arith.constant 0 : i32
    %c0_i32_0 = arith.constant 0 : i32
    %c0_i32_1 = arith.constant 0 : i32
    return %c0_i32, %c0_i32_0 : i32, i32
  }
  func.func @transform_4(%arg0: i32) -> (i32, i32) {
    %c0_i32 = arith.constant 0 : i32
    %c0_i32_0 = arith.constant 0 : i32
    %c0_i32_1 = arith.constant 0 : i32
    return %c0_i32, %c0_i32_0 : i32, i32
  }
  func.func @transform_5(%arg0: i32) -> (i32, i32) {
    %c0_i32 = arith.constant 0 : i32
    %c0_i32_0 = arith.constant 0 : i32
    %c0_i32_1 = arith.constant 0 : i32
    return %c0_i32, %c0_i32_0 : i32, i32
  }
  func.func @transform_6(%arg0: i32) -> (i32, i32) {
    %c0_i32 = arith.constant 0 : i32
    %c0_i32_0 = arith.constant 0 : i32
    %c0_i32_1 = arith.constant 0 : i32
    return %c0_i32, %c0_i32_0 : i32, i32
  }
  func.func @transform_7(%arg0: i32) -> (i32, i32) {
    %c0_i32 = arith.constant 0 : i32
    %c0_i32_0 = arith.constant 0 : i32
    return %arg0, %c0_i32 : i32, i32
  }
  func.func @transform_8(%arg0: i32) -> (i32, i32) {
    %c0_i32 = arith.constant 0 : i32
    %c0_i32_0 = arith.constant 0 : i32
    return %arg0, %c0_i32 : i32, i32
  }
}

</mosaic_0001>

<bundles_post_ra>
// kernel: _feedforward_impl.1
= control target key start
LH: loop header
LB: loop body
LE: loop exit
PB: predicated region body
PF: predicated region fallthrough
CT: control target
= control target key end

     0   :  { %14 = vsyncpa [#allocation3], 0  ;;  %s3408_s0 = inlined_call_operand.vmem [shape: f32[256,16], index: 0, kind: input, shape index: {}]   ;;  %s3409_s1 = inlined_call_operand.vmem [shape: f32[16,128], index: 1, kind: input, shape index: {}]   ;;  %s3410_s2 = inlined_call_operand.vmem [shape: f32[128,128], index: 2, kind: input, shape index: {}]   ;;  %s3411_s3 = inlined_call_operand.vmem [shape: f32[128,128], index: 3, kind: input, shape index: {}]   ;;  %s3412_s4 = inlined_call_operand.hbm [shape: f32[128,128], index: 4, kind: input, shape index: {}]   ;;  %s3413_s5 = inlined_call_operand.hbm [shape: f32[128,128], index: 5, kind: input, shape index: {}]   ;;  %s3414_s6 = inlined_call_operand.vmem [shape: f32[8,128], index: 6, kind: input, shape index: {}]   ;;  %s3415_s7 = inlined_call_operand.vmem [shape: f32[256,128], index: 7, kind: output, shape index: {0}]   ;;  %s3416_s8 = inlined_call_operand.vmem [shape: f32[256,128], index: 8, kind: output, shape index: {1}]  }
   0x1   :  { %15 = vsyncpa [#allocation5], 0  ;;  %s2680_s27 = smov [#allocation2]   ;;  %s2632_s9 = scalar_lea.hbm %s3412_s4, 2048 }
   0x2   :  { %s29_s28 = sshll.u32 %s2680_s27, 4  ;;  %p2633_p0 = scmp.ne.s32.totalorder %s3412_s4, %s2632_s9  ;;  %s30_s28 = int_to_ptr.vmem [resolvable:$true] %s29_s28 }
   0x3   :  { %p2636_p1 = scmp.lt.u32.totalorder %s2632_s9, %s3412_s4 }
   0x5   :  { %p2638_p2 = pnand %p2636_p1, %p2633_p0 }
   0x7   :  { %2641 = shalt.err (!%p2638_p2)
}
   0x8   :  { %s2642_s14 = scalar_lea.vmem %s30_s28, 2048  ;;  %p2647_p4 = scmp.lt.s32.totalorder %s30_s28, %s30_s28 }
   0x9   :  { %p2643_p3 = scmp.ne.s32.totalorder %s30_s28, %s2642_s14  ;;  %p2648_p5 = scmp.lt.s32.totalorder %s2642_s14, %s2642_s14 }
   0xb   :  { %p2649_p6 = por %p2648_p5, %p2647_p4 }
   0xd   :  { %p2650_p7 = pnand %p2649_p6, %p2643_p3 }
   0xf   :  { %2653 = shalt.err (!%p2650_p7)
}
  0x10   :  { %s2681_s15 = smov 128   ;;  %s2682_s16 = smov 8  }
  0x11   :  { %35 = dma.hbm_to_vmem [thread:$0]  %s3412_s4, 2048, %s30_s28, [#allocation3], %s2681_s15, %s2681_s15, %s2682_s16  }
  0x12   :  { %s2683_s19 = smov [#allocation4]   ;;  %s2654_s23 = scalar_lea.hbm %s3413_s5, 2048 }
  0x13   :  { %s41_s20 = sshll.u32 %s2683_s19, 4  ;;  %p2655_p8 = scmp.ne.s32.totalorder %s3413_s5, %s2654_s23  ;;  %s42_s20 = int_to_ptr.vmem [resolvable:$true] %s41_s20 }
  0x14   :  { %p2658_p9 = scmp.lt.u32.totalorder %s2654_s23, %s3413_s5 }
  0x16   :  { %p2660_p10 = pnand %p2658_p9, %p2655_p8 }
  0x18   :  { %2663 = shalt.err (!%p2660_p10)
}
  0x19   :  { %s2664_s29 = scalar_lea.vmem %s42_s20, 2048  ;;  %p2669_p12 = scmp.lt.s32.totalorder %s42_s20, %s42_s20 }
  0x1a   :  { %p2665_p11 = scmp.ne.s32.totalorder %s42_s20, %s2664_s29  ;;  %p2670_p13 = scmp.lt.s32.totalorder %s2664_s29, %s2664_s29 }
  0x1c   :  { %p2671_p0 = por %p2670_p13, %p2669_p12 }
  0x1e   :  { %p2672_p1 = pnand %p2671_p0, %p2665_p11 }
  0x20   :  { %2675 = shalt.err (!%p2672_p1)
}
  0x21   :  { %47 = dma.hbm_to_vmem [thread:$0]  %s3413_s5, 2048, %s42_s20, [#allocation5], %s2681_s15, %s2681_s15, %s2682_s16  }
  0x22   :  { %2676 = dma.done.wait [#allocation3], 2048  }
  0x23   :  { %2677 = vsyncadd [#allocation3], 4294965248 }
  0x24   :  { %2678 = dma.done.wait [#allocation5], 2048  }
  0x25   :  { %2679 = vsyncadd [#allocation5], 4294965248  ;;  %vm95_vm0 = vcmask 130048   ;;  %v88_v0 = vld [vmem:[%s3409_s1] sm:$0xff]  ;;  %v89_v1 = vld [vmem:[%s3409_s1 + $0x8] sm:$0xff] }
  0x26   :  { %v56_v2 = vld [vmem:[%s3408_s0] sm:$0xff]  ;;  %v2494_v3 = vpack.c.bf16 %v89_v1, %v88_v0  ;;  %v57_v4 = vld [vmem:[%s3408_s0 + $0x8] sm:$0xff]  ;;  %v58_v5 = vld [vmem:[%s3408_s0 + $0x10] sm:$0xff] }
  0x27   :  { %2126 = vmatprep.mubr.msk.f32.mxu0 %vm95_vm0, %v56_v2  ;;  %v72_v6 = vld [vmem:[%s3408_s0 + $0x80] sm:$0xff]  ;;  %v73_v7 = vld [vmem:[%s3408_s0 + $0x88] sm:$0xff]  ;;  %v74_v8 = vld [vmem:[%s3408_s0 + $0x90] sm:$0xff] }
  0x28   :  { %2495 = vmatprep.subr.bf16.mxu0 %v2494_v3  ;;  %2626 = vmatprep.subr.bf16.mxu1 %v2494_v3  ;;  %v59_v9 = vld [vmem:[%s3408_s0 + $0x18] sm:$0xff]  ;;  %v60_v10 = vld [vmem:[%s3408_s0 + $0x20] sm:$0xff]  ;;  %v514_v14 = vld [vmem:[%s3410_s2 + $0x8] sm:$0xff] }
  0x29   :  { %2497 = vmatpush3.bf16.msra.mxu0 %v2494_v3  ;;  %2627 = vmatpush3.bf16.msra.mxu1 %v2494_v3  ;;  %v75_v11 = vld [vmem:[%s3408_s0 + $0x98] sm:$0xff]  ;;  %v76_v12 = vld [vmem:[%s3408_s0 + $0xa0] sm:$0xff]  ;;  %v61_v15 = vld [vmem:[%s3408_s0 + $0x28] sm:$0xff] }
  0x2a   :  { %2150 = vmatprep.mubr.msk.f32.mxu1 %vm95_vm0, %v72_v6  ;;  %v513_v13 = vld [vmem:[%s3410_s2] sm:$0xff]  ;;  %v515_v17 = vld [vmem:[%s3410_s2 + $0x10] sm:$0xff]  ;;  %v516_v18 = vld [vmem:[%s3410_s2 + $0x18] sm:$0xff] }
  0x2b   :  { %v2498_v16 = vpack.c.bf16 %v514_v14, %v513_v13  ;;  %v62_v19 = vld [vmem:[%s3408_s0 + $0x30] sm:$0xff]  ;;  %v77_v20 = vld [vmem:[%s3408_s0 + $0xa8] sm:$0xff]  ;;  %v2502_v21 = vpack.c.bf16 %v516_v18, %v515_v17  ;;  %v517_v23 = vld [vmem:[%s3410_s2 + $0x20] sm:$0xff] }
  0x2c   :  { %2127 = vmatmul.mubr.msk.f32.vlgmr.msra.gmra.mrb[0].mxu0 %vm95_vm0, %v57_v4  ;;  %2151 = vmatmul.mubr.msk.f32.vlgmr.msra.gmra.mrb[0].mxu1 %vm95_vm0, %v73_v7  ;;  %v78_v22 = vld [vmem:[%s3408_s0 + $0xb0] sm:$0xff]  ;;  %v518_v24 = vld [vmem:[%s3410_s2 + $0x28] sm:$0xff]  ;;  %v63_v25 = vld [vmem:[%s3408_s0 + $0x38] sm:$0xff] }
  0x2d   :  { %2129 = vmatprep.mubr.msk.f32.mxu0 %vm95_vm0, %v58_v5  ;;  %2153 = vmatprep.mubr.msk.f32.mxu1 %vm95_vm0, %v74_v8  ;;  %v64_v26 = vld [vmem:[%s3408_s0 + $0x40] sm:$0xff]  ;;  %v79_v27 = vld [vmem:[%s3408_s0 + $0xb8] sm:$0xff]  ;;  %v2506_v28 = vpack.c.bf16 %v518_v24, %v517_v23  ;;  %v519_v30 = vld [vmem:[%s3410_s2 + $0x30] sm:$0xff] }
  0x2e   :  { %2499 = vmatprep.subr.bf16.mxu1 %v2498_v16  ;;  %v80_v29 = vld [vmem:[%s3408_s0 + $0xc0] sm:$0xff]  ;;  %v520_v31 = vld [vmem:[%s3410_s2 + $0x38] sm:$0xff]  ;;  %v65_v32 = vld [vmem:[%s3408_s0 + $0x48] sm:$0xff] }
  0x2f   :  { %2501 = vmatpush3.bf16.msra.mxu1 %v2498_v16  ;;  %v66_v33 = vld [vmem:[%s3408_s0 + $0x50] sm:$0xff]  ;;  %v81_v34 = vld [vmem:[%s3408_s0 + $0xc8] sm:$0xff]  ;;  %v2510_v35 = vpack.c.bf16 %v520_v31, %v519_v30  ;;  %v521_v37 = vld [vmem:[%s3410_s2 + $0x40] sm:$0xff] }
  0x30   :  { %2130 = vmatmul.mubr.msk.f32.gmra.mrb[2].mxu0 %vm95_vm0, %v59_v9  ;;  %2154 = vmatmul.mubr.msk.f32.gmra.mrb[2].mxu1 %vm95_vm0, %v75_v11  ;;  %v82_v36 = vld [vmem:[%s3408_s0 + $0xd0] sm:$0xff]  ;;  %v522_v38 = vld [vmem:[%s3410_s2 + $0x48] sm:$0xff]  ;;  %v67_v39 = vld [vmem:[%s3408_s0 + $0x58] sm:$0xff] }
  0x31   :  { %2132 = vmatprep.mubr.msk.f32.mxu0 %vm95_vm0, %v60_v10  ;;  %2156 = vmatprep.mubr.msk.f32.mxu1 %vm95_vm0, %v76_v12  ;;  %v68_v40 = vld [vmem:[%s3408_s0 + $0x60] sm:$0xff]  ;;  %v83_v41 = vld [vmem:[%s3408_s0 + $0xd8] sm:$0xff]  ;;  %v2514_v42 = vpack.c.bf16 %v522_v38, %v521_v37  ;;  %v523_v44 = vld [vmem:[%s3410_s2 + $0x50] sm:$0xff] }
  0x32   :  { %2503 = vmatprep.subr.bf16.mxu1 %v2502_v21  ;;  %v84_v43 = vld [vmem:[%s3408_s0 + $0xe0] sm:$0xff]  ;;  %v524_v45 = vld [vmem:[%s3410_s2 + $0x58] sm:$0xff]  ;;  %v69_v46 = vld [vmem:[%s3408_s0 + $0x68] sm:$0xff] }
  0x33   :  { %2505 = vmatpush3.bf16.msra.mxu1 %v2502_v21  ;;  %v70_v47 = vld [vmem:[%s3408_s0 + $0x70] sm:$0xff]  ;;  %v85_v48 = vld [vmem:[%s3408_s0 + $0xe8] sm:$0xff]  ;;  %v2518_v49 = vpack.c.bf16 %v524_v45, %v523_v44  ;;  %v525_v50 = vld [vmem:[%s3410_s2 + $0x60] sm:$0xff] }
  0x34   :  { %2133 = vmatmul.mubr.msk.f32.gmra.mrb[4].mxu0 %vm95_vm0, %v61_v15  ;;  %2157 = vmatmul.mubr.msk.f32.gmra.mrb[4].mxu1 %vm95_vm0, %v77_v20  ;;  %v526_v51 = vld [vmem:[%s3410_s2 + $0x68] sm:$0xff]  ;;  %v86_v52 = vld [vmem:[%s3408_s0 + $0xf0] sm:$0xff]  ;;  %v71_v53 = vld [vmem:[%s3408_s0 + $0x78] sm:$0xff] }
  0x35   :  { %2135 = vmatprep.mubr.msk.f32.mxu0 %vm95_vm0, %v62_v19  ;;  %2159 = vmatprep.mubr.msk.f32.mxu1 %vm95_vm0, %v78_v22  ;;  %v2522_v54 = vpack.c.bf16 %v526_v51, %v525_v50  ;;  %v87_v55 = vld [vmem:[%s3408_s0 + $0xf8] sm:$0xff]  ;;  %v527_v56 = vld [vmem:[%s3410_s2 + $0x70] sm:$0xff]  ;;  %v855_v59 = vld [vmem:[%s3411_s3] sm:$0xff] }
  0x36   :  { %2507 = vmatprep.subr.bf16.mxu1 %v2506_v28  ;;  %v528_v57 = vld [vmem:[%s3410_s2 + $0x78] sm:$0xff]  ;;  %v856_v60 = vld [vmem:[%s3411_s3 + $0x8] sm:$0xff]  ;;  %v857_v61 = vld [vmem:[%s3411_s3 + $0x10] sm:$0xff] }
  0x37   :  { %2509 = vmatpush3.bf16.msra.mxu1 %v2506_v28  ;;  %v2526_v58 = vpack.c.bf16 %v528_v57, %v527_v56  ;;  %v2530_v62 = vpack.c.bf16 %v856_v60, %v855_v59  ;;  %v858_v63 = vld [vmem:[%s3411_s3 + $0x18] sm:$0xff]  ;;  %v859_v1 = vld [vmem:[%s3411_s3 + $0x20] sm:$0xff]  ;;  %v860_v2 = vld [vmem:[%s3411_s3 + $0x28] sm:$0xff] }
  0x38   :  { %2136 = vmatmul.mubr.msk.f32.gmra.mrb[6].mxu0 %vm95_vm0, %v63_v25  ;;  %2160 = vmatmul.mubr.msk.f32.gmra.mrb[6].mxu1 %vm95_vm0, %v79_v27  ;;  %v2534_v0 = vpack.c.bf16 %v858_v63, %v857_v61  ;;  %v2538_v3 = vpack.c.bf16 %v860_v2, %v859_v1  ;;  %v861_v4 = vld [vmem:[%s3411_s3 + $0x30] sm:$0xff]  ;;  %v862_v5 = vld [vmem:[%s3411_s3 + $0x38] sm:$0xff]  ;;  %v863_v7 = vld [vmem:[%s3411_s3 + $0x40] sm:$0xff] }
  0x39   :  { %2138 = vmatprep.mubr.msk.f32.mxu0 %vm95_vm0, %v64_v26  ;;  %2162 = vmatprep.mubr.msk.f32.mxu1 %vm95_vm0, %v80_v29  ;;  %v2542_v6 = vpack.c.bf16 %v862_v5, %v861_v4  ;;  %v864_v8 = vld [vmem:[%s3411_s3 + $0x48] sm:$0xff]  ;;  %v865_v10 = vld [vmem:[%s3411_s3 + $0x50] sm:$0xff]  ;;  %v866_v11 = vld [vmem:[%s3411_s3 + $0x58] sm:$0xff] }
  0x3a   :  { %2511 = vmatprep.subr.bf16.mxu1 %v2510_v35  ;;  %2531 = vmatprep.subr.bf16.mxu0 %v2530_v62  ;;  %v2546_v9 = vpack.c.bf16 %v864_v8, %v863_v7  ;;  %v2550_v12 = vpack.c.bf16 %v866_v11, %v865_v10  ;;  %v867_v13 = vld [vmem:[%s3411_s3 + $0x60] sm:$0xff]  ;;  %v868_v14 = vld [vmem:[%s3411_s3 + $0x68] sm:$0xff] }
  0x3b   :  { %2513 = vmatpush3.bf16.msra.mxu1 %v2510_v35  ;;  %2533 = vmatpush3.bf16.msra.mxu0 %v2530_v62  ;;  %v2554_v15 = vpack.c.bf16 %v868_v14, %v867_v13  ;;  %v2980_v16 = vld [vmem:[%s3414_s6] ss:$0 sm:$0xff] }
  0x3c   :  { %2139 = vmatmul.mubr.msk.f32.gmra.mrb[8].mxu0 %vm95_vm0, %v65_v32  ;;  %2163 = vmatmul.mubr.msk.f32.gmra.mrb[8].mxu1 %vm95_vm0, %v81_v34 }
  0x3d   :  { %2141 = vmatprep.mubr.msk.f32.mxu0 %vm95_vm0, %v66_v33  ;;  %2165 = vmatprep.mubr.msk.f32.mxu1 %vm95_vm0, %v82_v36 }
  0x3e   :  { %2515 = vmatprep.subr.bf16.mxu1 %v2514_v42  ;;  %2535 = vmatprep.subr.bf16.mxu0 %v2534_v0 }
  0x3f   :  { %2517 = vmatpush3.bf16.msra.mxu1 %v2514_v42  ;;  %2537 = vmatpush3.bf16.msra.mxu0 %v2534_v0 }
  0x40   :  { %2142 = vmatmul.mubr.msk.f32.gmra.mrb[10].mxu0 %vm95_vm0, %v67_v39  ;;  %2166 = vmatmul.mubr.msk.f32.gmra.mrb[10].mxu1 %vm95_vm0, %v83_v41 }
  0x41   :  { %2144 = vmatprep.mubr.msk.f32.mxu0 %vm95_vm0, %v68_v40  ;;  %2168 = vmatprep.mubr.msk.f32.mxu1 %vm95_vm0, %v84_v43 }
  0x42   :  { %2519 = vmatprep.subr.bf16.mxu1 %v2518_v49  ;;  %2539 = vmatprep.subr.bf16.mxu0 %v2538_v3 }
  0x43   :  { %2521 = vmatpush3.bf16.msra.mxu1 %v2518_v49  ;;  %2541 = vmatpush3.bf16.msra.mxu0 %v2538_v3 }
  0x44   :  { %2145 = vmatmul.mubr.msk.f32.gmra.mrb[12].mxu0 %vm95_vm0, %v69_v46  ;;  %2169 = vmatmul.mubr.msk.f32.gmra.mrb[12].mxu1 %vm95_vm0, %v85_v48 }
  0x45   :  { %2147 = vmatprep.mubr.msk.f32.mxu0 %vm95_vm0, %v70_v47  ;;  %2171 = vmatprep.mubr.msk.f32.mxu1 %vm95_vm0, %v86_v52 }
  0x46   :  { %2523 = vmatprep.subr.bf16.mxu1 %v2522_v54  ;;  %2543 = vmatprep.subr.bf16.mxu0 %v2542_v6 }
  0x47   :  { %2525 = vmatpush3.bf16.msra.mxu1 %v2522_v54  ;;  %2545 = vmatpush3.bf16.msra.mxu0 %v2542_v6 }
  0x48   :  { %2148 = vmatmul.mubr.msk.f32.gmra.mrb[14].mxu0 %vm95_vm0, %v71_v53  ;;  %2172 = vmatmul.mubr.msk.f32.gmra.mrb[14].mxu1 %vm95_vm0, %v87_v55 }
  0x49   :  { %2527 = vmatprep.subr.bf16.mxu1 %v2526_v58  ;;  %2547 = vmatprep.subr.bf16.mxu0 %v2546_v9 }
  0x4b   :  { %2529 = vmatpush3.bf16.msra.mxu1 %v2526_v58  ;;  %2549 = vmatpush3.bf16.msra.mxu0 %v2546_v9 }
  0x4c   :  { %2551 = vmatprep.subr.bf16.mxu0 %v2550_v12 }
  0x4f   :  { %2553 = vmatpush3.bf16.msra.mxu0 %v2550_v12 }
  0x50   :  { %2555 = vmatprep.subr.bf16.mxu0 %v2554_v15 }
  0x53   :  { %2557 = vmatpush3.bf16.msra.mxu0 %v2554_v15 }
  0xff   :  { %v2128_v17 = vpop.f32.mrb[0].mxu0  ;;  %v2983_v20 = vpop.f32.mrb[0].mxu1 }
 0x100   :  { %v264_v18 = vadd.f32 %v2128_v17, %v2980_v16  ;;  %v258_v19 = vpop.f32.mrb[1].mxu0  ;;  %v2986_v22 = vpop.f32.mrb[1].mxu1 }
 0x101   :  { %v259_v21 = vadd.f32 %v2980_v16, %v258_v19 }
 0x102   :  { %v450_v23 = vmul.f32 0.1, %v264_v18  ;;  %vm418_vm1 = vcmp.gt.f32.partialorder %v264_v18, 0.0 }
 0x103   :  { %v449_v24 = vmul.f32 0.1, %v259_v21  ;;  %v2131_v25 = vpop.f32.mrb[2].mxu0  ;;  %vm417_vm2 = vcmp.gt.f32.partialorder %v259_v21, 0.0  ;;  %v2989_v28 = vpop.f32.mrb[2].mxu1 }
 0x104   :  { %v274_v26 = vadd.f32 %v2131_v25, %v2980_v16  ;;  %v268_v27 = vpop.f32.mrb[3].mxu0  ;;  %v2992_v31 = vpop.f32.mrb[3].mxu1  ;;  %v482_v32 = vsel %vm418_vm1, %v264_v18, %v450_v23  ;;  %v339_v18 = vadd.f32 %v2980_v16, %v2986_v22 }
 0x105   :  { %v269_v29 = vadd.f32 %v2980_v16, %v268_v27  ;;  %v481_v30 = vsel %vm417_vm2, %v259_v21, %v449_v24  ;;  %v349_v22 = vadd.f32 %v2980_v16, %v2992_v31 }
 0x106   :  { %v452_v33 = vmul.f32 0.1, %v274_v26  ;;  %2206 = vmatprep.mubr.f32.mxu1 %v481_v30  ;;  %vm420_vm4 = vcmp.gt.f32.partialorder %v274_v26, 0.0  ;;  %vm433_vm15 = vcmp.gt.f32.partialorder %v339_v18, 0.0 }
 0x107   :  { %v451_v34 = vmul.f32 0.1, %v269_v29  ;;  %v2134_v35 = vpop.f32.mrb[4].mxu0  ;;  %2207 = vmatmul.mubr.f32.vlgmr.msra.gmra.mrb[16].mxu1 %v482_v32  ;;  %vm419_vm3 = vcmp.gt.f32.partialorder %v269_v29, 0.0  ;;  %v2995_v38 = vpop.f32.mrb[4].mxu1  ;;  %vm435_vm2 = vcmp.gt.f32.partialorder %v349_v22, 0.0 }
 0x108   :  { %v284_v36 = vadd.f32 %v2134_v35, %v2980_v16  ;;  %v278_v37 = vpop.f32.mrb[5].mxu0  ;;  %v2998_v41 = vpop.f32.mrb[5].mxu1  ;;  %v484_v43 = vsel %vm420_vm4, %v274_v26, %v452_v33  ;;  %v465_v32 = vmul.f32 0.1, %v339_v18 }
 0x109   :  { %v279_v39 = vadd.f32 %v2980_v16, %v278_v37  ;;  %v483_v40 = vsel %vm419_vm3, %v269_v29, %v451_v34 }
 0x10a   :  { %v454_v42 = vmul.f32 0.1, %v284_v36  ;;  %2209 = vmatprep.mubr.f32.mxu1 %v483_v40  ;;  %vm422_vm6 = vcmp.gt.f32.partialorder %v284_v36, 0.0  ;;  %v467_v40 = vmul.f32 0.1, %v349_v22 }
 0x10b   :  { %v453_v44 = vmul.f32 0.1, %v279_v39  ;;  %v2137_v45 = vpop.f32.mrb[6].mxu0  ;;  %2210 = vmatmul.mubr.f32.gmra.mrb[18].mxu1 %v484_v43  ;;  %vm421_vm5 = vcmp.gt.f32.partialorder %v279_v39, 0.0  ;;  %v3001_v48 = vpop.f32.mrb[6].mxu1  ;;  %v497_v43 = vsel %vm433_vm15, %v339_v18, %v465_v32  ;;  %v1202_v32 = vld [vmem:[#allocation2 + $0x28] sm:$0xff] }
 0x10c   :  { %v294_v46 = vadd.f32 %v2137_v45, %v2980_v16  ;;  %v288_v47 = vpop.f32.mrb[7].mxu0  ;;  %v3004_v51 = vpop.f32.mrb[7].mxu1  ;;  %v486_v53 = vsel %vm422_vm6, %v284_v36, %v454_v42  ;;  %v344_v36 = vadd.f32 %v2983_v20, %v2980_v16  ;;  %v354_v45 = vadd.f32 %v2989_v28, %v2980_v16 }
 0x10d   :  { %v289_v49 = vadd.f32 %v2980_v16, %v288_v47  ;;  %v485_v50 = vsel %vm421_vm5, %v279_v39, %v453_v44  ;;  %v359_v44 = vadd.f32 %v2980_v16, %v2998_v41  ;;  %v499_v47 = vsel %vm435_vm2, %v349_v22, %v467_v40  ;;  %v1203_v22 = vld [vmem:[#allocation2 + $0x30] sm:$0xff] }
 0x10e   :  { %v456_v52 = vmul.f32 0.1, %v294_v46  ;;  %2212 = vmatprep.mubr.f32.mxu1 %v485_v50  ;;  %vm424_vm8 = vcmp.gt.f32.partialorder %v294_v46, 0.0  ;;  %v466_v31 = vmul.f32 0.1, %v344_v36  ;;  %vm434_vm3 = vcmp.gt.f32.partialorder %v344_v36, 0.0 }
 0x10f   :  { %v455_v54 = vmul.f32 0.1, %v289_v49  ;;  %v2140_v55 = vpop.f32.mrb[8].mxu0  ;;  %2213 = vmatmul.mubr.f32.gmra.mrb[20].mxu1 %v486_v53  ;;  %vm423_vm7 = vcmp.gt.f32.partialorder %v289_v49, 0.0  ;;  %v3007_v58 = vpop.f32.mrb[8].mxu1  ;;  %vm437_vm4 = vcmp.gt.f32.partialorder %v359_v44, 0.0 }
 0x110   :  { %v304_v56 = vadd.f32 %v2140_v55, %v2980_v16  ;;  %v298_v57 = vpop.f32.mrb[9].mxu0  ;;  %v3010_v61 = vpop.f32.mrb[9].mxu1  ;;  %v488_v63 = vsel %vm424_vm8, %v294_v46, %v456_v52  ;;  %v469_v20 = vmul.f32 0.1, %v359_v44  ;;  %v468_v50 = vmul.f32 0.1, %v354_v45 }
 0x111   :  { %v299_v59 = vadd.f32 %v2980_v16, %v298_v57  ;;  %v487_v60 = vsel %vm423_vm7, %v289_v49, %v455_v54  ;;  %v369_v49 = vadd.f32 %v2980_v16, %v3004_v51  ;;  %v364_v52 = vadd.f32 %v2995_v38, %v2980_v16  ;;  %v1207_v40 = vld [vmem:[#allocation2 + $0x50] sm:$0xff] }
 0x112   :  { %v458_v62 = vmul.f32 0.1, %v304_v56  ;;  %2215 = vmatprep.mubr.f32.mxu1 %v487_v60  ;;  %vm426_vm10 = vcmp.gt.f32.partialorder %v304_v56, 0.0  ;;  %v498_v41 = vsel %vm434_vm3, %v344_v36, %v466_v31  ;;  %vm436_vm5 = vcmp.gt.f32.partialorder %v354_v45, 0.0  ;;  %v1205_v36 = vld [vmem:[#allocation2 + $0x40] sm:$0xff]  ;;  %v1210_v31 = vld [vmem:[#allocation2 + $0x68] sm:$0xff] }
 0x113   :  { %v457_v0 = vmul.f32 0.1, %v299_v59  ;;  %v2143_v1 = vpop.f32.mrb[10].mxu0  ;;  %2216 = vmatmul.mubr.f32.gmra.mrb[22].mxu1 %v488_v63  ;;  %vm425_vm9 = vcmp.gt.f32.partialorder %v299_v59, 0.0  ;;  %v3013_v4 = vpop.f32.mrb[10].mxu1  ;;  %v501_v53 = vsel %vm437_vm4, %v359_v44, %v469_v20  ;;  %v379_v54 = vadd.f32 %v2980_v16, %v3010_v61  ;;  %v1209_v44 = vld [vmem:[#allocation2 + $0x60] sm:$0xff] }
 0x114   :  { %v314_v2 = vadd.f32 %v2143_v1, %v2980_v16  ;;  %v308_v3 = vpop.f32.mrb[11].mxu0  ;;  %v3016_v7 = vpop.f32.mrb[11].mxu1  ;;  %v490_v9 = vsel %vm426_vm10, %v304_v56, %v458_v62  ;;  %v471_v28 = vmul.f32 0.1, %v369_v49  ;;  %v470_v55 = vmul.f32 0.1, %v364_v52 }
 0x115   :  { %v309_v5 = vadd.f32 %v2980_v16, %v308_v3  ;;  %v489_v6 = vsel %vm425_vm9, %v299_v59, %v457_v0  ;;  %v374_v56 = vadd.f32 %v3001_v48, %v2980_v16  ;;  %v500_v57 = vsel %vm436_vm5, %v354_v45, %v468_v50  ;;  %v1212_v20 = vld [vmem:[#allocation2 + $0x78] sm:$0xff] }
 0x116   :  { %v460_v8 = vmul.f32 0.1, %v314_v2  ;;  %2218 = vmatprep.mubr.f32.mxu1 %v489_v6  ;;  %vm428_vm12 = vcmp.gt.f32.partialorder %v314_v2, 0.0  ;;  %vm439_vm6 = vcmp.gt.f32.partialorder %v369_v49, 0.0  ;;  %vm438_vm7 = vcmp.gt.f32.partialorder %v364_v52, 0.0 }
 0x117   :  { %v459_v10 = vmul.f32 0.1, %v309_v5  ;;  %v2146_v11 = vpop.f32.mrb[12].mxu0  ;;  %2219 = vmatmul.mubr.f32.gmra.mrb[24].mxu1 %v490_v9  ;;  %vm427_vm11 = vcmp.gt.f32.partialorder %v309_v5, 0.0  ;;  %v3019_v14 = vpop.f32.mrb[12].mxu1  ;;  %v503_v51 = vsel %vm439_vm6, %v369_v49, %v471_v28  ;;  %v389_v59 = vadd.f32 %v2980_v16, %v3016_v7 }
 0x118   :  { %v324_v12 = vadd.f32 %v2146_v11, %v2980_v16  ;;  %v318_v13 = vpop.f32.mrb[13].mxu0  ;;  %v3024_v19 = vpop.f32.mrb[13].mxu1  ;;  %v492_v23 = vsel %vm428_vm12, %v314_v2, %v460_v8  ;;  %v473_v38 = vmul.f32 0.1, %v379_v54  ;;  %v472_v60 = vmul.f32 0.1, %v374_v56 }
 0x119   :  { %v319_v15 = vadd.f32 %v2980_v16, %v318_v13  ;;  %v491_v17 = vsel %vm427_vm11, %v309_v5, %v459_v10  ;;  %v384_v62 = vadd.f32 %v3007_v58, %v2980_v16  ;;  %v502_v63 = vsel %vm438_vm7, %v364_v52, %v470_v55  ;;  %v3071_v49 = vld [vmem:[%s3414_s6 + $0x1] ss:$0 sm:$0xff] }
 0x11a   :  { %v462_v21 = vmul.f32 0.1, %v324_v12  ;;  %2221 = vmatprep.mubr.f32.mxu1 %v491_v17  ;;  %vm430_vm14 = vcmp.gt.f32.partialorder %v324_v12, 0.0  ;;  %vm441_vm8 = vcmp.gt.f32.partialorder %v379_v54, 0.0  ;;  %vm440_vm9 = vcmp.gt.f32.partialorder %v374_v56, 0.0 }
 0x11b   :  { %v461_v24 = vmul.f32 0.1, %v319_v15  ;;  %v2149_v25 = vpop.f32.mrb[14].mxu0  ;;  %2222 = vmatmul.mubr.f32.gmra.mrb[26].mxu1 %v492_v23  ;;  %vm429_vm13 = vcmp.gt.f32.partialorder %v319_v15, 0.0  ;;  %v3027_v29 = vpop.f32.mrb[14].mxu1  ;;  %v505_v61 = vsel %vm441_vm8, %v379_v54, %v473_v38  ;;  %v399_v0 = vadd.f32 %v2980_v16, %v3024_v19  ;;  %v869_v19 = vld [vmem:[%s3411_s3 + $0x70] sm:$0xff] }
 0x11c   :  { %v334_v26 = vadd.f32 %v2149_v25, %v2980_v16  ;;  %v328_v27 = vpop.f32.mrb[15].mxu0  ;;  %v3032_v34 = vpop.f32.mrb[15].mxu1  ;;  %v494_v37 = vsel %vm430_vm14, %v324_v12, %v462_v21  ;;  %v475_v48 = vmul.f32 0.1, %v389_v59  ;;  %v474_v1 = vmul.f32 0.1, %v384_v62 }
 0x11d   :  { %v329_v30 = vadd.f32 %v2980_v16, %v328_v27  ;;  %v493_v33 = vsel %vm429_vm13, %v319_v15, %v461_v24  ;;  %v394_v2 = vadd.f32 %v3013_v4, %v2980_v16  ;;  %v504_v3 = vsel %vm440_vm9, %v374_v56, %v472_v60  ;;  %v1197_v23 = vld [vmem:[#allocation2] sm:$0xff]  ;;  %v1198_v24 = vld [vmem:[#allocation2 + $0x8] sm:$0xff]  ;;  %v1199_v25 = vld [vmem:[#allocation2 + $0x10] sm:$0xff] }
 0x11e   :  { %v464_v35 = vmul.f32 0.1, %v334_v26  ;;  %2224 = vmatprep.mubr.f32.mxu1 %v493_v33  ;;  %vm432_vm1 = vcmp.gt.f32.partialorder %v334_v26, 0.0  ;;  %vm443_vm10 = vcmp.gt.f32.partialorder %v389_v59, 0.0  ;;  %vm442_vm11 = vcmp.gt.f32.partialorder %v384_v62, 0.0  ;;  %v1200_v27 = vld [vmem:[#allocation2 + $0x18] sm:$0xff] }
 0x11f   :  { %v463_v39 = vmul.f32 0.1, %v329_v30  ;;  %2225 = vmatmul.mubr.f32.gmra.mrb[28].mxu1 %v494_v37  ;;  %vm431_vm0 = vcmp.gt.f32.partialorder %v329_v30, 0.0  ;;  %v477_v58 = vmul.f32 0.1, %v399_v0  ;;  %v507_v5 = vsel %vm443_vm10, %v389_v59, %v475_v48  ;;  %v1206_v37 = vld [vmem:[#allocation2 + $0x48] sm:$0xff] }
 0x120   :  { %v496_v46 = vsel %vm432_vm1, %v334_v26, %v464_v35  ;;  %v409_v6 = vadd.f32 %v2980_v16, %v3032_v34  ;;  %v476_v7 = vmul.f32 0.1, %v394_v2  ;;  %v404_v8 = vadd.f32 %v3019_v14, %v2980_v16  ;;  %v1204_v34 = vld [vmem:[#allocation2 + $0x38] sm:$0xff] }
 0x121   :  { %v495_v42 = vsel %vm431_vm0, %v329_v30, %v463_v39  ;;  %v506_v9 = vsel %vm442_vm11, %v384_v62, %v474_v1  ;;  %vm445_vm12 = vcmp.gt.f32.partialorder %v399_v0, 0.0  ;;  %vm444_vm13 = vcmp.gt.f32.partialorder %v394_v2, 0.0  ;;  %v1201_v30 = vld [vmem:[#allocation2 + $0x20] sm:$0xff] }
 0x122   :  { %2227 = vmatprep.mubr.f32.mxu1 %v495_v42  ;;  %v479_v4 = vmul.f32 0.1, %v409_v6  ;;  %v509_v10 = vsel %vm445_vm12, %v399_v0, %v477_v58  ;;  %v478_v11 = vmul.f32 0.1, %v404_v8  ;;  %v414_v12 = vadd.f32 %v3027_v29, %v2980_v16  ;;  %v870_v16 = vld [vmem:[%s3411_s3 + $0x78] sm:$0xff] }
 0x123   :  { %2228 = vmatmul.mubr.f32.gmra.mrb[30].mxu1 %v496_v46  ;;  %v508_v13 = vsel %vm444_vm13, %v394_v2, %v476_v7  ;;  %vm447_vm14 = vcmp.gt.f32.partialorder %v409_v6, 0.0  ;;  %vm446_vm15 = vcmp.gt.f32.partialorder %v404_v8, 0.0  ;;  %v2558_v21 = vpack.c.bf16 %v870_v16, %v869_v19  ;;  %v1208_v42 = vld [vmem:[#allocation2 + $0x58] sm:$0xff]  ;;  %v1211_v46 = vld [vmem:[#allocation2 + $0x70] sm:$0xff] }
 0x124   :  { %2230 = vmatprep.mubr.f32.mxu1 %v497_v43  ;;  %v511_v15 = vsel %vm447_vm14, %v409_v6, %v479_v4  ;;  %v480_v17 = vmul.f32 0.1, %v414_v12  ;;  %v510_v18 = vsel %vm446_vm15, %v404_v8, %v478_v11  ;;  %vm448_vm0 = vcmp.gt.f32.partialorder %v414_v12, 0.0 }
 0x125   :  { %2559 = vmatprep.subr.bf16.mxu0 %v2558_v21  ;;  %v2562_v26 = vpack.c.bf16 %v1198_v24, %v1197_v23  ;;  %v2566_v29 = vpack.c.bf16 %v1200_v27, %v1199_v25  ;;  %v2570_v33 = vpack.c.bf16 %v1202_v32, %v1201_v30  ;;  %v2574_v35 = vpack.c.bf16 %v1204_v34, %v1203_v22 }
 0x126   :  { %v512_v14 = vsel %vm448_vm0, %v414_v12, %v480_v17  ;;  %2561 = vmatpush3.bf16.msra.mxu0 %v2558_v21  ;;  %v2578_v39 = vpack.c.bf16 %v1206_v37, %v1205_v36  ;;  %v2582_v43 = vpack.c.bf16 %v1208_v42, %v1207_v40  ;;  %v2586_v45 = vpack.c.bf16 %v1210_v31, %v1209_v44 }
 0x127   :  { %2231 = vmatmul.mubr.f32.gmra.mrb[32].mxu1 %v498_v41  ;;  %2563 = vmatprep.subr.bf16.mxu1 %v2562_v26 }
 0x128   :  { %2233 = vmatprep.mubr.f32.mxu1 %v499_v47  ;;  %2565 = vmatpush3.bf16.msra.mxu1 %v2562_v26  ;;  %v2590_v47 = vpack.c.bf16 %v1212_v20, %v1211_v46 }
 0x129   :  { %2567 = vmatprep.subr.bf16.mxu1 %v2566_v29 }
 0x12b   :  { %2234 = vmatmul.mubr.f32.gmra.mrb[34].mxu1 %v500_v57 }
 0x12c   :  { %2236 = vmatprep.mubr.f32.mxu1 %v501_v53  ;;  %2569 = vmatpush3.bf16.msra.mxu1 %v2566_v29 }
 0x12d   :  { %2571 = vmatprep.subr.bf16.mxu1 %v2570_v33 }
 0x12f   :  { %2237 = vmatmul.mubr.f32.gmra.mrb[36].mxu1 %v502_v63 }
 0x130   :  { %2239 = vmatprep.mubr.f32.mxu1 %v503_v51  ;;  %2573 = vmatpush3.bf16.msra.mxu1 %v2570_v33 }
 0x131   :  { %2575 = vmatprep.subr.bf16.mxu1 %v2574_v35 }
 0x133   :  { %2240 = vmatmul.mubr.f32.gmra.mrb[38].mxu1 %v504_v3 }
 0x134   :  { %2242 = vmatprep.mubr.f32.mxu1 %v505_v61  ;;  %2577 = vmatpush3.bf16.msra.mxu1 %v2574_v35 }
 0x135   :  { %2579 = vmatprep.subr.bf16.mxu1 %v2578_v39 }
 0x137   :  { %2243 = vmatmul.mubr.f32.gmra.mrb[40].mxu1 %v506_v9 }
 0x138   :  { %2245 = vmatprep.mubr.f32.mxu1 %v507_v5  ;;  %2581 = vmatpush3.bf16.msra.mxu1 %v2578_v39 }
 0x139   :  { %2583 = vmatprep.subr.bf16.mxu1 %v2582_v43 }
 0x13b   :  { %2246 = vmatmul.mubr.f32.gmra.mrb[42].mxu1 %v508_v13 }
 0x13c   :  { %2248 = vmatprep.mubr.f32.mxu1 %v509_v10  ;;  %2585 = vmatpush3.bf16.msra.mxu1 %v2582_v43 }
 0x13d   :  { %2587 = vmatprep.subr.bf16.mxu1 %v2586_v45 }
 0x13f   :  { %2249 = vmatmul.mubr.f32.gmra.mrb[44].mxu1 %v510_v18 }
 0x140   :  { %2251 = vmatprep.mubr.f32.mxu1 %v511_v15  ;;  %2589 = vmatpush3.bf16.msra.mxu1 %v2586_v45 }
 0x141   :  { %2591 = vmatprep.subr.bf16.mxu1 %v2590_v47 }
 0x143   :  { %2252 = vmatmul.mubr.f32.gmra.mrb[46].mxu1 %v512_v14 }
 0x144   :  { %2593 = vmatpush3.bf16.msra.mxu1 %v2590_v47 }
 0x1da   :  { %v2208_v50 = vpop.f32.mrb[16].mxu1 }
 0x1db   :  { %v606_v52 = vadd.f32 %v2208_v50, %v3071_v49  ;;  %v600_v41 = vpop.f32.mrb[17].mxu1 }
 0x1dc   :  { %v601_v28 = vadd.f32 %v3071_v49, %v600_v41 }
 0x1dd   :  { %v792_v53 = vmul.f32 0.1, %v606_v52  ;;  %vm760_vm1 = vcmp.gt.f32.partialorder %v606_v52, 0.0 }
 0x1de   :  { %v791_v54 = vmul.f32 0.1, %v601_v28  ;;  %v2211_v55 = vpop.f32.mrb[18].mxu1  ;;  %vm759_vm2 = vcmp.gt.f32.partialorder %v601_v28, 0.0 }
 0x1df   :  { %v616_v56 = vadd.f32 %v2211_v55, %v3071_v49  ;;  %v610_v57 = vpop.f32.mrb[19].mxu1  ;;  %v824_v59 = vsel %vm760_vm1, %v606_v52, %v792_v53 }
 0x1e0   :  { %v611_v38 = vadd.f32 %v3071_v49, %v610_v57  ;;  %v823_v51 = vsel %vm759_vm2, %v601_v28, %v791_v54 }
 0x1e1   :  { %v794_v60 = vmul.f32 0.1, %v616_v56  ;;  %2286 = vmatprep.mubr.f32.mxu0 %v823_v51  ;;  %vm762_vm4 = vcmp.gt.f32.partialorder %v616_v56, 0.0 }
 0x1e2   :  { %v793_v62 = vmul.f32 0.1, %v611_v38  ;;  %v2214_v63 = vpop.f32.mrb[20].mxu1  ;;  %2287 = vmatmul.mubr.f32.vlgmr.msra.gmra.mrb[16].mxu0 %v824_v59  ;;  %vm761_vm3 = vcmp.gt.f32.partialorder %v611_v38, 0.0 }
 0x1e3   :  { %v626_v48 = vadd.f32 %v2214_v63, %v3071_v49  ;;  %v620_v61 = vpop.f32.mrb[21].mxu1  ;;  %v826_v3 = vsel %vm762_vm4, %v616_v56, %v794_v60 }
 0x1e4   :  { %v621_v0 = vadd.f32 %v3071_v49, %v620_v61  ;;  %v825_v1 = vsel %vm761_vm3, %v611_v38, %v793_v62 }
 0x1e5   :  { %v796_v2 = vmul.f32 0.1, %v626_v48  ;;  %2289 = vmatprep.mubr.f32.mxu0 %v825_v1  ;;  %vm764_vm6 = vcmp.gt.f32.partialorder %v626_v48, 0.0 }
 0x1e6   :  { %v795_v58 = vmul.f32 0.1, %v621_v0  ;;  %v2217_v5 = vpop.f32.mrb[22].mxu1  ;;  %2290 = vmatmul.mubr.f32.gmra.mrb[18].mxu0 %v826_v3  ;;  %vm763_vm5 = vcmp.gt.f32.partialorder %v621_v0, 0.0 }
 0x1e7   :  { %v636_v6 = vadd.f32 %v2217_v5, %v3071_v49  ;;  %v630_v7 = vpop.f32.mrb[23].mxu1  ;;  %v828_v10 = vsel %vm764_vm6, %v626_v48, %v796_v2 }
 0x1e8   :  { %v631_v8 = vadd.f32 %v3071_v49, %v630_v7  ;;  %v827_v9 = vsel %vm763_vm5, %v621_v0, %v795_v58 }
 0x1e9   :  { %v798_v4 = vmul.f32 0.1, %v636_v6  ;;  %2292 = vmatprep.mubr.f32.mxu0 %v827_v9  ;;  %vm766_vm8 = vcmp.gt.f32.partialorder %v636_v6, 0.0 }
 0x1ea   :  { %v797_v11 = vmul.f32 0.1, %v631_v8  ;;  %v2220_v12 = vpop.f32.mrb[24].mxu1  ;;  %2293 = vmatmul.mubr.f32.gmra.mrb[20].mxu0 %v828_v10  ;;  %vm765_vm7 = vcmp.gt.f32.partialorder %v631_v8, 0.0 }
 0x1eb   :  { %v646_v13 = vadd.f32 %v2220_v12, %v3071_v49  ;;  %v640_v15 = vpop.f32.mrb[25].mxu1  ;;  %v830_v19 = vsel %vm766_vm8, %v636_v6, %v798_v4 }
 0x1ec   :  { %v641_v17 = vadd.f32 %v3071_v49, %v640_v15  ;;  %v829_v18 = vsel %vm765_vm7, %v631_v8, %v797_v11 }
 0x1ed   :  { %v800_v14 = vmul.f32 0.1, %v646_v13  ;;  %2295 = vmatprep.mubr.f32.mxu0 %v829_v18  ;;  %vm768_vm10 = vcmp.gt.f32.partialorder %v646_v13, 0.0 }
 0x1ee   :  { %v799_v16 = vmul.f32 0.1, %v641_v17  ;;  %v2223_v21 = vpop.f32.mrb[26].mxu1  ;;  %2296 = vmatmul.mubr.f32.gmra.mrb[22].mxu0 %v830_v19  ;;  %vm767_vm9 = vcmp.gt.f32.partialorder %v641_v17, 0.0 }
 0x1ef   :  { %v656_v23 = vadd.f32 %v2223_v21, %v3071_v49  ;;  %v650_v24 = vpop.f32.mrb[27].mxu1  ;;  %v832_v29 = vsel %vm768_vm10, %v646_v13, %v800_v14 }
 0x1f0   :  { %v651_v25 = vadd.f32 %v3071_v49, %v650_v24  ;;  %v831_v26 = vsel %vm767_vm9, %v641_v17, %v799_v16 }
 0x1f1   :  { %v802_v27 = vmul.f32 0.1, %v656_v23  ;;  %2298 = vmatprep.mubr.f32.mxu0 %v831_v26  ;;  %vm770_vm12 = vcmp.gt.f32.partialorder %v656_v23, 0.0 }
 0x1f2   :  { %v801_v30 = vmul.f32 0.1, %v651_v25  ;;  %v2226_v32 = vpop.f32.mrb[28].mxu1  ;;  %2299 = vmatmul.mubr.f32.gmra.mrb[24].mxu0 %v832_v29  ;;  %vm769_vm11 = vcmp.gt.f32.partialorder %v651_v25, 0.0 }
 0x1f3   :  { %v666_v33 = vadd.f32 %v2226_v32, %v3071_v49  ;;  %v660_v22 = vpop.f32.mrb[29].mxu1  ;;  %v834_v37 = vsel %vm770_vm12, %v656_v23, %v802_v27 }
 0x1f4   :  { %v661_v34 = vadd.f32 %v3071_v49, %v660_v22  ;;  %v833_v35 = vsel %vm769_vm11, %v651_v25, %v801_v30 }
 0x1f5   :  { %v804_v36 = vmul.f32 0.1, %v666_v33  ;;  %2301 = vmatprep.mubr.f32.mxu0 %v833_v35  ;;  %vm772_vm14 = vcmp.gt.f32.partialorder %v666_v33, 0.0 }
 0x1f6   :  { %v803_v39 = vmul.f32 0.1, %v661_v34  ;;  %v2229_v40 = vpop.f32.mrb[30].mxu1  ;;  %2302 = vmatmul.mubr.f32.gmra.mrb[26].mxu0 %v834_v37  ;;  %vm771_vm13 = vcmp.gt.f32.partialorder %v661_v34, 0.0 }
 0x1f7   :  { %v676_v42 = vadd.f32 %v2229_v40, %v3071_v49  ;;  %v670_v43 = vpop.f32.mrb[31].mxu1  ;;  %v836_v46 = vsel %vm772_vm14, %v666_v33, %v804_v36 }
 0x1f8   :  { %v671_v44 = vadd.f32 %v3071_v49, %v670_v43  ;;  %v835_v31 = vsel %vm771_vm13, %v661_v34, %v803_v39 }
 0x1f9   :  { %v806_v45 = vmul.f32 0.1, %v676_v42  ;;  %2304 = vmatprep.mubr.f32.mxu0 %v835_v31  ;;  %vm774_vm0 = vcmp.gt.f32.partialorder %v676_v42, 0.0 }
 0x1fa   :  { %v805_v20 = vmul.f32 0.1, %v671_v44  ;;  %v2232_v47 = vpop.f32.mrb[32].mxu1  ;;  %2305 = vmatmul.mubr.f32.gmra.mrb[28].mxu0 %v836_v46  ;;  %vm773_vm15 = vcmp.gt.f32.partialorder %v671_v44, 0.0 }
 0x1fb   :  { %v686_v50 = vadd.f32 %v2232_v47, %v3071_v49  ;;  %v680_v52 = vpop.f32.mrb[33].mxu1  ;;  %v838_v54 = vsel %vm774_vm0, %v676_v42, %v806_v45 }
 0x1fc   :  { %v681_v41 = vadd.f32 %v3071_v49, %v680_v52  ;;  %v837_v28 = vsel %vm773_vm15, %v671_v44, %v805_v20 }
 0x1fd   :  { %v808_v53 = vmul.f32 0.1, %v686_v50  ;;  %2307 = vmatprep.mubr.f32.mxu0 %v837_v28  ;;  %vm776_vm2 = vcmp.gt.f32.partialorder %v686_v50, 0.0  ;;  %v1572_v28 = vld [vmem:[#allocation4 + $0x8] sm:$0xff] }
 0x1fe   :  { %v807_v55 = vmul.f32 0.1, %v681_v41  ;;  %v2235_v56 = vpop.f32.mrb[34].mxu1  ;;  %2308 = vmatmul.mubr.f32.gmra.mrb[30].mxu0 %v838_v54  ;;  %vm775_vm1 = vcmp.gt.f32.partialorder %v681_v41, 0.0 }
 0x1ff   :  { %v696_v57 = vadd.f32 %v2235_v56, %v3071_v49  ;;  %v690_v38 = vpop.f32.mrb[35].mxu1  ;;  %v840_v62 = vsel %vm776_vm2, %v686_v50, %v808_v53  ;;  %v1573_v53 = vld [vmem:[#allocation4 + $0x10] sm:$0xff] }
 0x200   :  { %v691_v51 = vadd.f32 %v3071_v49, %v690_v38  ;;  %v839_v59 = vsel %vm775_vm1, %v681_v41, %v807_v55  ;;  %v1571_v41 = vld [vmem:[#allocation4] sm:$0xff]  ;;  %v1574_v55 = vld [vmem:[#allocation4 + $0x18] sm:$0xff] }
 0x201   :  { %v810_v60 = vmul.f32 0.1, %v696_v57  ;;  %2310 = vmatprep.mubr.f32.mxu0 %v839_v59  ;;  %vm778_vm4 = vcmp.gt.f32.partialorder %v696_v57, 0.0  ;;  %v2594_v54 = vpack.c.bf16 %v1572_v28, %v1571_v41  ;;  %v2598_v56 = vpack.c.bf16 %v1574_v55, %v1573_v53  ;;  %v1578_v59 = vld [vmem:[#allocation4 + $0x38] sm:$0xff] }
 0x202   :  { %v809_v63 = vmul.f32 0.1, %v691_v51  ;;  %v2238_v48 = vpop.f32.mrb[36].mxu1  ;;  %2311 = vmatmul.mubr.f32.gmra.mrb[32].mxu0 %v840_v62  ;;  %vm777_vm3 = vcmp.gt.f32.partialorder %v691_v51, 0.0  ;;  %v1579_v62 = vld [vmem:[#allocation4 + $0x40] sm:$0xff] }
 0x203   :  { %v706_v61 = vadd.f32 %v2238_v48, %v3071_v49  ;;  %v700_v0 = vpop.f32.mrb[37].mxu1  ;;  %v842_v58 = vsel %vm778_vm4, %v696_v57, %v810_v60  ;;  %v1575_v57 = vld [vmem:[#allocation4 + $0x20] sm:$0xff]  ;;  %2595 = vmatprep.subr.bf16.mxu0 %v2594_v54 }
 0x204   :  { %v701_v1 = vadd.f32 %v3071_v49, %v700_v0  ;;  %v841_v2 = vsel %vm777_vm3, %v691_v51, %v809_v63  ;;  %2597 = vmatpush3.bf16.msra.mxu0 %v2594_v54  ;;  %v1577_v51 = vld [vmem:[#allocation4 + $0x30] sm:$0xff]  ;;  %v1580_v63 = vld [vmem:[#allocation4 + $0x48] sm:$0xff]  ;;  %v1582_v0 = vld [vmem:[#allocation4 + $0x58] sm:$0xff] }
 0x205   :  { %v812_v3 = vmul.f32 0.1, %v706_v61  ;;  %2313 = vmatprep.mubr.f32.mxu0 %v841_v2  ;;  %vm780_vm6 = vcmp.gt.f32.partialorder %v706_v61, 0.0  ;;  %2599 = vmatprep.subr.bf16.mxu0 %v2598_v56  ;;  %v2606_v60 = vpack.c.bf16 %v1578_v59, %v1577_v51  ;;  %v2610_v48 = vpack.c.bf16 %v1580_v63, %v1579_v62  ;;  %v1583_v2 = vld [vmem:[#allocation4 + $0x60] sm:$0xff] }
 0x206   :  { %v811_v5 = vmul.f32 0.1, %v701_v1  ;;  %v2241_v6 = vpop.f32.mrb[38].mxu1  ;;  %2314 = vmatmul.mubr.f32.gmra.mrb[34].mxu0 %v842_v58  ;;  %vm779_vm5 = vcmp.gt.f32.partialorder %v701_v1, 0.0 }
 0x207   :  { %v716_v7 = vadd.f32 %v2241_v6, %v3071_v49  ;;  %v710_v8 = vpop.f32.mrb[39].mxu1  ;;  %v844_v11 = vsel %vm780_vm6, %v706_v61, %v812_v3  ;;  %v1581_v61 = vld [vmem:[#allocation4 + $0x50] sm:$0xff]  ;;  %v1584_v3 = vld [vmem:[#allocation4 + $0x68] sm:$0xff]  ;;  %v1586_v6 = vld [vmem:[#allocation4 + $0x78] sm:$0xff] }
 0x208   :  { %v711_v9 = vadd.f32 %v3071_v49, %v710_v8  ;;  %v843_v4 = vsel %vm779_vm5, %v701_v1, %v811_v5  ;;  %2601 = vmatpush3.bf16.msra.mxu0 %v2598_v56  ;;  %v2614_v1 = vpack.c.bf16 %v1582_v0, %v1581_v61  ;;  %v2618_v58 = vpack.c.bf16 %v1584_v3, %v1583_v2  ;;  %v1585_v5 = vld [vmem:[#allocation4 + $0x70] sm:$0xff]  ;;  %v3108_v8 = vld [vmem:[%s3414_s6 + $0x2] ss:$0 sm:$0xff] }
 0x209   :  { %v814_v10 = vmul.f32 0.1, %v716_v7  ;;  %2316 = vmatprep.mubr.f32.mxu0 %v843_v4  ;;  %vm782_vm8 = vcmp.gt.f32.partialorder %v716_v7, 0.0 }
 0x20a   :  { %v813_v12 = vmul.f32 0.1, %v711_v9  ;;  %v2244_v13 = vpop.f32.mrb[40].mxu1  ;;  %2317 = vmatmul.mubr.f32.gmra.mrb[36].mxu0 %v844_v11  ;;  %vm781_vm7 = vcmp.gt.f32.partialorder %v711_v9, 0.0 }
 0x20b   :  { %v726_v15 = vadd.f32 %v2244_v13, %v3071_v49  ;;  %v720_v17 = vpop.f32.mrb[41].mxu1  ;;  %v846_v16 = vsel %vm782_vm8, %v716_v7, %v814_v10  ;;  %v2622_v7 = vpack.c.bf16 %v1586_v6, %v1585_v5 }
 0x20c   :  { %v721_v18 = vadd.f32 %v3071_v49, %v720_v17  ;;  %v845_v14 = vsel %vm781_vm7, %v711_v9, %v813_v12 }
 0x20d   :  { %v816_v19 = vmul.f32 0.1, %v726_v15  ;;  %2319 = vmatprep.mubr.f32.mxu0 %v845_v14  ;;  %vm784_vm10 = vcmp.gt.f32.partialorder %v726_v15, 0.0 }
 0x20e   :  { %v815_v21 = vmul.f32 0.1, %v721_v18  ;;  %v2247_v23 = vpop.f32.mrb[42].mxu1  ;;  %2320 = vmatmul.mubr.f32.gmra.mrb[38].mxu0 %v846_v16  ;;  %vm783_vm9 = vcmp.gt.f32.partialorder %v721_v18, 0.0 }
 0x20f   :  { %v736_v24 = vadd.f32 %v2247_v23, %v3071_v49  ;;  %v730_v25 = vpop.f32.mrb[43].mxu1  ;;  %v848_v30 = vsel %vm784_vm10, %v726_v15, %v816_v19 }
 0x210   :  { %v731_v26 = vadd.f32 %v3071_v49, %v730_v25  ;;  %v847_v27 = vsel %vm783_vm9, %v721_v18, %v815_v21 }
 0x211   :  { %v818_v29 = vmul.f32 0.1, %v736_v24  ;;  %2322 = vmatprep.mubr.f32.mxu0 %v847_v27  ;;  %vm786_vm12 = vcmp.gt.f32.partialorder %v736_v24, 0.0 }
 0x212   :  { %v817_v32 = vmul.f32 0.1, %v731_v26  ;;  %v2250_v33 = vpop.f32.mrb[44].mxu1  ;;  %2323 = vmatmul.mubr.f32.gmra.mrb[40].mxu0 %v848_v30  ;;  %vm785_vm11 = vcmp.gt.f32.partialorder %v731_v26, 0.0 }
 0x213   :  { %v746_v22 = vadd.f32 %v2250_v33, %v3071_v49  ;;  %v740_v34 = vpop.f32.mrb[45].mxu1  ;;  %v850_v39 = vsel %vm786_vm12, %v736_v24, %v818_v29 }
 0x214   :  { %v741_v35 = vadd.f32 %v3071_v49, %v740_v34  ;;  %v849_v36 = vsel %vm785_vm11, %v731_v26, %v817_v32 }
 0x215   :  { %v820_v37 = vmul.f32 0.1, %v746_v22  ;;  %2325 = vmatprep.mubr.f32.mxu0 %v849_v36  ;;  %vm788_vm14 = vcmp.gt.f32.partialorder %v746_v22, 0.0 }
 0x216   :  { %v819_v40 = vmul.f32 0.1, %v741_v35  ;;  %v2253_v42 = vpop.f32.mrb[46].mxu1  ;;  %2326 = vmatmul.mubr.f32.gmra.mrb[42].mxu0 %v850_v39  ;;  %vm787_vm13 = vcmp.gt.f32.partialorder %v741_v35, 0.0 }
 0x217   :  { %v756_v43 = vadd.f32 %v2253_v42, %v3071_v49  ;;  %v750_v44 = vpop.f32.mrb[47].mxu1  ;;  %v852_v20 = vsel %vm788_vm14, %v746_v22, %v820_v37 }
 0x218   :  { %v751_v31 = vadd.f32 %v3071_v49, %v750_v44  ;;  %v851_v45 = vsel %vm787_vm13, %v741_v35, %v819_v40  ;;  %v1576_v49 = vld [vmem:[#allocation4 + $0x28] sm:$0xff] }
 0x219   :  { %v822_v46 = vmul.f32 0.1, %v756_v43  ;;  %2328 = vmatprep.mubr.f32.mxu0 %v851_v45  ;;  %vm790_vm0 = vcmp.gt.f32.partialorder %v756_v43, 0.0  ;;  %v2602_v38 = vpack.c.bf16 %v1576_v49, %v1575_v57 }
 0x21a   :  { %v821_v47 = vmul.f32 0.1, %v751_v31  ;;  %2329 = vmatmul.mubr.f32.gmra.mrb[44].mxu0 %v852_v20  ;;  %vm789_vm15 = vcmp.gt.f32.partialorder %v751_v31, 0.0 }
 0x21b   :  { %v854_v52 = vsel %vm790_vm0, %v756_v43, %v822_v46  ;;  %2603 = vmatprep.subr.bf16.mxu0 %v2602_v38 }
 0x21c   :  { %v853_v50 = vsel %vm789_vm15, %v751_v31, %v821_v47  ;;  %2605 = vmatpush3.bf16.msra.mxu0 %v2602_v38 }
 0x21d   :  { %2331 = vmatprep.mubr.f32.mxu0 %v853_v50  ;;  %2607 = vmatprep.subr.bf16.mxu0 %v2606_v60 }
 0x21e   :  { %2332 = vmatmul.mubr.f32.gmra.mrb[46].mxu0 %v854_v52 }
 0x220   :  { %2609 = vmatpush3.bf16.msra.mxu0 %v2606_v60 }
 0x221   :  { %2611 = vmatprep.subr.bf16.mxu0 %v2610_v48 }
 0x224   :  { %2613 = vmatpush3.bf16.msra.mxu0 %v2610_v48 }
 0x225   :  { %2615 = vmatprep.subr.bf16.mxu0 %v2614_v1 }
 0x228   :  { %2617 = vmatpush3.bf16.msra.mxu0 %v2614_v1 }
 0x229   :  { %2619 = vmatprep.subr.bf16.mxu0 %v2618_v58 }
 0x22c   :  { %2621 = vmatpush3.bf16.msra.mxu0 %v2618_v58 }
 0x22d   :  { %2623 = vmatprep.subr.bf16.mxu0 %v2622_v7 }
 0x230   :  { %2625 = vmatpush3.bf16.msra.mxu0 %v2622_v7 }
 0x2b5   :  { %v2288_v9 = vpop.f32.mrb[16].mxu0 }
 0x2b6   :  { %v948_v4 = vadd.f32 %v2288_v9, %v3108_v8  ;;  %v942_v10 = vpop.f32.mrb[17].mxu0 }
 0x2b7   :  { %v943_v11 = vadd.f32 %v3108_v8, %v942_v10 }
 0x2b8   :  { %v1134_v12 = vmul.f32 0.1, %v948_v4  ;;  %vm1102_vm1 = vcmp.gt.f32.partialorder %v948_v4, 0.0 }
 0x2b9   :  { %v1133_v13 = vmul.f32 0.1, %v943_v11  ;;  %v2291_v15 = vpop.f32.mrb[18].mxu0  ;;  %vm1101_vm2 = vcmp.gt.f32.partialorder %v943_v11, 0.0 }
 0x2ba   :  { %v958_v17 = vadd.f32 %v2291_v15, %v3108_v8  ;;  %v952_v18 = vpop.f32.mrb[19].mxu0  ;;  %v1166_v16 = vsel %vm1102_vm1, %v948_v4, %v1134_v12 }
 0x2bb   :  { %v953_v14 = vadd.f32 %v3108_v8, %v952_v18  ;;  %v1165_v19 = vsel %vm1101_vm2, %v943_v11, %v1133_v13 }
 0x2bc   :  { %v1136_v21 = vmul.f32 0.1, %v958_v17  ;;  %2366 = vmatprep.mubr.f32.mxu1 %v1165_v19  ;;  %vm1104_vm4 = vcmp.gt.f32.partialorder %v958_v17, 0.0 }
 0x2bd   :  { %v1135_v23 = vmul.f32 0.1, %v953_v14  ;;  %v2294_v24 = vpop.f32.mrb[20].mxu0  ;;  %2367 = vmatmul.mubr.f32.vlgmr.msra.gmra.mrb[48].mxu1 %v1166_v16  ;;  %vm1103_vm3 = vcmp.gt.f32.partialorder %v953_v14, 0.0 }
 0x2be   :  { %v968_v25 = vadd.f32 %v2294_v24, %v3108_v8  ;;  %v962_v26 = vpop.f32.mrb[21].mxu0  ;;  %v1168_v32 = vsel %vm1104_vm4, %v958_v17, %v1136_v21 }
 0x2bf   :  { %v963_v27 = vadd.f32 %v3108_v8, %v962_v26  ;;  %v1167_v29 = vsel %vm1103_vm3, %v953_v14, %v1135_v23 }
 0x2c0   :  { %v1138_v30 = vmul.f32 0.1, %v968_v25  ;;  %2369 = vmatprep.mubr.f32.mxu1 %v1167_v29  ;;  %vm1106_vm6 = vcmp.gt.f32.partialorder %v968_v25, 0.0 }
 0x2c1   :  { %v1137_v33 = vmul.f32 0.1, %v963_v27  ;;  %v2297_v22 = vpop.f32.mrb[22].mxu0  ;;  %2370 = vmatmul.mubr.f32.gmra.mrb[50].mxu1 %v1168_v32  ;;  %vm1105_vm5 = vcmp.gt.f32.partialorder %v963_v27, 0.0 }
 0x2c2   :  { %v978_v34 = vadd.f32 %v2297_v22, %v3108_v8  ;;  %v972_v35 = vpop.f32.mrb[23].mxu0  ;;  %v1170_v40 = vsel %vm1106_vm6, %v968_v25, %v1138_v30 }
 0x2c3   :  { %v973_v36 = vadd.f32 %v3108_v8, %v972_v35  ;;  %v1169_v37 = vsel %vm1105_vm5, %v963_v27, %v1137_v33 }
 0x2c4   :  { %v1140_v39 = vmul.f32 0.1, %v978_v34  ;;  %2372 = vmatprep.mubr.f32.mxu1 %v1169_v37  ;;  %vm1108_vm8 = vcmp.gt.f32.partialorder %v978_v34, 0.0 }
 0x2c5   :  { %v1139_v42 = vmul.f32 0.1, %v973_v36  ;;  %v2300_v43 = vpop.f32.mrb[24].mxu0  ;;  %2373 = vmatmul.mubr.f32.gmra.mrb[52].mxu1 %v1170_v40  ;;  %vm1107_vm7 = vcmp.gt.f32.partialorder %v973_v36, 0.0 }
 0x2c6   :  { %v988_v44 = vadd.f32 %v2300_v43, %v3108_v8  ;;  %v982_v31 = vpop.f32.mrb[25].mxu0  ;;  %v1172_v47 = vsel %vm1108_vm8, %v978_v34, %v1140_v39 }
 0x2c7   :  { %v983_v45 = vadd.f32 %v3108_v8, %v982_v31  ;;  %v1171_v46 = vsel %vm1107_vm7, %v973_v36, %v1139_v42 }
 0x2c8   :  { %v1142_v20 = vmul.f32 0.1, %v988_v44  ;;  %2375 = vmatprep.mubr.f32.mxu1 %v1171_v46  ;;  %vm1110_vm10 = vcmp.gt.f32.partialorder %v988_v44, 0.0 }
 0x2c9   :  { %v1141_v50 = vmul.f32 0.1, %v983_v45  ;;  %v2303_v52 = vpop.f32.mrb[26].mxu0  ;;  %2376 = vmatmul.mubr.f32.gmra.mrb[54].mxu1 %v1172_v47  ;;  %vm1109_vm9 = vcmp.gt.f32.partialorder %v983_v45, 0.0 }
 0x2ca   :  { %v998_v41 = vadd.f32 %v2303_v52, %v3108_v8  ;;  %v992_v28 = vpop.f32.mrb[27].mxu0  ;;  %v1174_v56 = vsel %vm1110_vm10, %v988_v44, %v1142_v20 }
 0x2cb   :  { %v993_v53 = vadd.f32 %v3108_v8, %v992_v28  ;;  %v1173_v54 = vsel %vm1109_vm9, %v983_v45, %v1141_v50 }
 0x2cc   :  { %v1144_v55 = vmul.f32 0.1, %v998_v41  ;;  %2378 = vmatprep.mubr.f32.mxu1 %v1173_v54  ;;  %vm1112_vm12 = vcmp.gt.f32.partialorder %v998_v41, 0.0 }
 0x2cd   :  { %v1143_v57 = vmul.f32 0.1, %v993_v53  ;;  %v2306_v49 = vpop.f32.mrb[28].mxu0  ;;  %2379 = vmatmul.mubr.f32.gmra.mrb[56].mxu1 %v1174_v56  ;;  %vm1111_vm11 = vcmp.gt.f32.partialorder %v993_v53, 0.0 }
 0x2ce   :  { %v1008_v38 = vadd.f32 %v2306_v49, %v3108_v8  ;;  %v1002_v51 = vpop.f32.mrb[29].mxu0  ;;  %v1176_v63 = vsel %vm1112_vm12, %v998_v41, %v1144_v55 }
 0x2cf   :  { %v1003_v59 = vadd.f32 %v3108_v8, %v1002_v51  ;;  %v1175_v60 = vsel %vm1111_vm11, %v993_v53, %v1143_v57 }
 0x2d0   :  { %v1146_v62 = vmul.f32 0.1, %v1008_v38  ;;  %2381 = vmatprep.mubr.f32.mxu1 %v1175_v60  ;;  %vm1114_vm14 = vcmp.gt.f32.partialorder %v1008_v38, 0.0 }
 0x2d1   :  { %v1145_v48 = vmul.f32 0.1, %v1003_v59  ;;  %v2309_v61 = vpop.f32.mrb[30].mxu0  ;;  %2382 = vmatmul.mubr.f32.gmra.mrb[58].mxu1 %v1176_v63  ;;  %vm1113_vm13 = vcmp.gt.f32.partialorder %v1003_v59, 0.0 }
 0x2d2   :  { %v1018_v0 = vadd.f32 %v2309_v61, %v3108_v8  ;;  %v1012_v1 = vpop.f32.mrb[31].mxu0  ;;  %v1178_v5 = vsel %vm1114_vm14, %v1008_v38, %v1146_v62 }
 0x2d3   :  { %v1013_v2 = vadd.f32 %v3108_v8, %v1012_v1  ;;  %v1177_v3 = vsel %vm1113_vm13, %v1003_v59, %v1145_v48 }
 0x2d4   :  { %v1148_v58 = vmul.f32 0.1, %v1018_v0  ;;  %2384 = vmatprep.mubr.f32.mxu1 %v1177_v3  ;;  %vm1116_vm0 = vcmp.gt.f32.partialorder %v1018_v0, 0.0 }
 0x2d5   :  { %v1147_v6 = vmul.f32 0.1, %v1013_v2  ;;  %v2312_v7 = vpop.f32.mrb[32].mxu0  ;;  %2385 = vmatmul.mubr.f32.gmra.mrb[60].mxu1 %v1178_v5  ;;  %vm1115_vm15 = vcmp.gt.f32.partialorder %v1013_v2, 0.0 }
 0x2d6   :  { %v1028_v9 = vadd.f32 %v2312_v7, %v3108_v8  ;;  %v1022_v4 = vpop.f32.mrb[33].mxu0  ;;  %v1180_v13 = vsel %vm1116_vm0, %v1018_v0, %v1148_v58 }
 0x2d7   :  { %v1023_v10 = vadd.f32 %v3108_v8, %v1022_v4  ;;  %v1179_v11 = vsel %vm1115_vm15, %v1013_v2, %v1147_v6 }
 0x2d8   :  { %v1150_v12 = vmul.f32 0.1, %v1028_v9  ;;  %2387 = vmatprep.mubr.f32.mxu1 %v1179_v11  ;;  %vm1118_vm2 = vcmp.gt.f32.partialorder %v1028_v9, 0.0 }
 0x2d9   :  { %v1149_v15 = vmul.f32 0.1, %v1023_v10  ;;  %v2315_v17 = vpop.f32.mrb[34].mxu0  ;;  %2388 = vmatmul.mubr.f32.gmra.mrb[62].mxu1 %v1180_v13  ;;  %vm1117_vm1 = vcmp.gt.f32.partialorder %v1023_v10, 0.0 }
 0x2da   :  { %v1038_v18 = vadd.f32 %v2315_v17, %v3108_v8  ;;  %v1032_v14 = vpop.f32.mrb[35].mxu0  ;;  %v1182_v23 = vsel %vm1118_vm2, %v1028_v9, %v1150_v12 }
 0x2db   :  { %v1033_v19 = vadd.f32 %v3108_v8, %v1032_v14  ;;  %v1181_v16 = vsel %vm1117_vm1, %v1023_v10, %v1149_v15  ;;  %v3145_v10 = vld [vmem:[%s3414_s6 + $0x3] ss:$0 sm:$0xff] }
 0x2dc   :  { %v1152_v21 = vmul.f32 0.1, %v1038_v18  ;;  %2390 = vmatprep.mubr.f32.mxu1 %v1181_v16  ;;  %vm1120_vm4 = vcmp.gt.f32.partialorder %v1038_v18, 0.0 }
 0x2dd   :  { %v1151_v24 = vmul.f32 0.1, %v1033_v19  ;;  %v2318_v25 = vpop.f32.mrb[36].mxu0  ;;  %2391 = vmatmul.mubr.f32.gmra.mrb[64].mxu1 %v1182_v23  ;;  %vm1119_vm3 = vcmp.gt.f32.partialorder %v1033_v19, 0.0 }
 0x2de   :  { %v1048_v26 = vadd.f32 %v2318_v25, %v3108_v8  ;;  %v1042_v27 = vpop.f32.mrb[37].mxu0  ;;  %v1184_v33 = vsel %vm1120_vm4, %v1038_v18, %v1152_v21 }
 0x2df   :  { %v1043_v29 = vadd.f32 %v3108_v8, %v1042_v27  ;;  %v1183_v30 = vsel %vm1119_vm3, %v1033_v19, %v1151_v24 }
 0x2e0   :  { %v1154_v32 = vmul.f32 0.1, %v1048_v26  ;;  %2393 = vmatprep.mubr.f32.mxu1 %v1183_v30  ;;  %vm1122_vm6 = vcmp.gt.f32.partialorder %v1048_v26, 0.0 }
 0x2e1   :  { %v1153_v22 = vmul.f32 0.1, %v1043_v29  ;;  %v2321_v34 = vpop.f32.mrb[38].mxu0  ;;  %2394 = vmatmul.mubr.f32.gmra.mrb[66].mxu1 %v1184_v33  ;;  %vm1121_vm5 = vcmp.gt.f32.partialorder %v1043_v29, 0.0 }
 0x2e2   :  { %v1058_v35 = vadd.f32 %v2321_v34, %v3108_v8  ;;  %v1052_v36 = vpop.f32.mrb[39].mxu0  ;;  %v1186_v42 = vsel %vm1122_vm6, %v1048_v26, %v1154_v32 }
 0x2e3   :  { %v1053_v37 = vadd.f32 %v3108_v8, %v1052_v36  ;;  %v1185_v39 = vsel %vm1121_vm5, %v1043_v29, %v1153_v22 }
 0x2e4   :  { %v1156_v40 = vmul.f32 0.1, %v1058_v35  ;;  %2396 = vmatprep.mubr.f32.mxu1 %v1185_v39  ;;  %vm1124_vm8 = vcmp.gt.f32.partialorder %v1058_v35, 0.0 }
 0x2e5   :  { %v1155_v43 = vmul.f32 0.1, %v1053_v37  ;;  %v2324_v44 = vpop.f32.mrb[40].mxu0  ;;  %2397 = vmatmul.mubr.f32.gmra.mrb[68].mxu1 %v1186_v42  ;;  %vm1123_vm7 = vcmp.gt.f32.partialorder %v1053_v37, 0.0 }
 0x2e6   :  { %v1068_v31 = vadd.f32 %v2324_v44, %v3108_v8  ;;  %v1062_v45 = vpop.f32.mrb[41].mxu0  ;;  %v1188_v50 = vsel %vm1124_vm8, %v1058_v35, %v1156_v40 }
 0x2e7   :  { %v1063_v46 = vadd.f32 %v3108_v8, %v1062_v45  ;;  %v1187_v20 = vsel %vm1123_vm7, %v1053_v37, %v1155_v43 }
 0x2e8   :  { %v1158_v47 = vmul.f32 0.1, %v1068_v31  ;;  %2399 = vmatprep.mubr.f32.mxu1 %v1187_v20  ;;  %vm1126_vm10 = vcmp.gt.f32.partialorder %v1068_v31, 0.0 }
 0x2e9   :  { %v1157_v52 = vmul.f32 0.1, %v1063_v46  ;;  %v2327_v41 = vpop.f32.mrb[42].mxu0  ;;  %2400 = vmatmul.mubr.f32.gmra.mrb[70].mxu1 %v1188_v50  ;;  %vm1125_vm9 = vcmp.gt.f32.partialorder %v1063_v46, 0.0 }
 0x2ea   :  { %v1078_v28 = vadd.f32 %v2327_v41, %v3108_v8  ;;  %v1072_v53 = vpop.f32.mrb[43].mxu0  ;;  %v1190_v57 = vsel %vm1126_vm10, %v1068_v31, %v1158_v47 }
 0x2eb   :  { %v1073_v54 = vadd.f32 %v3108_v8, %v1072_v53  ;;  %v1189_v55 = vsel %vm1125_vm9, %v1063_v46, %v1157_v52 }
 0x2ec   :  { %v1160_v56 = vmul.f32 0.1, %v1078_v28  ;;  %2402 = vmatprep.mubr.f32.mxu1 %v1189_v55  ;;  %vm1128_vm12 = vcmp.gt.f32.partialorder %v1078_v28, 0.0 }
 0x2ed   :  { %v1159_v49 = vmul.f32 0.1, %v1073_v54  ;;  %v2330_v38 = vpop.f32.mrb[44].mxu0  ;;  %2403 = vmatmul.mubr.f32.gmra.mrb[72].mxu1 %v1190_v57  ;;  %vm1127_vm11 = vcmp.gt.f32.partialorder %v1073_v54, 0.0 }
 0x2ee   :  { %v1088_v51 = vadd.f32 %v2330_v38, %v3108_v8  ;;  %v1082_v59 = vpop.f32.mrb[45].mxu0  ;;  %v1192_v48 = vsel %vm1128_vm12, %v1078_v28, %v1160_v56 }
 0x2ef   :  { %v1083_v60 = vadd.f32 %v3108_v8, %v1082_v59  ;;  %v1191_v62 = vsel %vm1127_vm11, %v1073_v54, %v1159_v49 }
 0x2f0   :  { %v1162_v63 = vmul.f32 0.1, %v1088_v51  ;;  %2405 = vmatprep.mubr.f32.mxu1 %v1191_v62  ;;  %vm1130_vm14 = vcmp.gt.f32.partialorder %v1088_v51, 0.0 }
 0x2f1   :  { %v1161_v61 = vmul.f32 0.1, %v1083_v60  ;;  %v2333_v0 = vpop.f32.mrb[46].mxu0  ;;  %2406 = vmatmul.mubr.f32.gmra.mrb[74].mxu1 %v1192_v48  ;;  %vm1129_vm13 = vcmp.gt.f32.partialorder %v1083_v60, 0.0 }
 0x2f2   :  { %v1098_v1 = vadd.f32 %v2333_v0, %v3108_v8  ;;  %v1092_v2 = vpop.f32.mrb[47].mxu0  ;;  %v1194_v6 = vsel %vm1130_vm14, %v1088_v51, %v1162_v63 }
 0x2f3   :  { %v1093_v3 = vadd.f32 %v3108_v8, %v1092_v2  ;;  %v1193_v58 = vsel %vm1129_vm13, %v1083_v60, %v1161_v61 }
 0x2f4   :  { %v1164_v5 = vmul.f32 0.1, %v1098_v1  ;;  %2408 = vmatprep.mubr.f32.mxu1 %v1193_v58  ;;  %vm1132_vm0 = vcmp.gt.f32.partialorder %v1098_v1, 0.0 }
 0x2f5   :  { %v1163_v7 = vmul.f32 0.1, %v1093_v3  ;;  %2409 = vmatmul.mubr.f32.gmra.mrb[76].mxu1 %v1194_v6  ;;  %vm1131_vm15 = vcmp.gt.f32.partialorder %v1093_v3, 0.0 }
 0x2f6   :  { %v1196_v4 = vsel %vm1132_vm0, %v1098_v1, %v1164_v5 }
 0x2f7   :  { %v1195_v9 = vsel %vm1131_vm15, %v1093_v3, %v1163_v7 }
 0x2f8   :  { %2411 = vmatprep.mubr.f32.mxu1 %v1195_v9 }
 0x2f9   :  { %2412 = vmatmul.mubr.f32.gmra.mrb[78].mxu1 %v1196_v4 }
 0x390   :  { %v2368_v11 = vpop.f32.mrb[48].mxu1 }
 0x391   :  { %v1290_v8 = vadd.f32 %v2368_v11, %v3145_v10  ;;  %v1284_v12 = vpop.f32.mrb[49].mxu1 }
 0x392   :  { %v1285_v13 = vadd.f32 %v3145_v10, %v1284_v12 }
 0x393   :  { %vm1444_vm1 = vcmp.gt.f32.partialorder %v1290_v8, 0.0  ;;  %v1476_v15 = vmul.f32 0.1, %v1290_v8 }
 0x394   :  { %v1475_v17 = vmul.f32 0.1, %v1285_v13  ;;  %v2371_v18 = vpop.f32.mrb[50].mxu1  ;;  %vm1443_vm2 = vcmp.gt.f32.partialorder %v1285_v13, 0.0 }
 0x395   :  { %v1508_v14 = vsel %vm1444_vm1, %v1290_v8, %v1476_v15  ;;  %v1300_v19 = vadd.f32 %v2371_v18, %v3145_v10  ;;  %v1294_v16 = vpop.f32.mrb[51].mxu1 }
 0x396   :  { %1540 = vst [vmem:[%s3416_s8 + $0x8] sm:$0xff] %v1508_v14  ;;  %v1295_v21 = vadd.f32 %v3145_v10, %v1294_v16  ;;  %v1507_v23 = vsel %vm1443_vm2, %v1285_v13, %v1475_v17 }
 0x397   :  { %v1478_v24 = vmul.f32 0.1, %v1300_v19  ;;  %1539 = vst [vmem:[%s3416_s8] sm:$0xff] %v1507_v23  ;;  %2446 = vmatprep.mubr.f32.mxu0 %v1507_v23  ;;  %vm1446_vm3 = vcmp.gt.f32.partialorder %v1300_v19, 0.0 }
 0x398   :  { %v1477_v25 = vmul.f32 0.1, %v1295_v21  ;;  %v2374_v26 = vpop.f32.mrb[52].mxu1  ;;  %2447 = vmatmul.mubr.f32.vlgmr.msra.gmra.mrb[48].mxu0 %v1508_v14  ;;  %vm1445_vm4 = vcmp.gt.f32.partialorder %v1295_v21, 0.0 }
 0x399   :  { %v1310_v27 = vadd.f32 %v2374_v26, %v3145_v10  ;;  %v1304_v29 = vpop.f32.mrb[53].mxu1  ;;  %v1510_v30 = vsel %vm1446_vm3, %v1300_v19, %v1478_v24 }
 0x39a   :  { %v1305_v32 = vadd.f32 %v3145_v10, %v1304_v29  ;;  %v1509_v33 = vsel %vm1445_vm4, %v1295_v21, %v1477_v25  ;;  %1542 = vst [vmem:[%s3416_s8 + $0x18] sm:$0xff] %v1510_v30 }
 0x39b   :  { %v1480_v22 = vmul.f32 0.1, %v1310_v27  ;;  %1541 = vst [vmem:[%s3416_s8 + $0x10] sm:$0xff] %v1509_v33  ;;  %2449 = vmatprep.mubr.f32.mxu0 %v1509_v33  ;;  %vm1448_vm5 = vcmp.gt.f32.partialorder %v1310_v27, 0.0 }
 0x39c   :  { %v1479_v34 = vmul.f32 0.1, %v1305_v32  ;;  %v2377_v35 = vpop.f32.mrb[54].mxu1  ;;  %2450 = vmatmul.mubr.f32.gmra.mrb[50].mxu0 %v1510_v30  ;;  %vm1447_vm6 = vcmp.gt.f32.partialorder %v1305_v32, 0.0 }
 0x39d   :  { %v1320_v36 = vadd.f32 %v2377_v35, %v3145_v10  ;;  %v1314_v37 = vpop.f32.mrb[55].mxu1  ;;  %v1512_v39 = vsel %vm1448_vm5, %v1310_v27, %v1480_v22 }
 0x39e   :  { %v1315_v40 = vadd.f32 %v3145_v10, %v1314_v37  ;;  %v1511_v42 = vsel %vm1447_vm6, %v1305_v32, %v1479_v34  ;;  %1544 = vst [vmem:[%s3416_s8 + $0x28] sm:$0xff] %v1512_v39 }
 0x39f   :  { %v1482_v43 = vmul.f32 0.1, %v1320_v36  ;;  %1543 = vst [vmem:[%s3416_s8 + $0x20] sm:$0xff] %v1511_v42  ;;  %2452 = vmatprep.mubr.f32.mxu0 %v1511_v42  ;;  %vm1450_vm7 = vcmp.gt.f32.partialorder %v1320_v36, 0.0 }
 0x3a0   :  { %v1481_v44 = vmul.f32 0.1, %v1315_v40  ;;  %v2380_v31 = vpop.f32.mrb[56].mxu1  ;;  %2453 = vmatmul.mubr.f32.gmra.mrb[52].mxu0 %v1512_v39  ;;  %vm1449_vm8 = vcmp.gt.f32.partialorder %v1315_v40, 0.0 }
 0x3a1   :  { %v1330_v45 = vadd.f32 %v2380_v31, %v3145_v10  ;;  %v1324_v46 = vpop.f32.mrb[57].mxu1  ;;  %v1514_v20 = vsel %vm1450_vm7, %v1320_v36, %v1482_v43 }
 0x3a2   :  { %v1325_v47 = vadd.f32 %v3145_v10, %v1324_v46  ;;  %v1513_v50 = vsel %vm1449_vm8, %v1315_v40, %v1481_v44  ;;  %1546 = vst [vmem:[%s3416_s8 + $0x38] sm:$0xff] %v1514_v20 }
 0x3a3   :  { %v1484_v52 = vmul.f32 0.1, %v1330_v45  ;;  %1545 = vst [vmem:[%s3416_s8 + $0x30] sm:$0xff] %v1513_v50  ;;  %2455 = vmatprep.mubr.f32.mxu0 %v1513_v50  ;;  %vm1452_vm9 = vcmp.gt.f32.partialorder %v1330_v45, 0.0 }
 0x3a4   :  { %v1483_v41 = vmul.f32 0.1, %v1325_v47  ;;  %v2383_v28 = vpop.f32.mrb[58].mxu1  ;;  %2456 = vmatmul.mubr.f32.gmra.mrb[54].mxu0 %v1514_v20  ;;  %vm1451_vm10 = vcmp.gt.f32.partialorder %v1325_v47, 0.0 }
 0x3a5   :  { %v1340_v53 = vadd.f32 %v2383_v28, %v3145_v10  ;;  %v1334_v54 = vpop.f32.mrb[59].mxu1  ;;  %v1516_v55 = vsel %vm1452_vm9, %v1330_v45, %v1484_v52 }
 0x3a6   :  { %v1335_v56 = vadd.f32 %v3145_v10, %v1334_v54  ;;  %v1515_v57 = vsel %vm1451_vm10, %v1325_v47, %v1483_v41  ;;  %1548 = vst [vmem:[%s3416_s8 + $0x48] sm:$0xff] %v1516_v55 }
 0x3a7   :  { %v1486_v49 = vmul.f32 0.1, %v1340_v53  ;;  %1547 = vst [vmem:[%s3416_s8 + $0x40] sm:$0xff] %v1515_v57  ;;  %2458 = vmatprep.mubr.f32.mxu0 %v1515_v57  ;;  %vm1454_vm11 = vcmp.gt.f32.partialorder %v1340_v53, 0.0 }
 0x3a8   :  { %v1485_v38 = vmul.f32 0.1, %v1335_v56  ;;  %v2386_v51 = vpop.f32.mrb[60].mxu1  ;;  %2459 = vmatmul.mubr.f32.gmra.mrb[56].mxu0 %v1516_v55  ;;  %vm1453_vm12 = vcmp.gt.f32.partialorder %v1335_v56, 0.0 }
 0x3a9   :  { %v1350_v59 = vadd.f32 %v2386_v51, %v3145_v10  ;;  %v1344_v60 = vpop.f32.mrb[61].mxu1  ;;  %v1518_v62 = vsel %vm1454_vm11, %v1340_v53, %v1486_v49 }
 0x3aa   :  { %v1345_v63 = vadd.f32 %v3145_v10, %v1344_v60  ;;  %v1517_v48 = vsel %vm1453_vm12, %v1335_v56, %v1485_v38  ;;  %1550 = vst [vmem:[%s3416_s8 + $0x58] sm:$0xff] %v1518_v62 }
 0x3ab   :  { %v1488_v61 = vmul.f32 0.1, %v1350_v59  ;;  %1549 = vst [vmem:[%s3416_s8 + $0x50] sm:$0xff] %v1517_v48  ;;  %2461 = vmatprep.mubr.f32.mxu0 %v1517_v48  ;;  %vm1456_vm13 = vcmp.gt.f32.partialorder %v1350_v59, 0.0 }
 0x3ac   :  { %v1487_v0 = vmul.f32 0.1, %v1345_v63  ;;  %v2389_v1 = vpop.f32.mrb[62].mxu1  ;;  %2462 = vmatmul.mubr.f32.gmra.mrb[58].mxu0 %v1518_v62  ;;  %vm1455_vm14 = vcmp.gt.f32.partialorder %v1345_v63, 0.0 }
 0x3ad   :  { %v1360_v2 = vadd.f32 %v2389_v1, %v3145_v10  ;;  %v1354_v3 = vpop.f32.mrb[63].mxu1  ;;  %v1520_v58 = vsel %vm1456_vm13, %v1350_v59, %v1488_v61 }
 0x3ae   :  { %v1355_v5 = vadd.f32 %v3145_v10, %v1354_v3  ;;  %v1519_v6 = vsel %vm1455_vm14, %v1345_v63, %v1487_v0  ;;  %1552 = vst [vmem:[%s3416_s8 + $0x68] sm:$0xff] %v1520_v58 }
 0x3af   :  { %v1490_v7 = vmul.f32 0.1, %v1360_v2  ;;  %1551 = vst [vmem:[%s3416_s8 + $0x60] sm:$0xff] %v1519_v6  ;;  %2464 = vmatprep.mubr.f32.mxu0 %v1519_v6  ;;  %vm1458_vm15 = vcmp.gt.f32.partialorder %v1360_v2, 0.0 }
 0x3b0   :  { %v1489_v9 = vmul.f32 0.1, %v1355_v5  ;;  %v2392_v4 = vpop.f32.mrb[64].mxu1  ;;  %2465 = vmatmul.mubr.f32.gmra.mrb[60].mxu0 %v1520_v58  ;;  %vm1457_vm0 = vcmp.gt.f32.partialorder %v1355_v5, 0.0 }
 0x3b1   :  { %v1370_v11 = vadd.f32 %v2392_v4, %v3145_v10  ;;  %v1364_v8 = vpop.f32.mrb[65].mxu1  ;;  %v1522_v12 = vsel %vm1458_vm15, %v1360_v2, %v1490_v7 }
 0x3b2   :  { %v1365_v13 = vadd.f32 %v3145_v10, %v1364_v8  ;;  %v1521_v15 = vsel %vm1457_vm0, %v1355_v5, %v1489_v9  ;;  %1554 = vst [vmem:[%s3416_s8 + $0x78] sm:$0xff] %v1522_v12 }
 0x3b3   :  { %v1492_v17 = vmul.f32 0.1, %v1370_v11  ;;  %1553 = vst [vmem:[%s3416_s8 + $0x70] sm:$0xff] %v1521_v15  ;;  %2467 = vmatprep.mubr.f32.mxu0 %v1521_v15  ;;  %vm1460_vm1 = vcmp.gt.f32.partialorder %v1370_v11, 0.0 }
 0x3b4   :  { %v1491_v18 = vmul.f32 0.1, %v1365_v13  ;;  %v2395_v14 = vpop.f32.mrb[66].mxu1  ;;  %2468 = vmatmul.mubr.f32.gmra.mrb[62].mxu0 %v1522_v12  ;;  %vm1459_vm2 = vcmp.gt.f32.partialorder %v1365_v13, 0.0 }
 0x3b5   :  { %v1380_v19 = vadd.f32 %v2395_v14, %v3145_v10  ;;  %v1374_v16 = vpop.f32.mrb[67].mxu1  ;;  %v1524_v21 = vsel %vm1460_vm1, %v1370_v11, %v1492_v17 }
 0x3b6   :  { %v1375_v23 = vadd.f32 %v3145_v10, %v1374_v16  ;;  %v1523_v24 = vsel %vm1459_vm2, %v1365_v13, %v1491_v18  ;;  %1556 = vst [vmem:[%s3416_s8 + $0x88] sm:$0xff] %v1524_v21 }
 0x3b7   :  { %v1494_v25 = vmul.f32 0.1, %v1380_v19  ;;  %1555 = vst [vmem:[%s3416_s8 + $0x80] sm:$0xff] %v1523_v24  ;;  %2470 = vmatprep.mubr.f32.mxu0 %v1523_v24  ;;  %vm1462_vm3 = vcmp.gt.f32.partialorder %v1380_v19, 0.0 }
 0x3b8   :  { %v1493_v26 = vmul.f32 0.1, %v1375_v23  ;;  %v2398_v27 = vpop.f32.mrb[68].mxu1  ;;  %2471 = vmatmul.mubr.f32.gmra.mrb[64].mxu0 %v1524_v21  ;;  %vm1461_vm4 = vcmp.gt.f32.partialorder %v1375_v23, 0.0 }
 0x3b9   :  { %v1390_v29 = vadd.f32 %v2398_v27, %v3145_v10  ;;  %v1384_v30 = vpop.f32.mrb[69].mxu1  ;;  %v1526_v32 = vsel %vm1462_vm3, %v1380_v19, %v1494_v25 }
 0x3ba   :  { %v1385_v33 = vadd.f32 %v3145_v10, %v1384_v30  ;;  %v1525_v22 = vsel %vm1461_vm4, %v1375_v23, %v1493_v26  ;;  %1558 = vst [vmem:[%s3416_s8 + $0x98] sm:$0xff] %v1526_v32 }
 0x3bb   :  { %v1496_v34 = vmul.f32 0.1, %v1390_v29  ;;  %1557 = vst [vmem:[%s3416_s8 + $0x90] sm:$0xff] %v1525_v22  ;;  %2473 = vmatprep.mubr.f32.mxu0 %v1525_v22  ;;  %vm1464_vm5 = vcmp.gt.f32.partialorder %v1390_v29, 0.0 }
 0x3bc   :  { %v1495_v35 = vmul.f32 0.1, %v1385_v33  ;;  %v2401_v36 = vpop.f32.mrb[70].mxu1  ;;  %2474 = vmatmul.mubr.f32.gmra.mrb[66].mxu0 %v1526_v32  ;;  %vm1463_vm6 = vcmp.gt.f32.partialorder %v1385_v33, 0.0 }
 0x3bd   :  { %v1400_v37 = vadd.f32 %v2401_v36, %v3145_v10  ;;  %v1394_v39 = vpop.f32.mrb[71].mxu1  ;;  %v1528_v40 = vsel %vm1464_vm5, %v1390_v29, %v1496_v34 }
 0x3be   :  { %v1395_v42 = vadd.f32 %v3145_v10, %v1394_v39  ;;  %v1527_v43 = vsel %vm1463_vm6, %v1385_v33, %v1495_v35  ;;  %1560 = vst [vmem:[%s3416_s8 + $0xa8] sm:$0xff] %v1528_v40 }
 0x3bf   :  { %v1498_v44 = vmul.f32 0.1, %v1400_v37  ;;  %1559 = vst [vmem:[%s3416_s8 + $0xa0] sm:$0xff] %v1527_v43  ;;  %2476 = vmatprep.mubr.f32.mxu0 %v1527_v43  ;;  %vm1466_vm7 = vcmp.gt.f32.partialorder %v1400_v37, 0.0 }
 0x3c0   :  { %v1497_v31 = vmul.f32 0.1, %v1395_v42  ;;  %v2404_v45 = vpop.f32.mrb[72].mxu1  ;;  %2477 = vmatmul.mubr.f32.gmra.mrb[68].mxu0 %v1528_v40  ;;  %vm1465_vm8 = vcmp.gt.f32.partialorder %v1395_v42, 0.0 }
 0x3c1   :  { %v1410_v46 = vadd.f32 %v2404_v45, %v3145_v10  ;;  %v1404_v20 = vpop.f32.mrb[73].mxu1  ;;  %v1530_v47 = vsel %vm1466_vm7, %v1400_v37, %v1498_v44 }
 0x3c2   :  { %v1405_v50 = vadd.f32 %v3145_v10, %v1404_v20  ;;  %v1529_v52 = vsel %vm1465_vm8, %v1395_v42, %v1497_v31  ;;  %1562 = vst [vmem:[%s3416_s8 + $0xb8] sm:$0xff] %v1530_v47 }
 0x3c3   :  { %v1500_v41 = vmul.f32 0.1, %v1410_v46  ;;  %1561 = vst [vmem:[%s3416_s8 + $0xb0] sm:$0xff] %v1529_v52  ;;  %2479 = vmatprep.mubr.f32.mxu0 %v1529_v52  ;;  %vm1468_vm9 = vcmp.gt.f32.partialorder %v1410_v46, 0.0 }
 0x3c4   :  { %v1499_v28 = vmul.f32 0.1, %v1405_v50  ;;  %v2407_v53 = vpop.f32.mrb[74].mxu1  ;;  %2480 = vmatmul.mubr.f32.gmra.mrb[70].mxu0 %v1530_v47  ;;  %vm1467_vm10 = vcmp.gt.f32.partialorder %v1405_v50, 0.0 }
 0x3c5   :  { %v1420_v54 = vadd.f32 %v2407_v53, %v3145_v10  ;;  %v1414_v55 = vpop.f32.mrb[75].mxu1  ;;  %v1532_v56 = vsel %vm1468_vm9, %v1410_v46, %v1500_v41 }
 0x3c6   :  { %v1415_v57 = vadd.f32 %v3145_v10, %v1414_v55  ;;  %v1531_v49 = vsel %vm1467_vm10, %v1405_v50, %v1499_v28  ;;  %1564 = vst [vmem:[%s3416_s8 + $0xc8] sm:$0xff] %v1532_v56 }
 0x3c7   :  { %v1502_v38 = vmul.f32 0.1, %v1420_v54  ;;  %1563 = vst [vmem:[%s3416_s8 + $0xc0] sm:$0xff] %v1531_v49  ;;  %2482 = vmatprep.mubr.f32.mxu0 %v1531_v49  ;;  %vm1470_vm11 = vcmp.gt.f32.partialorder %v1420_v54, 0.0 }
 0x3c8   :  { %v1501_v51 = vmul.f32 0.1, %v1415_v57  ;;  %v2410_v59 = vpop.f32.mrb[76].mxu1  ;;  %2483 = vmatmul.mubr.f32.gmra.mrb[72].mxu0 %v1532_v56  ;;  %vm1469_vm12 = vcmp.gt.f32.partialorder %v1415_v57, 0.0 }
 0x3c9   :  { %v1430_v60 = vadd.f32 %v2410_v59, %v3145_v10  ;;  %v1424_v62 = vpop.f32.mrb[77].mxu1  ;;  %v1534_v63 = vsel %vm1470_vm11, %v1420_v54, %v1502_v38 }
 0x3ca   :  { %v1425_v48 = vadd.f32 %v3145_v10, %v1424_v62  ;;  %v1533_v61 = vsel %vm1469_vm12, %v1415_v57, %v1501_v51  ;;  %1566 = vst [vmem:[%s3416_s8 + $0xd8] sm:$0xff] %v1534_v63 }
 0x3cb   :  { %v1504_v0 = vmul.f32 0.1, %v1430_v60  ;;  %1565 = vst [vmem:[%s3416_s8 + $0xd0] sm:$0xff] %v1533_v61  ;;  %2485 = vmatprep.mubr.f32.mxu0 %v1533_v61  ;;  %vm1472_vm13 = vcmp.gt.f32.partialorder %v1430_v60, 0.0 }
 0x3cc   :  { %v1503_v1 = vmul.f32 0.1, %v1425_v48  ;;  %v2413_v2 = vpop.f32.mrb[78].mxu1  ;;  %2486 = vmatmul.mubr.f32.gmra.mrb[74].mxu0 %v1534_v63  ;;  %vm1471_vm14 = vcmp.gt.f32.partialorder %v1425_v48, 0.0 }
 0x3cd   :  { %v1440_v3 = vadd.f32 %v2413_v2, %v3145_v10  ;;  %v1434_v58 = vpop.f32.mrb[79].mxu1  ;;  %v1536_v5 = vsel %vm1472_vm13, %v1430_v60, %v1504_v0 }
 0x3ce   :  { %v1435_v6 = vadd.f32 %v3145_v10, %v1434_v58  ;;  %v1535_v7 = vsel %vm1471_vm14, %v1425_v48, %v1503_v1  ;;  %1568 = vst [vmem:[%s3416_s8 + $0xe8] sm:$0xff] %v1536_v5  ;;  %v3278_v10 = vld [vmem:[%s3414_s6 + $0x4] ss:$0 sm:$0xff] }
 0x3cf   :  { %v1506_v9 = vmul.f32 0.1, %v1440_v3  ;;  %1567 = vst [vmem:[%s3416_s8 + $0xe0] sm:$0xff] %v1535_v7  ;;  %2488 = vmatprep.mubr.f32.mxu0 %v1535_v7  ;;  %vm1474_vm15 = vcmp.gt.f32.partialorder %v1440_v3, 0.0 }
 0x3d0   :  { %v1505_v4 = vmul.f32 0.1, %v1435_v6  ;;  %2489 = vmatmul.mubr.f32.gmra.mrb[76].mxu0 %v1536_v5  ;;  %vm1473_vm0 = vcmp.gt.f32.partialorder %v1435_v6, 0.0 }
 0x3d1   :  { %v1538_v11 = vsel %vm1474_vm15, %v1440_v3, %v1506_v9 }
 0x3d2   :  { %v1537_v8 = vsel %vm1473_vm0, %v1435_v6, %v1505_v4  ;;  %1570 = vst [vmem:[%s3416_s8 + $0xf8] sm:$0xff] %v1538_v11 }
 0x3d3   :  { %1569 = vst [vmem:[%s3416_s8 + $0xf0] sm:$0xff] %v1537_v8  ;;  %2491 = vmatprep.mubr.f32.mxu0 %v1537_v8 }
 0x3d4   :  { %2492 = vmatmul.mubr.f32.gmra.mrb[78].mxu0 %v1538_v11 }
 0x46b   :  { %v2448_v12 = vpop.f32.mrb[48].mxu0 }
 0x46c   :  { %v1664_v13 = vadd.f32 %v2448_v12, %v3278_v10  ;;  %v1658_v15 = vpop.f32.mrb[49].mxu0 }
 0x46d   :  { %v1659_v17 = vadd.f32 %v3278_v10, %v1658_v15 }
 0x46e   :  { %1818 = vst [vmem:[%s3415_s7 + $0x8] sm:$0xff] %v1664_v13 }
 0x46f   :  { %1817 = vst [vmem:[%s3415_s7] sm:$0xff] %v1659_v17  ;;  %v2451_v18 = vpop.f32.mrb[50].mxu0 }
 0x470   :  { %v1674_v14 = vadd.f32 %v2451_v18, %v3278_v10  ;;  %v1668_v19 = vpop.f32.mrb[51].mxu0 }
 0x471   :  { %v1669_v16 = vadd.f32 %v3278_v10, %v1668_v19 }
 0x472   :  { %1820 = vst [vmem:[%s3415_s7 + $0x18] sm:$0xff] %v1674_v14 }
 0x473   :  { %1819 = vst [vmem:[%s3415_s7 + $0x10] sm:$0xff] %v1669_v16  ;;  %v2454_v21 = vpop.f32.mrb[52].mxu0 }
 0x474   :  { %v1684_v23 = vadd.f32 %v2454_v21, %v3278_v10  ;;  %v1678_v24 = vpop.f32.mrb[53].mxu0 }
 0x475   :  { %v1679_v25 = vadd.f32 %v3278_v10, %v1678_v24 }
 0x476   :  { %1822 = vst [vmem:[%s3415_s7 + $0x28] sm:$0xff] %v1684_v23 }
 0x477   :  { %1821 = vst [vmem:[%s3415_s7 + $0x20] sm:$0xff] %v1679_v25  ;;  %v2457_v26 = vpop.f32.mrb[54].mxu0 }
 0x478   :  { %v1694_v27 = vadd.f32 %v2457_v26, %v3278_v10  ;;  %v1688_v29 = vpop.f32.mrb[55].mxu0 }
 0x479   :  { %v1689_v30 = vadd.f32 %v3278_v10, %v1688_v29 }
 0x47a   :  { %1824 = vst [vmem:[%s3415_s7 + $0x38] sm:$0xff] %v1694_v27 }
 0x47b   :  { %1823 = vst [vmem:[%s3415_s7 + $0x30] sm:$0xff] %v1689_v30  ;;  %v2460_v32 = vpop.f32.mrb[56].mxu0 }
 0x47c   :  { %v1704_v33 = vadd.f32 %v2460_v32, %v3278_v10  ;;  %v1698_v22 = vpop.f32.mrb[57].mxu0 }
 0x47d   :  { %v1699_v34 = vadd.f32 %v3278_v10, %v1698_v22 }
 0x47e   :  { %1826 = vst [vmem:[%s3415_s7 + $0x48] sm:$0xff] %v1704_v33 }
 0x47f   :  { %1825 = vst [vmem:[%s3415_s7 + $0x40] sm:$0xff] %v1699_v34  ;;  %v2463_v35 = vpop.f32.mrb[58].mxu0 }
 0x480   :  { %v1714_v36 = vadd.f32 %v2463_v35, %v3278_v10  ;;  %v1708_v37 = vpop.f32.mrb[59].mxu0 }
 0x481   :  { %v1709_v39 = vadd.f32 %v3278_v10, %v1708_v37 }
 0x482   :  { %1828 = vst [vmem:[%s3415_s7 + $0x58] sm:$0xff] %v1714_v36 }
 0x483   :  { %1827 = vst [vmem:[%s3415_s7 + $0x50] sm:$0xff] %v1709_v39  ;;  %v2466_v40 = vpop.f32.mrb[60].mxu0 }
 0x484   :  { %v1724_v42 = vadd.f32 %v2466_v40, %v3278_v10  ;;  %v1718_v43 = vpop.f32.mrb[61].mxu0 }
 0x485   :  { %v1719_v44 = vadd.f32 %v3278_v10, %v1718_v43 }
 0x486   :  { %1830 = vst [vmem:[%s3415_s7 + $0x68] sm:$0xff] %v1724_v42 }
 0x487   :  { %1829 = vst [vmem:[%s3415_s7 + $0x60] sm:$0xff] %v1719_v44  ;;  %v2469_v31 = vpop.f32.mrb[62].mxu0 }
 0x488   :  { %v1734_v45 = vadd.f32 %v2469_v31, %v3278_v10  ;;  %v1728_v46 = vpop.f32.mrb[63].mxu0 }
 0x489   :  { %v1729_v20 = vadd.f32 %v3278_v10, %v1728_v46 }
 0x48a   :  { %1832 = vst [vmem:[%s3415_s7 + $0x78] sm:$0xff] %v1734_v45 }
 0x48b   :  { %1831 = vst [vmem:[%s3415_s7 + $0x70] sm:$0xff] %v1729_v20  ;;  %v2472_v47 = vpop.f32.mrb[64].mxu0 }
 0x48c   :  { %v1744_v50 = vadd.f32 %v2472_v47, %v3278_v10  ;;  %v1738_v52 = vpop.f32.mrb[65].mxu0 }
 0x48d   :  { %v1739_v41 = vadd.f32 %v3278_v10, %v1738_v52 }
 0x48e   :  { %1834 = vst [vmem:[%s3415_s7 + $0x88] sm:$0xff] %v1744_v50 }
 0x48f   :  { %1833 = vst [vmem:[%s3415_s7 + $0x80] sm:$0xff] %v1739_v41  ;;  %v2475_v28 = vpop.f32.mrb[66].mxu0 }
 0x490   :  { %v1754_v53 = vadd.f32 %v2475_v28, %v3278_v10  ;;  %v1748_v54 = vpop.f32.mrb[67].mxu0 }
 0x491   :  { %v1749_v55 = vadd.f32 %v3278_v10, %v1748_v54 }
 0x492   :  { %1836 = vst [vmem:[%s3415_s7 + $0x98] sm:$0xff] %v1754_v53 }
 0x493   :  { %1835 = vst [vmem:[%s3415_s7 + $0x90] sm:$0xff] %v1749_v55  ;;  %v2478_v56 = vpop.f32.mrb[68].mxu0 }
 0x494   :  { %v1764_v57 = vadd.f32 %v2478_v56, %v3278_v10  ;;  %v1758_v49 = vpop.f32.mrb[69].mxu0 }
 0x495   :  { %v1759_v38 = vadd.f32 %v3278_v10, %v1758_v49 }
 0x496   :  { %1838 = vst [vmem:[%s3415_s7 + $0xa8] sm:$0xff] %v1764_v57 }
 0x497   :  { %1837 = vst [vmem:[%s3415_s7 + $0xa0] sm:$0xff] %v1759_v38  ;;  %v2481_v51 = vpop.f32.mrb[70].mxu0 }
 0x498   :  { %v1774_v59 = vadd.f32 %v2481_v51, %v3278_v10  ;;  %v1768_v60 = vpop.f32.mrb[71].mxu0 }
 0x499   :  { %v1769_v62 = vadd.f32 %v3278_v10, %v1768_v60 }
 0x49a   :  { %1840 = vst [vmem:[%s3415_s7 + $0xb8] sm:$0xff] %v1774_v59 }
 0x49b   :  { %1839 = vst [vmem:[%s3415_s7 + $0xb0] sm:$0xff] %v1769_v62  ;;  %v2484_v63 = vpop.f32.mrb[72].mxu0 }
 0x49c   :  { %v1784_v48 = vadd.f32 %v2484_v63, %v3278_v10  ;;  %v1778_v61 = vpop.f32.mrb[73].mxu0 }
 0x49d   :  { %v1779_v0 = vadd.f32 %v3278_v10, %v1778_v61 }
 0x49e   :  { %1842 = vst [vmem:[%s3415_s7 + $0xc8] sm:$0xff] %v1784_v48 }
 0x49f   :  { %1841 = vst [vmem:[%s3415_s7 + $0xc0] sm:$0xff] %v1779_v0  ;;  %v2487_v1 = vpop.f32.mrb[74].mxu0 }
 0x4a0   :  { %v1794_v2 = vadd.f32 %v2487_v1, %v3278_v10  ;;  %v1788_v3 = vpop.f32.mrb[75].mxu0 }
 0x4a1   :  { %v1789_v58 = vadd.f32 %v3278_v10, %v1788_v3 }
 0x4a2   :  { %1844 = vst [vmem:[%s3415_s7 + $0xd8] sm:$0xff] %v1794_v2 }
 0x4a3   :  { %1843 = vst [vmem:[%s3415_s7 + $0xd0] sm:$0xff] %v1789_v58  ;;  %v2490_v5 = vpop.f32.mrb[76].mxu0 }
 0x4a4   :  { %v1804_v6 = vadd.f32 %v2490_v5, %v3278_v10  ;;  %v1798_v7 = vpop.f32.mrb[77].mxu0 }
 0x4a5   :  { %v1799_v9 = vadd.f32 %v3278_v10, %v1798_v7 }
 0x4a6   :  { %1846 = vst [vmem:[%s3415_s7 + $0xe8] sm:$0xff] %v1804_v6 }
 0x4a7   :  { %1845 = vst [vmem:[%s3415_s7 + $0xe0] sm:$0xff] %v1799_v9  ;;  %v2493_v4 = vpop.f32.mrb[78].mxu0 }
 0x4a8   :  { %v1814_v11 = vadd.f32 %v2493_v4, %v3278_v10  ;;  %v1808_v8 = vpop.f32.mrb[79].mxu0 }
 0x4a9   :  { %v1809_v12 = vadd.f32 %v3278_v10, %v1808_v8 }
 0x4aa   :  { %1848 = vst [vmem:[%s3415_s7 + $0xf8] sm:$0xff] %v1814_v11 }
 0x4ab   :  { %1847 = vst [vmem:[%s3415_s7 + $0xf0] sm:$0xff] %v1809_v12 }
 0x4ac   :  { %1857 = vsyncpa [#allocation3], 1 }
 0x4ad   :  { %1858 = vsyncpa [#allocation5], 1 }

// kernel: _feedforward_impl.1
= control target key start
LH: loop header
LB: loop body
LE: loop exit
PB: predicated region body
PF: predicated region fallthrough
CT: control target
= control target key end

     0   :  { %14 = vsyncpa [#allocation3], 0  ;;  %s3408_s0 = inlined_call_operand.vmem [shape: f32[256,16], index: 0, kind: input, shape index: {}]   ;;  %s3409_s1 = inlined_call_operand.vmem [shape: f32[16,128], index: 1, kind: input, shape index: {}]   ;;  %s3410_s2 = inlined_call_operand.vmem [shape: f32[128,128], index: 2, kind: input, shape index: {}]   ;;  %s3411_s3 = inlined_call_operand.vmem [shape: f32[128,128], index: 3, kind: input, shape index: {}]   ;;  %s3412_s4 = inlined_call_operand.hbm [shape: f32[128,128], index: 4, kind: input, shape index: {}]   ;;  %s3413_s5 = inlined_call_operand.hbm [shape: f32[128,128], index: 5, kind: input, shape index: {}]   ;;  %s3414_s6 = inlined_call_operand.vmem [shape: f32[8,128], index: 6, kind: input, shape index: {}]   ;;  %s3415_s7 = inlined_call_operand.vmem [shape: f32[256,128], index: 7, kind: output, shape index: {0}]   ;;  %s3416_s8 = inlined_call_operand.vmem [shape: f32[256,128], index: 8, kind: output, shape index: {1}]  }
   0x1   :  { %15 = vsyncpa [#allocation5], 0  ;;  %s2680_s27 = smov [#allocation2]   ;;  %s2632_s9 = scalar_lea.hbm %s3412_s4, 2048 }
   0x2   :  { %s29_s28 = sshll.u32 %s2680_s27, 4  ;;  %p2633_p0 = scmp.ne.s32.totalorder %s3412_s4, %s2632_s9  ;;  %s30_s28 = int_to_ptr.vmem [resolvable:$true] %s29_s28 }
   0x3   :  { %p2636_p1 = scmp.lt.u32.totalorder %s2632_s9, %s3412_s4 }
   0x5   :  { %p2638_p2 = pnand %p2636_p1, %p2633_p0 }
   0x7   :  { %2641 = shalt.err (!%p2638_p2)
}
   0x8   :  { %s2642_s14 = scalar_lea.vmem %s30_s28, 2048  ;;  %p2647_p4 = scmp.lt.s32.totalorder %s30_s28, %s30_s28 }
   0x9   :  { %p2643_p3 = scmp.ne.s32.totalorder %s30_s28, %s2642_s14  ;;  %p2648_p5 = scmp.lt.s32.totalorder %s2642_s14, %s2642_s14 }
   0xb   :  { %p2649_p6 = por %p2648_p5, %p2647_p4 }
   0xd   :  { %p2650_p7 = pnand %p2649_p6, %p2643_p3 }
   0xf   :  { %2653 = shalt.err (!%p2650_p7)
}
  0x10   :  { %s2681_s15 = smov 128   ;;  %s2682_s16 = smov 8  }
  0x11   :  { %35 = dma.hbm_to_vmem [thread:$0]  %s3412_s4, 2048, %s30_s28, [#allocation3], %s2681_s15, %s2681_s15, %s2682_s16  }
  0x12   :  { %s2683_s19 = smov [#allocation4]   ;;  %s2654_s23 = scalar_lea.hbm %s3413_s5, 2048 }
  0x13   :  { %s41_s20 = sshll.u32 %s2683_s19, 4  ;;  %p2655_p8 = scmp.ne.s32.totalorder %s3413_s5, %s2654_s23  ;;  %s42_s20 = int_to_ptr.vmem [resolvable:$true] %s41_s20 }
  0x14   :  { %p2658_p9 = scmp.lt.u32.totalorder %s2654_s23, %s3413_s5 }
  0x16   :  { %p2660_p10 = pnand %p2658_p9, %p2655_p8 }
  0x18   :  { %2663 = shalt.err (!%p2660_p10)
}
  0x19   :  { %s2664_s29 = scalar_lea.vmem %s42_s20, 2048  ;;  %p2669_p12 = scmp.lt.s32.totalorder %s42_s20, %s42_s20 }
  0x1a   :  { %p2665_p11 = scmp.ne.s32.totalorder %s42_s20, %s2664_s29  ;;  %p2670_p13 = scmp.lt.s32.totalorder %s2664_s29, %s2664_s29 }
  0x1c   :  { %p2671_p0 = por %p2670_p13, %p2669_p12 }
  0x1e   :  { %p2672_p1 = pnand %p2671_p0, %p2665_p11 }
  0x20   :  { %2675 = shalt.err (!%p2672_p1)
}
  0x21   :  { %47 = dma.hbm_to_vmem [thread:$0]  %s3413_s5, 2048, %s42_s20, [#allocation5], %s2681_s15, %s2681_s15, %s2682_s16  }
  0x22   :  { %2676 = dma.done.wait [#allocation3], 2048  }
  0x23   :  { %2677 = vsyncadd [#allocation3], 4294965248 }
  0x24   :  { %2678 = dma.done.wait [#allocation5], 2048  }
  0x25   :  { %2679 = vsyncadd [#allocation5], 4294965248  ;;  %vm95_vm0 = vcmask 130048   ;;  %v88_v0 = vld [vmem:[%s3409_s1] sm:$0xff]  ;;  %v89_v1 = vld [vmem:[%s3409_s1 + $0x8] sm:$0xff] }
  0x26   :  { %v56_v2 = vld [vmem:[%s3408_s0] sm:$0xff]  ;;  %v2494_v3 = vpack.c.bf16 %v89_v1, %v88_v0  ;;  %v57_v4 = vld [vmem:[%s3408_s0 + $0x8] sm:$0xff]  ;;  %v58_v5 = vld [vmem:[%s3408_s0 + $0x10] sm:$0xff] }
  0x27   :  { %2126 = vmatprep.mubr.msk.f32.mxu0 %vm95_vm0, %v56_v2  ;;  %v72_v6 = vld [vmem:[%s3408_s0 + $0x80] sm:$0xff]  ;;  %v73_v7 = vld [vmem:[%s3408_s0 + $0x88] sm:$0xff]  ;;  %v74_v8 = vld [vmem:[%s3408_s0 + $0x90] sm:$0xff] }
  0x28   :  { %2495 = vmatprep.subr.bf16.mxu0 %v2494_v3  ;;  %2626 = vmatprep.subr.bf16.mxu1 %v2494_v3  ;;  %v59_v9 = vld [vmem:[%s3408_s0 + $0x18] sm:$0xff]  ;;  %v60_v10 = vld [vmem:[%s3408_s0 + $0x20] sm:$0xff]  ;;  %v514_v14 = vld [vmem:[%s3410_s2 + $0x8] sm:$0xff] }
  0x29   :  { %2497 = vmatpush3.bf16.msra.mxu0 %v2494_v3  ;;  %2627 = vmatpush3.bf16.msra.mxu1 %v2494_v3  ;;  %v75_v11 = vld [vmem:[%s3408_s0 + $0x98] sm:$0xff]  ;;  %v76_v12 = vld [vmem:[%s3408_s0 + $0xa0] sm:$0xff]  ;;  %v61_v15 = vld [vmem:[%s3408_s0 + $0x28] sm:$0xff] }
  0x2a   :  { %2150 = vmatprep.mubr.msk.f32.mxu1 %vm95_vm0, %v72_v6  ;;  %v513_v13 = vld [vmem:[%s3410_s2] sm:$0xff]  ;;  %v515_v17 = vld [vmem:[%s3410_s2 + $0x10] sm:$0xff]  ;;  %v516_v18 = vld [vmem:[%s3410_s2 + $0x18] sm:$0xff] }
  0x2b   :  { %v2498_v16 = vpack.c.bf16 %v514_v14, %v513_v13  ;;  %v62_v19 = vld [vmem:[%s3408_s0 + $0x30] sm:$0xff]  ;;  %v77_v20 = vld [vmem:[%s3408_s0 + $0xa8] sm:$0xff]  ;;  %v2502_v21 = vpack.c.bf16 %v516_v18, %v515_v17  ;;  %v517_v23 = vld [vmem:[%s3410_s2 + $0x20] sm:$0xff] }
  0x2c   :  { %2127 = vmatmul.mubr.msk.f32.vlgmr.msra.gmra.mrb[0].mxu0 %vm95_vm0, %v57_v4  ;;  %2151 = vmatmul.mubr.msk.f32.vlgmr.msra.gmra.mrb[0].mxu1 %vm95_vm0, %v73_v7  ;;  %v78_v22 = vld [vmem:[%s3408_s0 + $0xb0] sm:$0xff]  ;;  %v518_v24 = vld [vmem:[%s3410_s2 + $0x28] sm:$0xff]  ;;  %v63_v25 = vld [vmem:[%s3408_s0 + $0x38] sm:$0xff] }
  0x2d   :  { %2129 = vmatprep.mubr.msk.f32.mxu0 %vm95_vm0, %v58_v5  ;;  %2153 = vmatprep.mubr.msk.f32.mxu1 %vm95_vm0, %v74_v8  ;;  %v64_v26 = vld [vmem:[%s3408_s0 + $0x40] sm:$0xff]  ;;  %v79_v27 = vld [vmem:[%s3408_s0 + $0xb8] sm:$0xff]  ;;  %v2506_v28 = vpack.c.bf16 %v518_v24, %v517_v23  ;;  %v519_v30 = vld [vmem:[%s3410_s2 + $0x30] sm:$0xff] }
  0x2e   :  { %2499 = vmatprep.subr.bf16.mxu1 %v2498_v16  ;;  %v80_v29 = vld [vmem:[%s3408_s0 + $0xc0] sm:$0xff]  ;;  %v520_v31 = vld [vmem:[%s3410_s2 + $0x38] sm:$0xff]  ;;  %v65_v32 = vld [vmem:[%s3408_s0 + $0x48] sm:$0xff] }
  0x2f   :  { %2501 = vmatpush3.bf16.msra.mxu1 %v2498_v16  ;;  %v66_v33 = vld [vmem:[%s3408_s0 + $0x50] sm:$0xff]  ;;  %v81_v34 = vld [vmem:[%s3408_s0 + $0xc8] sm:$0xff]  ;;  %v2510_v35 = vpack.c.bf16 %v520_v31, %v519_v30  ;;  %v521_v37 = vld [vmem:[%s3410_s2 + $0x40] sm:$0xff] }
  0x30   :  { %2130 = vmatmul.mubr.msk.f32.gmra.mrb[2].mxu0 %vm95_vm0, %v59_v9  ;;  %2154 = vmatmul.mubr.msk.f32.gmra.mrb[2].mxu1 %vm95_vm0, %v75_v11  ;;  %v82_v36 = vld [vmem:[%s3408_s0 + $0xd0] sm:$0xff]  ;;  %v522_v38 = vld [vmem:[%s3410_s2 + $0x48] sm:$0xff]  ;;  %v67_v39 = vld [vmem:[%s3408_s0 + $0x58] sm:$0xff] }
  0x31   :  { %2132 = vmatprep.mubr.msk.f32.mxu0 %vm95_vm0, %v60_v10  ;;  %2156 = vmatprep.mubr.msk.f32.mxu1 %vm95_vm0, %v76_v12  ;;  %v68_v40 = vld [vmem:[%s3408_s0 + $0x60] sm:$0xff]  ;;  %v83_v41 = vld [vmem:[%s3408_s0 + $0xd8] sm:$0xff]  ;;  %v2514_v42 = vpack.c.bf16 %v522_v38, %v521_v37  ;;  %v523_v44 = vld [vmem:[%s3410_s2 + $0x50] sm:$0xff] }
  0x32   :  { %2503 = vmatprep.subr.bf16.mxu1 %v2502_v21  ;;  %v84_v43 = vld [vmem:[%s3408_s0 + $0xe0] sm:$0xff]  ;;  %v524_v45 = vld [vmem:[%s3410_s2 + $0x58] sm:$0xff]  ;;  %v69_v46 = vld [vmem:[%s3408_s0 + $0x68] sm:$0xff] }
  0x33   :  { %2505 = vmatpush3.bf16.msra.mxu1 %v2502_v21  ;;  %v70_v47 = vld [vmem:[%s3408_s0 + $0x70] sm:$0xff]  ;;  %v85_v48 = vld [vmem:[%s3408_s0 + $0xe8] sm:$0xff]  ;;  %v2518_v49 = vpack.c.bf16 %v524_v45, %v523_v44  ;;  %v525_v50 = vld [vmem:[%s3410_s2 + $0x60] sm:$0xff] }
  0x34   :  { %2133 = vmatmul.mubr.msk.f32.gmra.mrb[4].mxu0 %vm95_vm0, %v61_v15  ;;  %2157 = vmatmul.mubr.msk.f32.gmra.mrb[4].mxu1 %vm95_vm0, %v77_v20  ;;  %v526_v51 = vld [vmem:[%s3410_s2 + $0x68] sm:$0xff]  ;;  %v86_v52 = vld [vmem:[%s3408_s0 + $0xf0] sm:$0xff]  ;;  %v71_v53 = vld [vmem:[%s3408_s0 + $0x78] sm:$0xff] }
  0x35   :  { %2135 = vmatprep.mubr.msk.f32.mxu0 %vm95_vm0, %v62_v19  ;;  %2159 = vmatprep.mubr.msk.f32.mxu1 %vm95_vm0, %v78_v22  ;;  %v2522_v54 = vpack.c.bf16 %v526_v51, %v525_v50  ;;  %v87_v55 = vld [vmem:[%s3408_s0 + $0xf8] sm:$0xff]  ;;  %v527_v56 = vld [vmem:[%s3410_s2 + $0x70] sm:$0xff]  ;;  %v855_v59 = vld [vmem:[%s3411_s3] sm:$0xff] }
  0x36   :  { %2507 = vmatprep.subr.bf16.mxu1 %v2506_v28  ;;  %v528_v57 = vld [vmem:[%s3410_s2 + $0x78] sm:$0xff]  ;;  %v856_v60 = vld [vmem:[%s3411_s3 + $0x8] sm:$0xff]  ;;  %v857_v61 = vld [vmem:[%s3411_s3 + $0x10] sm:$0xff] }
  0x37   :  { %2509 = vmatpush3.bf16.msra.mxu1 %v2506_v28  ;;  %v2526_v58 = vpack.c.bf16 %v528_v57, %v527_v56  ;;  %v2530_v62 = vpack.c.bf16 %v856_v60, %v855_v59  ;;  %v858_v63 = vld [vmem:[%s3411_s3 + $0x18] sm:$0xff]  ;;  %v859_v1 = vld [vmem:[%s3411_s3 + $0x20] sm:$0xff]  ;;  %v860_v2 = vld [vmem:[%s3411_s3 + $0x28] sm:$0xff] }
  0x38   :  { %2136 = vmatmul.mubr.msk.f32.gmra.mrb[6].mxu0 %vm95_vm0, %v63_v25  ;;  %2160 = vmatmul.mubr.msk.f32.gmra.mrb[6].mxu1 %vm95_vm0, %v79_v27  ;;  %v2534_v0 = vpack.c.bf16 %v858_v63, %v857_v61  ;;  %v2538_v3 = vpack.c.bf16 %v860_v2, %v859_v1  ;;  %v861_v4 = vld [vmem:[%s3411_s3 + $0x30] sm:$0xff]  ;;  %v862_v5 = vld [vmem:[%s3411_s3 + $0x38] sm:$0xff]  ;;  %v863_v7 = vld [vmem:[%s3411_s3 + $0x40] sm:$0xff] }
  0x39   :  { %2138 = vmatprep.mubr.msk.f32.mxu0 %vm95_vm0, %v64_v26  ;;  %2162 = vmatprep.mubr.msk.f32.mxu1 %vm95_vm0, %v80_v29  ;;  %v2542_v6 = vpack.c.bf16 %v862_v5, %v861_v4  ;;  %v864_v8 = vld [vmem:[%s3411_s3 + $0x48] sm:$0xff]  ;;  %v865_v10 = vld [vmem:[%s3411_s3 + $0x50] sm:$0xff]  ;;  %v866_v11 = vld [vmem:[%s3411_s3 + $0x58] sm:$0xff] }
  0x3a   :  { %2511 = vmatprep.subr.bf16.mxu1 %v2510_v35  ;;  %2531 = vmatprep.subr.bf16.mxu0 %v2530_v62  ;;  %v2546_v9 = vpack.c.bf16 %v864_v8, %v863_v7  ;;  %v2550_v12 = vpack.c.bf16 %v866_v11, %v865_v10  ;;  %v867_v13 = vld [vmem:[%s3411_s3 + $0x60] sm:$0xff]  ;;  %v868_v14 = vld [vmem:[%s3411_s3 + $0x68] sm:$0xff] }
  0x3b   :  { %2513 = vmatpush3.bf16.msra.mxu1 %v2510_v35  ;;  %2533 = vmatpush3.bf16.msra.mxu0 %v2530_v62  ;;  %v2554_v15 = vpack.c.bf16 %v868_v14, %v867_v13  ;;  %v2980_v16 = vld [vmem:[%s3414_s6] ss:$0 sm:$0xff] }
  0x3c   :  { %2139 = vmatmul.mubr.msk.f32.gmra.mrb[8].mxu0 %vm95_vm0, %v65_v32  ;;  %2163 = vmatmul.mubr.msk.f32.gmra.mrb[8].mxu1 %vm95_vm0, %v81_v34 }
  0x3d   :  { %2141 = vmatprep.mubr.msk.f32.mxu0 %vm95_vm0, %v66_v33  ;;  %2165 = vmatprep.mubr.msk.f32.mxu1 %vm95_vm0, %v82_v36 }
  0x3e   :  { %2515 = vmatprep.subr.bf16.mxu1 %v2514_v42  ;;  %2535 = vmatprep.subr.bf16.mxu0 %v2534_v0 }
  0x3f   :  { %2517 = vmatpush3.bf16.msra.mxu1 %v2514_v42  ;;  %2537 = vmatpush3.bf16.msra.mxu0 %v2534_v0 }
  0x40   :  { %2142 = vmatmul.mubr.msk.f32.gmra.mrb[10].mxu0 %vm95_vm0, %v67_v39  ;;  %2166 = vmatmul.mubr.msk.f32.gmra.mrb[10].mxu1 %vm95_vm0, %v83_v41 }
  0x41   :  { %2144 = vmatprep.mubr.msk.f32.mxu0 %vm95_vm0, %v68_v40  ;;  %2168 = vmatprep.mubr.msk.f32.mxu1 %vm95_vm0, %v84_v43 }
  0x42   :  { %2519 = vmatprep.subr.bf16.mxu1 %v2518_v49  ;;  %2539 = vmatprep.subr.bf16.mxu0 %v2538_v3 }
  0x43   :  { %2521 = vmatpush3.bf16.msra.mxu1 %v2518_v49  ;;  %2541 = vmatpush3.bf16.msra.mxu0 %v2538_v3 }
  0x44   :  { %2145 = vmatmul.mubr.msk.f32.gmra.mrb[12].mxu0 %vm95_vm0, %v69_v46  ;;  %2169 = vmatmul.mubr.msk.f32.gmra.mrb[12].mxu1 %vm95_vm0, %v85_v48 }
  0x45   :  { %2147 = vmatprep.mubr.msk.f32.mxu0 %vm95_vm0, %v70_v47  ;;  %2171 = vmatprep.mubr.msk.f32.mxu1 %vm95_vm0, %v86_v52 }
  0x46   :  { %2523 = vmatprep.subr.bf16.mxu1 %v2522_v54  ;;  %2543 = vmatprep.subr.bf16.mxu0 %v2542_v6 }
  0x47   :  { %2525 = vmatpush3.bf16.msra.mxu1 %v2522_v54  ;;  %2545 = vmatpush3.bf16.msra.mxu0 %v2542_v6 }
  0x48   :  { %2148 = vmatmul.mubr.msk.f32.gmra.mrb[14].mxu0 %vm95_vm0, %v71_v53  ;;  %2172 = vmatmul.mubr.msk.f32.gmra.mrb[14].mxu1 %vm95_vm0, %v87_v55 }
  0x49   :  { %2527 = vmatprep.subr.bf16.mxu1 %v2526_v58  ;;  %2547 = vmatprep.subr.bf16.mxu0 %v2546_v9 }
  0x4b   :  { %2529 = vmatpush3.bf16.msra.mxu1 %v2526_v58  ;;  %2549 = vmatpush3.bf16.msra.mxu0 %v2546_v9 }
  0x4c   :  { %2551 = vmatprep.subr.bf16.mxu0 %v2550_v12 }
  0x4f   :  { %2553 = vmatpush3.bf16.msra.mxu0 %v2550_v12 }
  0x50   :  { %2555 = vmatprep.subr.bf16.mxu0 %v2554_v15 }
  0x53   :  { %2557 = vmatpush3.bf16.msra.mxu0 %v2554_v15 }
  0xff   :  { %v2128_v17 = vpop.f32.mrb[0].mxu0  ;;  %v2983_v20 = vpop.f32.mrb[0].mxu1 }
 0x100   :  { %v264_v18 = vadd.f32 %v2128_v17, %v2980_v16  ;;  %v258_v19 = vpop.f32.mrb[1].mxu0  ;;  %v2986_v22 = vpop.f32.mrb[1].mxu1 }
 0x101   :  { %v259_v21 = vadd.f32 %v2980_v16, %v258_v19 }
 0x102   :  { %v450_v23 = vmul.f32 0.1, %v264_v18  ;;  %vm418_vm1 = vcmp.gt.f32.partialorder %v264_v18, 0.0 }
 0x103   :  { %v449_v24 = vmul.f32 0.1, %v259_v21  ;;  %v2131_v25 = vpop.f32.mrb[2].mxu0  ;;  %vm417_vm2 = vcmp.gt.f32.partialorder %v259_v21, 0.0  ;;  %v2989_v28 = vpop.f32.mrb[2].mxu1 }
 0x104   :  { %v274_v26 = vadd.f32 %v2131_v25, %v2980_v16  ;;  %v268_v27 = vpop.f32.mrb[3].mxu0  ;;  %v2992_v31 = vpop.f32.mrb[3].mxu1  ;;  %v482_v32 = vsel %vm418_vm1, %v264_v18, %v450_v23  ;;  %v339_v18 = vadd.f32 %v2980_v16, %v2986_v22 }
 0x105   :  { %v269_v29 = vadd.f32 %v2980_v16, %v268_v27  ;;  %v481_v30 = vsel %vm417_vm2, %v259_v21, %v449_v24  ;;  %v349_v22 = vadd.f32 %v2980_v16, %v2992_v31 }
 0x106   :  { %v452_v33 = vmul.f32 0.1, %v274_v26  ;;  %2206 = vmatprep.mubr.f32.mxu1 %v481_v30  ;;  %vm420_vm4 = vcmp.gt.f32.partialorder %v274_v26, 0.0  ;;  %vm433_vm15 = vcmp.gt.f32.partialorder %v339_v18, 0.0 }
 0x107   :  { %v451_v34 = vmul.f32 0.1, %v269_v29  ;;  %v2134_v35 = vpop.f32.mrb[4].mxu0  ;;  %2207 = vmatmul.mubr.f32.vlgmr.msra.gmra.mrb[16].mxu1 %v482_v32  ;;  %vm419_vm3 = vcmp.gt.f32.partialorder %v269_v29, 0.0  ;;  %v2995_v38 = vpop.f32.mrb[4].mxu1  ;;  %vm435_vm2 = vcmp.gt.f32.partialorder %v349_v22, 0.0 }
 0x108   :  { %v284_v36 = vadd.f32 %v2134_v35, %v2980_v16  ;;  %v278_v37 = vpop.f32.mrb[5].mxu0  ;;  %v2998_v41 = vpop.f32.mrb[5].mxu1  ;;  %v484_v43 = vsel %vm420_vm4, %v274_v26, %v452_v33  ;;  %v465_v32 = vmul.f32 0.1, %v339_v18 }
 0x109   :  { %v279_v39 = vadd.f32 %v2980_v16, %v278_v37  ;;  %v483_v40 = vsel %vm419_vm3, %v269_v29, %v451_v34 }
 0x10a   :  { %v454_v42 = vmul.f32 0.1, %v284_v36  ;;  %2209 = vmatprep.mubr.f32.mxu1 %v483_v40  ;;  %vm422_vm6 = vcmp.gt.f32.partialorder %v284_v36, 0.0  ;;  %v467_v40 = vmul.f32 0.1, %v349_v22 }
 0x10b   :  { %v453_v44 = vmul.f32 0.1, %v279_v39  ;;  %v2137_v45 = vpop.f32.mrb[6].mxu0  ;;  %2210 = vmatmul.mubr.f32.gmra.mrb[18].mxu1 %v484_v43  ;;  %vm421_vm5 = vcmp.gt.f32.partialorder %v279_v39, 0.0  ;;  %v3001_v48 = vpop.f32.mrb[6].mxu1  ;;  %v497_v43 = vsel %vm433_vm15, %v339_v18, %v465_v32  ;;  %v1202_v32 = vld [vmem:[#allocation2 + $0x28] sm:$0xff] }
 0x10c   :  { %v294_v46 = vadd.f32 %v2137_v45, %v2980_v16  ;;  %v288_v47 = vpop.f32.mrb[7].mxu0  ;;  %v3004_v51 = vpop.f32.mrb[7].mxu1  ;;  %v486_v53 = vsel %vm422_vm6, %v284_v36, %v454_v42  ;;  %v344_v36 = vadd.f32 %v2983_v20, %v2980_v16  ;;  %v354_v45 = vadd.f32 %v2989_v28, %v2980_v16 }
 0x10d   :  { %v289_v49 = vadd.f32 %v2980_v16, %v288_v47  ;;  %v485_v50 = vsel %vm421_vm5, %v279_v39, %v453_v44  ;;  %v359_v44 = vadd.f32 %v2980_v16, %v2998_v41  ;;  %v499_v47 = vsel %vm435_vm2, %v349_v22, %v467_v40  ;;  %v1203_v22 = vld [vmem:[#allocation2 + $0x30] sm:$0xff] }
 0x10e   :  { %v456_v52 = vmul.f32 0.1, %v294_v46  ;;  %2212 = vmatprep.mubr.f32.mxu1 %v485_v50  ;;  %vm424_vm8 = vcmp.gt.f32.partialorder %v294_v46, 0.0  ;;  %v466_v31 = vmul.f32 0.1, %v344_v36  ;;  %vm434_vm3 = vcmp.gt.f32.partialorder %v344_v36, 0.0 }
 0x10f   :  { %v455_v54 = vmul.f32 0.1, %v289_v49  ;;  %v2140_v55 = vpop.f32.mrb[8].mxu0  ;;  %2213 = vmatmul.mubr.f32.gmra.mrb[20].mxu1 %v486_v53  ;;  %vm423_vm7 = vcmp.gt.f32.partialorder %v289_v49, 0.0  ;;  %v3007_v58 = vpop.f32.mrb[8].mxu1  ;;  %vm437_vm4 = vcmp.gt.f32.partialorder %v359_v44, 0.0 }
 0x110   :  { %v304_v56 = vadd.f32 %v2140_v55, %v2980_v16  ;;  %v298_v57 = vpop.f32.mrb[9].mxu0  ;;  %v3010_v61 = vpop.f32.mrb[9].mxu1  ;;  %v488_v63 = vsel %vm424_vm8, %v294_v46, %v456_v52  ;;  %v469_v20 = vmul.f32 0.1, %v359_v44  ;;  %v468_v50 = vmul.f32 0.1, %v354_v45 }
 0x111   :  { %v299_v59 = vadd.f32 %v2980_v16, %v298_v57  ;;  %v487_v60 = vsel %vm423_vm7, %v289_v49, %v455_v54  ;;  %v369_v49 = vadd.f32 %v2980_v16, %v3004_v51  ;;  %v364_v52 = vadd.f32 %v2995_v38, %v2980_v16  ;;  %v1207_v40 = vld [vmem:[#allocation2 + $0x50] sm:$0xff] }
 0x112   :  { %v458_v62 = vmul.f32 0.1, %v304_v56  ;;  %2215 = vmatprep.mubr.f32.mxu1 %v487_v60  ;;  %vm426_vm10 = vcmp.gt.f32.partialorder %v304_v56, 0.0  ;;  %v498_v41 = vsel %vm434_vm3, %v344_v36, %v466_v31  ;;  %vm436_vm5 = vcmp.gt.f32.partialorder %v354_v45, 0.0  ;;  %v1205_v36 = vld [vmem:[#allocation2 + $0x40] sm:$0xff]  ;;  %v1210_v31 = vld [vmem:[#allocation2 + $0x68] sm:$0xff] }
 0x113   :  { %v457_v0 = vmul.f32 0.1, %v299_v59  ;;  %v2143_v1 = vpop.f32.mrb[10].mxu0  ;;  %2216 = vmatmul.mubr.f32.gmra.mrb[22].mxu1 %v488_v63  ;;  %vm425_vm9 = vcmp.gt.f32.partialorder %v299_v59, 0.0  ;;  %v3013_v4 = vpop.f32.mrb[10].mxu1  ;;  %v501_v53 = vsel %vm437_vm4, %v359_v44, %v469_v20  ;;  %v379_v54 = vadd.f32 %v2980_v16, %v3010_v61  ;;  %v1209_v44 = vld [vmem:[#allocation2 + $0x60] sm:$0xff] }
 0x114   :  { %v314_v2 = vadd.f32 %v2143_v1, %v2980_v16  ;;  %v308_v3 = vpop.f32.mrb[11].mxu0  ;;  %v3016_v7 = vpop.f32.mrb[11].mxu1  ;;  %v490_v9 = vsel %vm426_vm10, %v304_v56, %v458_v62  ;;  %v471_v28 = vmul.f32 0.1, %v369_v49  ;;  %v470_v55 = vmul.f32 0.1, %v364_v52 }
 0x115   :  { %v309_v5 = vadd.f32 %v2980_v16, %v308_v3  ;;  %v489_v6 = vsel %vm425_vm9, %v299_v59, %v457_v0  ;;  %v374_v56 = vadd.f32 %v3001_v48, %v2980_v16  ;;  %v500_v57 = vsel %vm436_vm5, %v354_v45, %v468_v50  ;;  %v1212_v20 = vld [vmem:[#allocation2 + $0x78] sm:$0xff] }
 0x116   :  { %v460_v8 = vmul.f32 0.1, %v314_v2  ;;  %2218 = vmatprep.mubr.f32.mxu1 %v489_v6  ;;  %vm428_vm12 = vcmp.gt.f32.partialorder %v314_v2, 0.0  ;;  %vm439_vm6 = vcmp.gt.f32.partialorder %v369_v49, 0.0  ;;  %vm438_vm7 = vcmp.gt.f32.partialorder %v364_v52, 0.0 }
 0x117   :  { %v459_v10 = vmul.f32 0.1, %v309_v5  ;;  %v2146_v11 = vpop.f32.mrb[12].mxu0  ;;  %2219 = vmatmul.mubr.f32.gmra.mrb[24].mxu1 %v490_v9  ;;  %vm427_vm11 = vcmp.gt.f32.partialorder %v309_v5, 0.0  ;;  %v3019_v14 = vpop.f32.mrb[12].mxu1  ;;  %v503_v51 = vsel %vm439_vm6, %v369_v49, %v471_v28  ;;  %v389_v59 = vadd.f32 %v2980_v16, %v3016_v7 }
 0x118   :  { %v324_v12 = vadd.f32 %v2146_v11, %v2980_v16  ;;  %v318_v13 = vpop.f32.mrb[13].mxu0  ;;  %v3024_v19 = vpop.f32.mrb[13].mxu1  ;;  %v492_v23 = vsel %vm428_vm12, %v314_v2, %v460_v8  ;;  %v473_v38 = vmul.f32 0.1, %v379_v54  ;;  %v472_v60 = vmul.f32 0.1, %v374_v56 }
 0x119   :  { %v319_v15 = vadd.f32 %v2980_v16, %v318_v13  ;;  %v491_v17 = vsel %vm427_vm11, %v309_v5, %v459_v10  ;;  %v384_v62 = vadd.f32 %v3007_v58, %v2980_v16  ;;  %v502_v63 = vsel %vm438_vm7, %v364_v52, %v470_v55  ;;  %v3071_v49 = vld [vmem:[%s3414_s6 + $0x1] ss:$0 sm:$0xff] }
 0x11a   :  { %v462_v21 = vmul.f32 0.1, %v324_v12  ;;  %2221 = vmatprep.mubr.f32.mxu1 %v491_v17  ;;  %vm430_vm14 = vcmp.gt.f32.partialorder %v324_v12, 0.0  ;;  %vm441_vm8 = vcmp.gt.f32.partialorder %v379_v54, 0.0  ;;  %vm440_vm9 = vcmp.gt.f32.partialorder %v374_v56, 0.0 }
 0x11b   :  { %v461_v24 = vmul.f32 0.1, %v319_v15  ;;  %v2149_v25 = vpop.f32.mrb[14].mxu0  ;;  %2222 = vmatmul.mubr.f32.gmra.mrb[26].mxu1 %v492_v23  ;;  %vm429_vm13 = vcmp.gt.f32.partialorder %v319_v15, 0.0  ;;  %v3027_v29 = vpop.f32.mrb[14].mxu1  ;;  %v505_v61 = vsel %vm441_vm8, %v379_v54, %v473_v38  ;;  %v399_v0 = vadd.f32 %v2980_v16, %v3024_v19  ;;  %v869_v19 = vld [vmem:[%s3411_s3 + $0x70] sm:$0xff] }
 0x11c   :  { %v334_v26 = vadd.f32 %v2149_v25, %v2980_v16  ;;  %v328_v27 = vpop.f32.mrb[15].mxu0  ;;  %v3032_v34 = vpop.f32.mrb[15].mxu1  ;;  %v494_v37 = vsel %vm430_vm14, %v324_v12, %v462_v21  ;;  %v475_v48 = vmul.f32 0.1, %v389_v59  ;;  %v474_v1 = vmul.f32 0.1, %v384_v62 }
 0x11d   :  { %v329_v30 = vadd.f32 %v2980_v16, %v328_v27  ;;  %v493_v33 = vsel %vm429_vm13, %v319_v15, %v461_v24  ;;  %v394_v2 = vadd.f32 %v3013_v4, %v2980_v16  ;;  %v504_v3 = vsel %vm440_vm9, %v374_v56, %v472_v60  ;;  %v1197_v23 = vld [vmem:[#allocation2] sm:$0xff]  ;;  %v1198_v24 = vld [vmem:[#allocation2 + $0x8] sm:$0xff]  ;;  %v1199_v25 = vld [vmem:[#allocation2 + $0x10] sm:$0xff] }
 0x11e   :  { %v464_v35 = vmul.f32 0.1, %v334_v26  ;;  %2224 = vmatprep.mubr.f32.mxu1 %v493_v33  ;;  %vm432_vm1 = vcmp.gt.f32.partialorder %v334_v26, 0.0  ;;  %vm443_vm10 = vcmp.gt.f32.partialorder %v389_v59, 0.0  ;;  %vm442_vm11 = vcmp.gt.f32.partialorder %v384_v62, 0.0  ;;  %v1200_v27 = vld [vmem:[#allocation2 + $0x18] sm:$0xff] }
 0x11f   :  { %v463_v39 = vmul.f32 0.1, %v329_v30  ;;  %2225 = vmatmul.mubr.f32.gmra.mrb[28].mxu1 %v494_v37  ;;  %vm431_vm0 = vcmp.gt.f32.partialorder %v329_v30, 0.0  ;;  %v477_v58 = vmul.f32 0.1, %v399_v0  ;;  %v507_v5 = vsel %vm443_vm10, %v389_v59, %v475_v48  ;;  %v1206_v37 = vld [vmem:[#allocation2 + $0x48] sm:$0xff] }
 0x120   :  { %v496_v46 = vsel %vm432_vm1, %v334_v26, %v464_v35  ;;  %v409_v6 = vadd.f32 %v2980_v16, %v3032_v34  ;;  %v476_v7 = vmul.f32 0.1, %v394_v2  ;;  %v404_v8 = vadd.f32 %v3019_v14, %v2980_v16  ;;  %v1204_v34 = vld [vmem:[#allocation2 + $0x38] sm:$0xff] }
 0x121   :  { %v495_v42 = vsel %vm431_vm0, %v329_v30, %v463_v39  ;;  %v506_v9 = vsel %vm442_vm11, %v384_v62, %v474_v1  ;;  %vm445_vm12 = vcmp.gt.f32.partialorder %v399_v0, 0.0  ;;  %vm444_vm13 = vcmp.gt.f32.partialorder %v394_v2, 0.0  ;;  %v1201_v30 = vld [vmem:[#allocation2 + $0x20] sm:$0xff] }
 0x122   :  { %2227 = vmatprep.mubr.f32.mxu1 %v495_v42  ;;  %v479_v4 = vmul.f32 0.1, %v409_v6  ;;  %v509_v10 = vsel %vm445_vm12, %v399_v0, %v477_v58  ;;  %v478_v11 = vmul.f32 0.1, %v404_v8  ;;  %v414_v12 = vadd.f32 %v3027_v29, %v2980_v16  ;;  %v870_v16 = vld [vmem:[%s3411_s3 + $0x78] sm:$0xff] }
 0x123   :  { %2228 = vmatmul.mubr.f32.gmra.mrb[30].mxu1 %v496_v46  ;;  %v508_v13 = vsel %vm444_vm13, %v394_v2, %v476_v7  ;;  %vm447_vm14 = vcmp.gt.f32.partialorder %v409_v6, 0.0  ;;  %vm446_vm15 = vcmp.gt.f32.partialorder %v404_v8, 0.0  ;;  %v2558_v21 = vpack.c.bf16 %v870_v16, %v869_v19  ;;  %v1208_v42 = vld [vmem:[#allocation2 + $0x58] sm:$0xff]  ;;  %v1211_v46 = vld [vmem:[#allocation2 + $0x70] sm:$0xff] }
 0x124   :  { %2230 = vmatprep.mubr.f32.mxu1 %v497_v43  ;;  %v511_v15 = vsel %vm447_vm14, %v409_v6, %v479_v4  ;;  %v480_v17 = vmul.f32 0.1, %v414_v12  ;;  %v510_v18 = vsel %vm446_vm15, %v404_v8, %v478_v11  ;;  %vm448_vm0 = vcmp.gt.f32.partialorder %v414_v12, 0.0 }
 0x125   :  { %2559 = vmatprep.subr.bf16.mxu0 %v2558_v21  ;;  %v2562_v26 = vpack.c.bf16 %v1198_v24, %v1197_v23  ;;  %v2566_v29 = vpack.c.bf16 %v1200_v27, %v1199_v25  ;;  %v2570_v33 = vpack.c.bf16 %v1202_v32, %v1201_v30  ;;  %v2574_v35 = vpack.c.bf16 %v1204_v34, %v1203_v22 }
 0x126   :  { %v512_v14 = vsel %vm448_vm0, %v414_v12, %v480_v17  ;;  %2561 = vmatpush3.bf16.msra.mxu0 %v2558_v21  ;;  %v2578_v39 = vpack.c.bf16 %v1206_v37, %v1205_v36  ;;  %v2582_v43 = vpack.c.bf16 %v1208_v42, %v1207_v40  ;;  %v2586_v45 = vpack.c.bf16 %v1210_v31, %v1209_v44 }
 0x127   :  { %2231 = vmatmul.mubr.f32.gmra.mrb[32].mxu1 %v498_v41  ;;  %2563 = vmatprep.subr.bf16.mxu1 %v2562_v26 }
 0x128   :  { %2233 = vmatprep.mubr.f32.mxu1 %v499_v47  ;;  %2565 = vmatpush3.bf16.msra.mxu1 %v2562_v26  ;;  %v2590_v47 = vpack.c.bf16 %v1212_v20, %v1211_v46 }
 0x129   :  { %2567 = vmatprep.subr.bf16.mxu1 %v2566_v29 }
 0x12b   :  { %2234 = vmatmul.mubr.f32.gmra.mrb[34].mxu1 %v500_v57 }
 0x12c   :  { %2236 = vmatprep.mubr.f32.mxu1 %v501_v53  ;;  %2569 = vmatpush3.bf16.msra.mxu1 %v2566_v29 }
 0x12d   :  { %2571 = vmatprep.subr.bf16.mxu1 %v2570_v33 }
 0x12f   :  { %2237 = vmatmul.mubr.f32.gmra.mrb[36].mxu1 %v502_v63 }
 0x130   :  { %2239 = vmatprep.mubr.f32.mxu1 %v503_v51  ;;  %2573 = vmatpush3.bf16.msra.mxu1 %v2570_v33 }
 0x131   :  { %2575 = vmatprep.subr.bf16.mxu1 %v2574_v35 }
 0x133   :  { %2240 = vmatmul.mubr.f32.gmra.mrb[38].mxu1 %v504_v3 }
 0x134   :  { %2242 = vmatprep.mubr.f32.mxu1 %v505_v61  ;;  %2577 = vmatpush3.bf16.msra.mxu1 %v2574_v35 }
 0x135   :  { %2579 = vmatprep.subr.bf16.mxu1 %v2578_v39 }
 0x137   :  { %2243 = vmatmul.mubr.f32.gmra.mrb[40].mxu1 %v506_v9 }
 0x138   :  { %2245 = vmatprep.mubr.f32.mxu1 %v507_v5  ;;  %2581 = vmatpush3.bf16.msra.mxu1 %v2578_v39 }
 0x139   :  { %2583 = vmatprep.subr.bf16.mxu1 %v2582_v43 }
 0x13b   :  { %2246 = vmatmul.mubr.f32.gmra.mrb[42].mxu1 %v508_v13 }
 0x13c   :  { %2248 = vmatprep.mubr.f32.mxu1 %v509_v10  ;;  %2585 = vmatpush3.bf16.msra.mxu1 %v2582_v43 }
 0x13d   :  { %2587 = vmatprep.subr.bf16.mxu1 %v2586_v45 }
 0x13f   :  { %2249 = vmatmul.mubr.f32.gmra.mrb[44].mxu1 %v510_v18 }
 0x140   :  { %2251 = vmatprep.mubr.f32.mxu1 %v511_v15  ;;  %2589 = vmatpush3.bf16.msra.mxu1 %v2586_v45 }
 0x141   :  { %2591 = vmatprep.subr.bf16.mxu1 %v2590_v47 }
 0x143   :  { %2252 = vmatmul.mubr.f32.gmra.mrb[46].mxu1 %v512_v14 }
 0x144   :  { %2593 = vmatpush3.bf16.msra.mxu1 %v2590_v47 }
 0x1da   :  { %v2208_v50 = vpop.f32.mrb[16].mxu1 }
 0x1db   :  { %v606_v52 = vadd.f32 %v2208_v50, %v3071_v49  ;;  %v600_v41 = vpop.f32.mrb[17].mxu1 }
 0x1dc   :  { %v601_v28 = vadd.f32 %v3071_v49, %v600_v41 }
 0x1dd   :  { %v792_v53 = vmul.f32 0.1, %v606_v52  ;;  %vm760_vm1 = vcmp.gt.f32.partialorder %v606_v52, 0.0 }
 0x1de   :  { %v791_v54 = vmul.f32 0.1, %v601_v28  ;;  %v2211_v55 = vpop.f32.mrb[18].mxu1  ;;  %vm759_vm2 = vcmp.gt.f32.partialorder %v601_v28, 0.0 }
 0x1df   :  { %v616_v56 = vadd.f32 %v2211_v55, %v3071_v49  ;;  %v610_v57 = vpop.f32.mrb[19].mxu1  ;;  %v824_v59 = vsel %vm760_vm1, %v606_v52, %v792_v53 }
 0x1e0   :  { %v611_v38 = vadd.f32 %v3071_v49, %v610_v57  ;;  %v823_v51 = vsel %vm759_vm2, %v601_v28, %v791_v54 }
 0x1e1   :  { %v794_v60 = vmul.f32 0.1, %v616_v56  ;;  %2286 = vmatprep.mubr.f32.mxu0 %v823_v51  ;;  %vm762_vm4 = vcmp.gt.f32.partialorder %v616_v56, 0.0 }
 0x1e2   :  { %v793_v62 = vmul.f32 0.1, %v611_v38  ;;  %v2214_v63 = vpop.f32.mrb[20].mxu1  ;;  %2287 = vmatmul.mubr.f32.vlgmr.msra.gmra.mrb[16].mxu0 %v824_v59  ;;  %vm761_vm3 = vcmp.gt.f32.partialorder %v611_v38, 0.0 }
 0x1e3   :  { %v626_v48 = vadd.f32 %v2214_v63, %v3071_v49  ;;  %v620_v61 = vpop.f32.mrb[21].mxu1  ;;  %v826_v3 = vsel %vm762_vm4, %v616_v56, %v794_v60 }
 0x1e4   :  { %v621_v0 = vadd.f32 %v3071_v49, %v620_v61  ;;  %v825_v1 = vsel %vm761_vm3, %v611_v38, %v793_v62 }
 0x1e5   :  { %v796_v2 = vmul.f32 0.1, %v626_v48  ;;  %2289 = vmatprep.mubr.f32.mxu0 %v825_v1  ;;  %vm764_vm6 = vcmp.gt.f32.partialorder %v626_v48, 0.0 }
 0x1e6   :  { %v795_v58 = vmul.f32 0.1, %v621_v0  ;;  %v2217_v5 = vpop.f32.mrb[22].mxu1  ;;  %2290 = vmatmul.mubr.f32.gmra.mrb[18].mxu0 %v826_v3  ;;  %vm763_vm5 = vcmp.gt.f32.partialorder %v621_v0, 0.0 }
 0x1e7   :  { %v636_v6 = vadd.f32 %v2217_v5, %v3071_v49  ;;  %v630_v7 = vpop.f32.mrb[23].mxu1  ;;  %v828_v10 = vsel %vm764_vm6, %v626_v48, %v796_v2 }
 0x1e8   :  { %v631_v8 = vadd.f32 %v3071_v49, %v630_v7  ;;  %v827_v9 = vsel %vm763_vm5, %v621_v0, %v795_v58 }
 0x1e9   :  { %v798_v4 = vmul.f32 0.1, %v636_v6  ;;  %2292 = vmatprep.mubr.f32.mxu0 %v827_v9  ;;  %vm766_vm8 = vcmp.gt.f32.partialorder %v636_v6, 0.0 }
 0x1ea   :  { %v797_v11 = vmul.f32 0.1, %v631_v8  ;;  %v2220_v12 = vpop.f32.mrb[24].mxu1  ;;  %2293 = vmatmul.mubr.f32.gmra.mrb[20].mxu0 %v828_v10  ;;  %vm765_vm7 = vcmp.gt.f32.partialorder %v631_v8, 0.0 }
 0x1eb   :  { %v646_v13 = vadd.f32 %v2220_v12, %v3071_v49  ;;  %v640_v15 = vpop.f32.mrb[25].mxu1  ;;  %v830_v19 = vsel %vm766_vm8, %v636_v6, %v798_v4 }
 0x1ec   :  { %v641_v17 = vadd.f32 %v3071_v49, %v640_v15  ;;  %v829_v18 = vsel %vm765_vm7, %v631_v8, %v797_v11 }
 0x1ed   :  { %v800_v14 = vmul.f32 0.1, %v646_v13  ;;  %2295 = vmatprep.mubr.f32.mxu0 %v829_v18  ;;  %vm768_vm10 = vcmp.gt.f32.partialorder %v646_v13, 0.0 }
 0x1ee   :  { %v799_v16 = vmul.f32 0.1, %v641_v17  ;;  %v2223_v21 = vpop.f32.mrb[26].mxu1  ;;  %2296 = vmatmul.mubr.f32.gmra.mrb[22].mxu0 %v830_v19  ;;  %vm767_vm9 = vcmp.gt.f32.partialorder %v641_v17, 0.0 }
 0x1ef   :  { %v656_v23 = vadd.f32 %v2223_v21, %v3071_v49  ;;  %v650_v24 = vpop.f32.mrb[27].mxu1  ;;  %v832_v29 = vsel %vm768_vm10, %v646_v13, %v800_v14 }
 0x1f0   :  { %v651_v25 = vadd.f32 %v3071_v49, %v650_v24  ;;  %v831_v26 = vsel %vm767_vm9, %v641_v17, %v799_v16 }
 0x1f1   :  { %v802_v27 = vmul.f32 0.1, %v656_v23  ;;  %2298 = vmatprep.mubr.f32.mxu0 %v831_v26  ;;  %vm770_vm12 = vcmp.gt.f32.partialorder %v656_v23, 0.0 }
 0x1f2   :  { %v801_v30 = vmul.f32 0.1, %v651_v25  ;;  %v2226_v32 = vpop.f32.mrb[28].mxu1  ;;  %2299 = vmatmul.mubr.f32.gmra.mrb[24].mxu0 %v832_v29  ;;  %vm769_vm11 = vcmp.gt.f32.partialorder %v651_v25, 0.0 }
 0x1f3   :  { %v666_v33 = vadd.f32 %v2226_v32, %v3071_v49  ;;  %v660_v22 = vpop.f32.mrb[29].mxu1  ;;  %v834_v37 = vsel %vm770_vm12, %v656_v23, %v802_v27 }
 0x1f4   :  { %v661_v34 = vadd.f32 %v3071_v49, %v660_v22  ;;  %v833_v35 = vsel %vm769_vm11, %v651_v25, %v801_v30 }
 0x1f5   :  { %v804_v36 = vmul.f32 0.1, %v666_v33  ;;  %2301 = vmatprep.mubr.f32.mxu0 %v833_v35  ;;  %vm772_vm14 = vcmp.gt.f32.partialorder %v666_v33, 0.0 }
 0x1f6   :  { %v803_v39 = vmul.f32 0.1, %v661_v34  ;;  %v2229_v40 = vpop.f32.mrb[30].mxu1  ;;  %2302 = vmatmul.mubr.f32.gmra.mrb[26].mxu0 %v834_v37  ;;  %vm771_vm13 = vcmp.gt.f32.partialorder %v661_v34, 0.0 }
 0x1f7   :  { %v676_v42 = vadd.f32 %v2229_v40, %v3071_v49  ;;  %v670_v43 = vpop.f32.mrb[31].mxu1  ;;  %v836_v46 = vsel %vm772_vm14, %v666_v33, %v804_v36 }
 0x1f8   :  { %v671_v44 = vadd.f32 %v3071_v49, %v670_v43  ;;  %v835_v31 = vsel %vm771_vm13, %v661_v34, %v803_v39 }
 0x1f9   :  { %v806_v45 = vmul.f32 0.1, %v676_v42  ;;  %2304 = vmatprep.mubr.f32.mxu0 %v835_v31  ;;  %vm774_vm0 = vcmp.gt.f32.partialorder %v676_v42, 0.0 }
 0x1fa   :  { %v805_v20 = vmul.f32 0.1, %v671_v44  ;;  %v2232_v47 = vpop.f32.mrb[32].mxu1  ;;  %2305 = vmatmul.mubr.f32.gmra.mrb[28].mxu0 %v836_v46  ;;  %vm773_vm15 = vcmp.gt.f32.partialorder %v671_v44, 0.0 }
 0x1fb   :  { %v686_v50 = vadd.f32 %v2232_v47, %v3071_v49  ;;  %v680_v52 = vpop.f32.mrb[33].mxu1  ;;  %v838_v54 = vsel %vm774_vm0, %v676_v42, %v806_v45 }
 0x1fc   :  { %v681_v41 = vadd.f32 %v3071_v49, %v680_v52  ;;  %v837_v28 = vsel %vm773_vm15, %v671_v44, %v805_v20 }
 0x1fd   :  { %v808_v53 = vmul.f32 0.1, %v686_v50  ;;  %2307 = vmatprep.mubr.f32.mxu0 %v837_v28  ;;  %vm776_vm2 = vcmp.gt.f32.partialorder %v686_v50, 0.0  ;;  %v1572_v28 = vld [vmem:[#allocation4 + $0x8] sm:$0xff] }
 0x1fe   :  { %v807_v55 = vmul.f32 0.1, %v681_v41  ;;  %v2235_v56 = vpop.f32.mrb[34].mxu1  ;;  %2308 = vmatmul.mubr.f32.gmra.mrb[30].mxu0 %v838_v54  ;;  %vm775_vm1 = vcmp.gt.f32.partialorder %v681_v41, 0.0 }
 0x1ff   :  { %v696_v57 = vadd.f32 %v2235_v56, %v3071_v49  ;;  %v690_v38 = vpop.f32.mrb[35].mxu1  ;;  %v840_v62 = vsel %vm776_vm2, %v686_v50, %v808_v53  ;;  %v1573_v53 = vld [vmem:[#allocation4 + $0x10] sm:$0xff] }
 0x200   :  { %v691_v51 = vadd.f32 %v3071_v49, %v690_v38  ;;  %v839_v59 = vsel %vm775_vm1, %v681_v41, %v807_v55  ;;  %v1571_v41 = vld [vmem:[#allocation4] sm:$0xff]  ;;  %v1574_v55 = vld [vmem:[#allocation4 + $0x18] sm:$0xff] }
 0x201   :  { %v810_v60 = vmul.f32 0.1, %v696_v57  ;;  %2310 = vmatprep.mubr.f32.mxu0 %v839_v59  ;;  %vm778_vm4 = vcmp.gt.f32.partialorder %v696_v57, 0.0  ;;  %v2594_v54 = vpack.c.bf16 %v1572_v28, %v1571_v41  ;;  %v2598_v56 = vpack.c.bf16 %v1574_v55, %v1573_v53  ;;  %v1578_v59 = vld [vmem:[#allocation4 + $0x38] sm:$0xff] }
 0x202   :  { %v809_v63 = vmul.f32 0.1, %v691_v51  ;;  %v2238_v48 = vpop.f32.mrb[36].mxu1  ;;  %2311 = vmatmul.mubr.f32.gmra.mrb[32].mxu0 %v840_v62  ;;  %vm777_vm3 = vcmp.gt.f32.partialorder %v691_v51, 0.0  ;;  %v1579_v62 = vld [vmem:[#allocation4 + $0x40] sm:$0xff] }
 0x203   :  { %v706_v61 = vadd.f32 %v2238_v48, %v3071_v49  ;;  %v700_v0 = vpop.f32.mrb[37].mxu1  ;;  %v842_v58 = vsel %vm778_vm4, %v696_v57, %v810_v60  ;;  %v1575_v57 = vld [vmem:[#allocation4 + $0x20] sm:$0xff]  ;;  %2595 = vmatprep.subr.bf16.mxu0 %v2594_v54 }
 0x204   :  { %v701_v1 = vadd.f32 %v3071_v49, %v700_v0  ;;  %v841_v2 = vsel %vm777_vm3, %v691_v51, %v809_v63  ;;  %2597 = vmatpush3.bf16.msra.mxu0 %v2594_v54  ;;  %v1577_v51 = vld [vmem:[#allocation4 + $0x30] sm:$0xff]  ;;  %v1580_v63 = vld [vmem:[#allocation4 + $0x48] sm:$0xff]  ;;  %v1582_v0 = vld [vmem:[#allocation4 + $0x58] sm:$0xff] }
 0x205   :  { %v812_v3 = vmul.f32 0.1, %v706_v61  ;;  %2313 = vmatprep.mubr.f32.mxu0 %v841_v2  ;;  %vm780_vm6 = vcmp.gt.f32.partialorder %v706_v61, 0.0  ;;  %2599 = vmatprep.subr.bf16.mxu0 %v2598_v56  ;;  %v2606_v60 = vpack.c.bf16 %v1578_v59, %v1577_v51  ;;  %v2610_v48 = vpack.c.bf16 %v1580_v63, %v1579_v62  ;;  %v1583_v2 = vld [vmem:[#allocation4 + $0x60] sm:$0xff] }
 0x206   :  { %v811_v5 = vmul.f32 0.1, %v701_v1  ;;  %v2241_v6 = vpop.f32.mrb[38].mxu1  ;;  %2314 = vmatmul.mubr.f32.gmra.mrb[34].mxu0 %v842_v58  ;;  %vm779_vm5 = vcmp.gt.f32.partialorder %v701_v1, 0.0 }
 0x207   :  { %v716_v7 = vadd.f32 %v2241_v6, %v3071_v49  ;;  %v710_v8 = vpop.f32.mrb[39].mxu1  ;;  %v844_v11 = vsel %vm780_vm6, %v706_v61, %v812_v3  ;;  %v1581_v61 = vld [vmem:[#allocation4 + $0x50] sm:$0xff]  ;;  %v1584_v3 = vld [vmem:[#allocation4 + $0x68] sm:$0xff]  ;;  %v1586_v6 = vld [vmem:[#allocation4 + $0x78] sm:$0xff] }
 0x208   :  { %v711_v9 = vadd.f32 %v3071_v49, %v710_v8  ;;  %v843_v4 = vsel %vm779_vm5, %v701_v1, %v811_v5  ;;  %2601 = vmatpush3.bf16.msra.mxu0 %v2598_v56  ;;  %v2614_v1 = vpack.c.bf16 %v1582_v0, %v1581_v61  ;;  %v2618_v58 = vpack.c.bf16 %v1584_v3, %v1583_v2  ;;  %v1585_v5 = vld [vmem:[#allocation4 + $0x70] sm:$0xff]  ;;  %v3108_v8 = vld [vmem:[%s3414_s6 + $0x2] ss:$0 sm:$0xff] }
 0x209   :  { %v814_v10 = vmul.f32 0.1, %v716_v7  ;;  %2316 = vmatprep.mubr.f32.mxu0 %v843_v4  ;;  %vm782_vm8 = vcmp.gt.f32.partialorder %v716_v7, 0.0 }
 0x20a   :  { %v813_v12 = vmul.f32 0.1, %v711_v9  ;;  %v2244_v13 = vpop.f32.mrb[40].mxu1  ;;  %2317 = vmatmul.mubr.f32.gmra.mrb[36].mxu0 %v844_v11  ;;  %vm781_vm7 = vcmp.gt.f32.partialorder %v711_v9, 0.0 }
 0x20b   :  { %v726_v15 = vadd.f32 %v2244_v13, %v3071_v49  ;;  %v720_v17 = vpop.f32.mrb[41].mxu1  ;;  %v846_v16 = vsel %vm782_vm8, %v716_v7, %v814_v10  ;;  %v2622_v7 = vpack.c.bf16 %v1586_v6, %v1585_v5 }
 0x20c   :  { %v721_v18 = vadd.f32 %v3071_v49, %v720_v17  ;;  %v845_v14 = vsel %vm781_vm7, %v711_v9, %v813_v12 }
 0x20d   :  { %v816_v19 = vmul.f32 0.1, %v726_v15  ;;  %2319 = vmatprep.mubr.f32.mxu0 %v845_v14  ;;  %vm784_vm10 = vcmp.gt.f32.partialorder %v726_v15, 0.0 }
 0x20e   :  { %v815_v21 = vmul.f32 0.1, %v721_v18  ;;  %v2247_v23 = vpop.f32.mrb[42].mxu1  ;;  %2320 = vmatmul.mubr.f32.gmra.mrb[38].mxu0 %v846_v16  ;;  %vm783_vm9 = vcmp.gt.f32.partialorder %v721_v18, 0.0 }
 0x20f   :  { %v736_v24 = vadd.f32 %v2247_v23, %v3071_v49  ;;  %v730_v25 = vpop.f32.mrb[43].mxu1  ;;  %v848_v30 = vsel %vm784_vm10, %v726_v15, %v816_v19 }
 0x210   :  { %v731_v26 = vadd.f32 %v3071_v49, %v730_v25  ;;  %v847_v27 = vsel %vm783_vm9, %v721_v18, %v815_v21 }
 0x211   :  { %v818_v29 = vmul.f32 0.1, %v736_v24  ;;  %2322 = vmatprep.mubr.f32.mxu0 %v847_v27  ;;  %vm786_vm12 = vcmp.gt.f32.partialorder %v736_v24, 0.0 }
 0x212   :  { %v817_v32 = vmul.f32 0.1, %v731_v26  ;;  %v2250_v33 = vpop.f32.mrb[44].mxu1  ;;  %2323 = vmatmul.mubr.f32.gmra.mrb[40].mxu0 %v848_v30  ;;  %vm785_vm11 = vcmp.gt.f32.partialorder %v731_v26, 0.0 }
 0x213   :  { %v746_v22 = vadd.f32 %v2250_v33, %v3071_v49  ;;  %v740_v34 = vpop.f32.mrb[45].mxu1  ;;  %v850_v39 = vsel %vm786_vm12, %v736_v24, %v818_v29 }
 0x214   :  { %v741_v35 = vadd.f32 %v3071_v49, %v740_v34  ;;  %v849_v36 = vsel %vm785_vm11, %v731_v26, %v817_v32 }
 0x215   :  { %v820_v37 = vmul.f32 0.1, %v746_v22  ;;  %2325 = vmatprep.mubr.f32.mxu0 %v849_v36  ;;  %vm788_vm14 = vcmp.gt.f32.partialorder %v746_v22, 0.0 }
 0x216   :  { %v819_v40 = vmul.f32 0.1, %v741_v35  ;;  %v2253_v42 = vpop.f32.mrb[46].mxu1  ;;  %2326 = vmatmul.mubr.f32.gmra.mrb[42].mxu0 %v850_v39  ;;  %vm787_vm13 = vcmp.gt.f32.partialorder %v741_v35, 0.0 }
 0x217   :  { %v756_v43 = vadd.f32 %v2253_v42, %v3071_v49  ;;  %v750_v44 = vpop.f32.mrb[47].mxu1  ;;  %v852_v20 = vsel %vm788_vm14, %v746_v22, %v820_v37 }
 0x218   :  { %v751_v31 = vadd.f32 %v3071_v49, %v750_v44  ;;  %v851_v45 = vsel %vm787_vm13, %v741_v35, %v819_v40  ;;  %v1576_v49 = vld [vmem:[#allocation4 + $0x28] sm:$0xff] }
 0x219   :  { %v822_v46 = vmul.f32 0.1, %v756_v43  ;;  %2328 = vmatprep.mubr.f32.mxu0 %v851_v45  ;;  %vm790_vm0 = vcmp.gt.f32.partialorder %v756_v43, 0.0  ;;  %v2602_v38 = vpack.c.bf16 %v1576_v49, %v1575_v57 }
 0x21a   :  { %v821_v47 = vmul.f32 0.1, %v751_v31  ;;  %2329 = vmatmul.mubr.f32.gmra.mrb[44].mxu0 %v852_v20  ;;  %vm789_vm15 = vcmp.gt.f32.partialorder %v751_v31, 0.0 }
 0x21b   :  { %v854_v52 = vsel %vm790_vm0, %v756_v43, %v822_v46  ;;  %2603 = vmatprep.subr.bf16.mxu0 %v2602_v38 }
 0x21c   :  { %v853_v50 = vsel %vm789_vm15, %v751_v31, %v821_v47  ;;  %2605 = vmatpush3.bf16.msra.mxu0 %v2602_v38 }
 0x21d   :  { %2331 = vmatprep.mubr.f32.mxu0 %v853_v50  ;;  %2607 = vmatprep.subr.bf16.mxu0 %v2606_v60 }
 0x21e   :  { %2332 = vmatmul.mubr.f32.gmra.mrb[46].mxu0 %v854_v52 }
 0x220   :  { %2609 = vmatpush3.bf16.msra.mxu0 %v2606_v60 }
 0x221   :  { %2611 = vmatprep.subr.bf16.mxu0 %v2610_v48 }
 0x224   :  { %2613 = vmatpush3.bf16.msra.mxu0 %v2610_v48 }
 0x225   :  { %2615 = vmatprep.subr.bf16.mxu0 %v2614_v1 }
 0x228   :  { %2617 = vmatpush3.bf16.msra.mxu0 %v2614_v1 }
 0x229   :  { %2619 = vmatprep.subr.bf16.mxu0 %v2618_v58 }
 0x22c   :  { %2621 = vmatpush3.bf16.msra.mxu0 %v2618_v58 }
 0x22d   :  { %2623 = vmatprep.subr.bf16.mxu0 %v2622_v7 }
 0x230   :  { %2625 = vmatpush3.bf16.msra.mxu0 %v2622_v7 }
 0x2b5   :  { %v2288_v9 = vpop.f32.mrb[16].mxu0 }
 0x2b6   :  { %v948_v4 = vadd.f32 %v2288_v9, %v3108_v8  ;;  %v942_v10 = vpop.f32.mrb[17].mxu0 }
 0x2b7   :  { %v943_v11 = vadd.f32 %v3108_v8, %v942_v10 }
 0x2b8   :  { %v1134_v12 = vmul.f32 0.1, %v948_v4  ;;  %vm1102_vm1 = vcmp.gt.f32.partialorder %v948_v4, 0.0 }
 0x2b9   :  { %v1133_v13 = vmul.f32 0.1, %v943_v11  ;;  %v2291_v15 = vpop.f32.mrb[18].mxu0  ;;  %vm1101_vm2 = vcmp.gt.f32.partialorder %v943_v11, 0.0 }
 0x2ba   :  { %v958_v17 = vadd.f32 %v2291_v15, %v3108_v8  ;;  %v952_v18 = vpop.f32.mrb[19].mxu0  ;;  %v1166_v16 = vsel %vm1102_vm1, %v948_v4, %v1134_v12 }
 0x2bb   :  { %v953_v14 = vadd.f32 %v3108_v8, %v952_v18  ;;  %v1165_v19 = vsel %vm1101_vm2, %v943_v11, %v1133_v13 }
 0x2bc   :  { %v1136_v21 = vmul.f32 0.1, %v958_v17  ;;  %2366 = vmatprep.mubr.f32.mxu1 %v1165_v19  ;;  %vm1104_vm4 = vcmp.gt.f32.partialorder %v958_v17, 0.0 }
 0x2bd   :  { %v1135_v23 = vmul.f32 0.1, %v953_v14  ;;  %v2294_v24 = vpop.f32.mrb[20].mxu0  ;;  %2367 = vmatmul.mubr.f32.vlgmr.msra.gmra.mrb[48].mxu1 %v1166_v16  ;;  %vm1103_vm3 = vcmp.gt.f32.partialorder %v953_v14, 0.0 }
 0x2be   :  { %v968_v25 = vadd.f32 %v2294_v24, %v3108_v8  ;;  %v962_v26 = vpop.f32.mrb[21].mxu0  ;;  %v1168_v32 = vsel %vm1104_vm4, %v958_v17, %v1136_v21 }
 0x2bf   :  { %v963_v27 = vadd.f32 %v3108_v8, %v962_v26  ;;  %v1167_v29 = vsel %vm1103_vm3, %v953_v14, %v1135_v23 }
 0x2c0   :  { %v1138_v30 = vmul.f32 0.1, %v968_v25  ;;  %2369 = vmatprep.mubr.f32.mxu1 %v1167_v29  ;;  %vm1106_vm6 = vcmp.gt.f32.partialorder %v968_v25, 0.0 }
 0x2c1   :  { %v1137_v33 = vmul.f32 0.1, %v963_v27  ;;  %v2297_v22 = vpop.f32.mrb[22].mxu0  ;;  %2370 = vmatmul.mubr.f32.gmra.mrb[50].mxu1 %v1168_v32  ;;  %vm1105_vm5 = vcmp.gt.f32.partialorder %v963_v27, 0.0 }
 0x2c2   :  { %v978_v34 = vadd.f32 %v2297_v22, %v3108_v8  ;;  %v972_v35 = vpop.f32.mrb[23].mxu0  ;;  %v1170_v40 = vsel %vm1106_vm6, %v968_v25, %v1138_v30 }
 0x2c3   :  { %v973_v36 = vadd.f32 %v3108_v8, %v972_v35  ;;  %v1169_v37 = vsel %vm1105_vm5, %v963_v27, %v1137_v33 }
 0x2c4   :  { %v1140_v39 = vmul.f32 0.1, %v978_v34  ;;  %2372 = vmatprep.mubr.f32.mxu1 %v1169_v37  ;;  %vm1108_vm8 = vcmp.gt.f32.partialorder %v978_v34, 0.0 }
 0x2c5   :  { %v1139_v42 = vmul.f32 0.1, %v973_v36  ;;  %v2300_v43 = vpop.f32.mrb[24].mxu0  ;;  %2373 = vmatmul.mubr.f32.gmra.mrb[52].mxu1 %v1170_v40  ;;  %vm1107_vm7 = vcmp.gt.f32.partialorder %v973_v36, 0.0 }
 0x2c6   :  { %v988_v44 = vadd.f32 %v2300_v43, %v3108_v8  ;;  %v982_v31 = vpop.f32.mrb[25].mxu0  ;;  %v1172_v47 = vsel %vm1108_vm8, %v978_v34, %v1140_v39 }
 0x2c7   :  { %v983_v45 = vadd.f32 %v3108_v8, %v982_v31  ;;  %v1171_v46 = vsel %vm1107_vm7, %v973_v36, %v1139_v42 }
 0x2c8   :  { %v1142_v20 = vmul.f32 0.1, %v988_v44  ;;  %2375 = vmatprep.mubr.f32.mxu1 %v1171_v46  ;;  %vm1110_vm10 = vcmp.gt.f32.partialorder %v988_v44, 0.0 }
 0x2c9   :  { %v1141_v50 = vmul.f32 0.1, %v983_v45  ;;  %v2303_v52 = vpop.f32.mrb[26].mxu0  ;;  %2376 = vmatmul.mubr.f32.gmra.mrb[54].mxu1 %v1172_v47  ;;  %vm1109_vm9 = vcmp.gt.f32.partialorder %v983_v45, 0.0 }
 0x2ca   :  { %v998_v41 = vadd.f32 %v2303_v52, %v3108_v8  ;;  %v992_v28 = vpop.f32.mrb[27].mxu0  ;;  %v1174_v56 = vsel %vm1110_vm10, %v988_v44, %v1142_v20 }
 0x2cb   :  { %v993_v53 = vadd.f32 %v3108_v8, %v992_v28  ;;  %v1173_v54 = vsel %vm1109_vm9, %v983_v45, %v1141_v50 }
 0x2cc   :  { %v1144_v55 = vmul.f32 0.1, %v998_v41  ;;  %2378 = vmatprep.mubr.f32.mxu1 %v1173_v54  ;;  %vm1112_vm12 = vcmp.gt.f32.partialorder %v998_v41, 0.0 }
 0x2cd   :  { %v1143_v57 = vmul.f32 0.1, %v993_v53  ;;  %v2306_v49 = vpop.f32.mrb[28].mxu0  ;;  %2379 = vmatmul.mubr.f32.gmra.mrb[56].mxu1 %v1174_v56  ;;  %vm1111_vm11 = vcmp.gt.f32.partialorder %v993_v53, 0.0 }
 0x2ce   :  { %v1008_v38 = vadd.f32 %v2306_v49, %v3108_v8  ;;  %v1002_v51 = vpop.f32.mrb[29].mxu0  ;;  %v1176_v63 = vsel %vm1112_vm12, %v998_v41, %v1144_v55 }
 0x2cf   :  { %v1003_v59 = vadd.f32 %v3108_v8, %v1002_v51  ;;  %v1175_v60 = vsel %vm1111_vm11, %v993_v53, %v1143_v57 }
 0x2d0   :  { %v1146_v62 = vmul.f32 0.1, %v1008_v38  ;;  %2381 = vmatprep.mubr.f32.mxu1 %v1175_v60  ;;  %vm1114_vm14 = vcmp.gt.f32.partialorder %v1008_v38, 0.0 }
 0x2d1   :  { %v1145_v48 = vmul.f32 0.1, %v1003_v59  ;;  %v2309_v61 = vpop.f32.mrb[30].mxu0  ;;  %2382 = vmatmul.mubr.f32.gmra.mrb[58].mxu1 %v1176_v63  ;;  %vm1113_vm13 = vcmp.gt.f32.partialorder %v1003_v59, 0.0 }
 0x2d2   :  { %v1018_v0 = vadd.f32 %v2309_v61, %v3108_v8  ;;  %v1012_v1 = vpop.f32.mrb[31].mxu0  ;;  %v1178_v5 = vsel %vm1114_vm14, %v1008_v38, %v1146_v62 }
 0x2d3   :  { %v1013_v2 = vadd.f32 %v3108_v8, %v1012_v1  ;;  %v1177_v3 = vsel %vm1113_vm13, %v1003_v59, %v1145_v48 }
 0x2d4   :  { %v1148_v58 = vmul.f32 0.1, %v1018_v0  ;;  %2384 = vmatprep.mubr.f32.mxu1 %v1177_v3  ;;  %vm1116_vm0 = vcmp.gt.f32.partialorder %v1018_v0, 0.0 }
 0x2d5   :  { %v1147_v6 = vmul.f32 0.1, %v1013_v2  ;;  %v2312_v7 = vpop.f32.mrb[32].mxu0  ;;  %2385 = vmatmul.mubr.f32.gmra.mrb[60].mxu1 %v1178_v5  ;;  %vm1115_vm15 = vcmp.gt.f32.partialorder %v1013_v2, 0.0 }
 0x2d6   :  { %v1028_v9 = vadd.f32 %v2312_v7, %v3108_v8  ;;  %v1022_v4 = vpop.f32.mrb[33].mxu0  ;;  %v1180_v13 = vsel %vm1116_vm0, %v1018_v0, %v1148_v58 }
 0x2d7   :  { %v1023_v10 = vadd.f32 %v3108_v8, %v1022_v4  ;;  %v1179_v11 = vsel %vm1115_vm15, %v1013_v2, %v1147_v6 }
 0x2d8   :  { %v1150_v12 = vmul.f32 0.1, %v1028_v9  ;;  %2387 = vmatprep.mubr.f32.mxu1 %v1179_v11  ;;  %vm1118_vm2 = vcmp.gt.f32.partialorder %v1028_v9, 0.0 }
 0x2d9   :  { %v1149_v15 = vmul.f32 0.1, %v1023_v10  ;;  %v2315_v17 = vpop.f32.mrb[34].mxu0  ;;  %2388 = vmatmul.mubr.f32.gmra.mrb[62].mxu1 %v1180_v13  ;;  %vm1117_vm1 = vcmp.gt.f32.partialorder %v1023_v10, 0.0 }
 0x2da   :  { %v1038_v18 = vadd.f32 %v2315_v17, %v3108_v8  ;;  %v1032_v14 = vpop.f32.mrb[35].mxu0  ;;  %v1182_v23 = vsel %vm1118_vm2, %v1028_v9, %v1150_v12 }
 0x2db   :  { %v1033_v19 = vadd.f32 %v3108_v8, %v1032_v14  ;;  %v1181_v16 = vsel %vm1117_vm1, %v1023_v10, %v1149_v15  ;;  %v3145_v10 = vld [vmem:[%s3414_s6 + $0x3] ss:$0 sm:$0xff] }
 0x2dc   :  { %v1152_v21 = vmul.f32 0.1, %v1038_v18  ;;  %2390 = vmatprep.mubr.f32.mxu1 %v1181_v16  ;;  %vm1120_vm4 = vcmp.gt.f32.partialorder %v1038_v18, 0.0 }
 0x2dd   :  { %v1151_v24 = vmul.f32 0.1, %v1033_v19  ;;  %v2318_v25 = vpop.f32.mrb[36].mxu0  ;;  %2391 = vmatmul.mubr.f32.gmra.mrb[64].mxu1 %v1182_v23  ;;  %vm1119_vm3 = vcmp.gt.f32.partialorder %v1033_v19, 0.0 }
 0x2de   :  { %v1048_v26 = vadd.f32 %v2318_v25, %v3108_v8  ;;  %v1042_v27 = vpop.f32.mrb[37].mxu0  ;;  %v1184_v33 = vsel %vm1120_vm4, %v1038_v18, %v1152_v21 }
 0x2df   :  { %v1043_v29 = vadd.f32 %v3108_v8, %v1042_v27  ;;  %v1183_v30 = vsel %vm1119_vm3, %v1033_v19, %v1151_v24 }
 0x2e0   :  { %v1154_v32 = vmul.f32 0.1, %v1048_v26  ;;  %2393 = vmatprep.mubr.f32.mxu1 %v1183_v30  ;;  %vm1122_vm6 = vcmp.gt.f32.partialorder %v1048_v26, 0.0 }
 0x2e1   :  { %v1153_v22 = vmul.f32 0.1, %v1043_v29  ;;  %v2321_v34 = vpop.f32.mrb[38].mxu0  ;;  %2394 = vmatmul.mubr.f32.gmra.mrb[66].mxu1 %v1184_v33  ;;  %vm1121_vm5 = vcmp.gt.f32.partialorder %v1043_v29, 0.0 }
 0x2e2   :  { %v1058_v35 = vadd.f32 %v2321_v34, %v3108_v8  ;;  %v1052_v36 = vpop.f32.mrb[39].mxu0  ;;  %v1186_v42 = vsel %vm1122_vm6, %v1048_v26, %v1154_v32 }
 0x2e3   :  { %v1053_v37 = vadd.f32 %v3108_v8, %v1052_v36  ;;  %v1185_v39 = vsel %vm1121_vm5, %v1043_v29, %v1153_v22 }
 0x2e4   :  { %v1156_v40 = vmul.f32 0.1, %v1058_v35  ;;  %2396 = vmatprep.mubr.f32.mxu1 %v1185_v39  ;;  %vm1124_vm8 = vcmp.gt.f32.partialorder %v1058_v35, 0.0 }
 0x2e5   :  { %v1155_v43 = vmul.f32 0.1, %v1053_v37  ;;  %v2324_v44 = vpop.f32.mrb[40].mxu0  ;;  %2397 = vmatmul.mubr.f32.gmra.mrb[68].mxu1 %v1186_v42  ;;  %vm1123_vm7 = vcmp.gt.f32.partialorder %v1053_v37, 0.0 }
 0x2e6   :  { %v1068_v31 = vadd.f32 %v2324_v44, %v3108_v8  ;;  %v1062_v45 = vpop.f32.mrb[41].mxu0  ;;  %v1188_v50 = vsel %vm1124_vm8, %v1058_v35, %v1156_v40 }
 0x2e7   :  { %v1063_v46 = vadd.f32 %v3108_v8, %v1062_v45  ;;  %v1187_v20 = vsel %vm1123_vm7, %v1053_v37, %v1155_v43 }
 0x2e8   :  { %v1158_v47 = vmul.f32 0.1, %v1068_v31  ;;  %2399 = vmatprep.mubr.f32.mxu1 %v1187_v20  ;;  %vm1126_vm10 = vcmp.gt.f32.partialorder %v1068_v31, 0.0 }
 0x2e9   :  { %v1157_v52 = vmul.f32 0.1, %v1063_v46  ;;  %v2327_v41 = vpop.f32.mrb[42].mxu0  ;;  %2400 = vmatmul.mubr.f32.gmra.mrb[70].mxu1 %v1188_v50  ;;  %vm1125_vm9 = vcmp.gt.f32.partialorder %v1063_v46, 0.0 }
 0x2ea   :  { %v1078_v28 = vadd.f32 %v2327_v41, %v3108_v8  ;;  %v1072_v53 = vpop.f32.mrb[43].mxu0  ;;  %v1190_v57 = vsel %vm1126_vm10, %v1068_v31, %v1158_v47 }
 0x2eb   :  { %v1073_v54 = vadd.f32 %v3108_v8, %v1072_v53  ;;  %v1189_v55 = vsel %vm1125_vm9, %v1063_v46, %v1157_v52 }
 0x2ec   :  { %v1160_v56 = vmul.f32 0.1, %v1078_v28  ;;  %2402 = vmatprep.mubr.f32.mxu1 %v1189_v55  ;;  %vm1128_vm12 = vcmp.gt.f32.partialorder %v1078_v28, 0.0 }
 0x2ed   :  { %v1159_v49 = vmul.f32 0.1, %v1073_v54  ;;  %v2330_v38 = vpop.f32.mrb[44].mxu0  ;;  %2403 = vmatmul.mubr.f32.gmra.mrb[72].mxu1 %v1190_v57  ;;  %vm1127_vm11 = vcmp.gt.f32.partialorder %v1073_v54, 0.0 }
 0x2ee   :  { %v1088_v51 = vadd.f32 %v2330_v38, %v3108_v8  ;;  %v1082_v59 = vpop.f32.mrb[45].mxu0  ;;  %v1192_v48 = vsel %vm1128_vm12, %v1078_v28, %v1160_v56 }
 0x2ef   :  { %v1083_v60 = vadd.f32 %v3108_v8, %v1082_v59  ;;  %v1191_v62 = vsel %vm1127_vm11, %v1073_v54, %v1159_v49 }
 0x2f0   :  { %v1162_v63 = vmul.f32 0.1, %v1088_v51  ;;  %2405 = vmatprep.mubr.f32.mxu1 %v1191_v62  ;;  %vm1130_vm14 = vcmp.gt.f32.partialorder %v1088_v51, 0.0 }
 0x2f1   :  { %v1161_v61 = vmul.f32 0.1, %v1083_v60  ;;  %v2333_v0 = vpop.f32.mrb[46].mxu0  ;;  %2406 = vmatmul.mubr.f32.gmra.mrb[74].mxu1 %v1192_v48  ;;  %vm1129_vm13 = vcmp.gt.f32.partialorder %v1083_v60, 0.0 }
 0x2f2   :  { %v1098_v1 = vadd.f32 %v2333_v0, %v3108_v8  ;;  %v1092_v2 = vpop.f32.mrb[47].mxu0  ;;  %v1194_v6 = vsel %vm1130_vm14, %v1088_v51, %v1162_v63 }
 0x2f3   :  { %v1093_v3 = vadd.f32 %v3108_v8, %v1092_v2  ;;  %v1193_v58 = vsel %vm1129_vm13, %v1083_v60, %v1161_v61 }
 0x2f4   :  { %v1164_v5 = vmul.f32 0.1, %v1098_v1  ;;  %2408 = vmatprep.mubr.f32.mxu1 %v1193_v58  ;;  %vm1132_vm0 = vcmp.gt.f32.partialorder %v1098_v1, 0.0 }
 0x2f5   :  { %v1163_v7 = vmul.f32 0.1, %v1093_v3  ;;  %2409 = vmatmul.mubr.f32.gmra.mrb[76].mxu1 %v1194_v6  ;;  %vm1131_vm15 = vcmp.gt.f32.partialorder %v1093_v3, 0.0 }
 0x2f6   :  { %v1196_v4 = vsel %vm1132_vm0, %v1098_v1, %v1164_v5 }
 0x2f7   :  { %v1195_v9 = vsel %vm1131_vm15, %v1093_v3, %v1163_v7 }
 0x2f8   :  { %2411 = vmatprep.mubr.f32.mxu1 %v1195_v9 }
 0x2f9   :  { %2412 = vmatmul.mubr.f32.gmra.mrb[78].mxu1 %v1196_v4 }
 0x390   :  { %v2368_v11 = vpop.f32.mrb[48].mxu1 }
 0x391   :  { %v1290_v8 = vadd.f32 %v2368_v11, %v3145_v10  ;;  %v1284_v12 = vpop.f32.mrb[49].mxu1 }
 0x392   :  { %v1285_v13 = vadd.f32 %v3145_v10, %v1284_v12 }
 0x393   :  { %vm1444_vm1 = vcmp.gt.f32.partialorder %v1290_v8, 0.0  ;;  %v1476_v15 = vmul.f32 0.1, %v1290_v8 }
 0x394   :  { %v1475_v17 = vmul.f32 0.1, %v1285_v13  ;;  %v2371_v18 = vpop.f32.mrb[50].mxu1  ;;  %vm1443_vm2 = vcmp.gt.f32.partialorder %v1285_v13, 0.0 }
 0x395   :  { %v1508_v14 = vsel %vm1444_vm1, %v1290_v8, %v1476_v15  ;;  %v1300_v19 = vadd.f32 %v2371_v18, %v3145_v10  ;;  %v1294_v16 = vpop.f32.mrb[51].mxu1 }
 0x396   :  { %1540 = vst [vmem:[%s3416_s8 + $0x8] sm:$0xff] %v1508_v14  ;;  %v1295_v21 = vadd.f32 %v3145_v10, %v1294_v16  ;;  %v1507_v23 = vsel %vm1443_vm2, %v1285_v13, %v1475_v17 }
 0x397   :  { %v1478_v24 = vmul.f32 0.1, %v1300_v19  ;;  %1539 = vst [vmem:[%s3416_s8] sm:$0xff] %v1507_v23  ;;  %2446 = vmatprep.mubr.f32.mxu0 %v1507_v23  ;;  %vm1446_vm3 = vcmp.gt.f32.partialorder %v1300_v19, 0.0 }
 0x398   :  { %v1477_v25 = vmul.f32 0.1, %v1295_v21  ;;  %v2374_v26 = vpop.f32.mrb[52].mxu1  ;;  %2447 = vmatmul.mubr.f32.vlgmr.msra.gmra.mrb[48].mxu0 %v1508_v14  ;;  %vm1445_vm4 = vcmp.gt.f32.partialorder %v1295_v21, 0.0 }
 0x399   :  { %v1310_v27 = vadd.f32 %v2374_v26, %v3145_v10  ;;  %v1304_v29 = vpop.f32.mrb[53].mxu1  ;;  %v1510_v30 = vsel %vm1446_vm3, %v1300_v19, %v1478_v24 }
 0x39a   :  { %v1305_v32 = vadd.f32 %v3145_v10, %v1304_v29  ;;  %v1509_v33 = vsel %vm1445_vm4, %v1295_v21, %v1477_v25  ;;  %1542 = vst [vmem:[%s3416_s8 + $0x18] sm:$0xff] %v1510_v30 }
 0x39b   :  { %v1480_v22 = vmul.f32 0.1, %v1310_v27  ;;  %1541 = vst [vmem:[%s3416_s8 + $0x10] sm:$0xff] %v1509_v33  ;;  %2449 = vmatprep.mubr.f32.mxu0 %v1509_v33  ;;  %vm1448_vm5 = vcmp.gt.f32.partialorder %v1310_v27, 0.0 }
 0x39c   :  { %v1479_v34 = vmul.f32 0.1, %v1305_v32  ;;  %v2377_v35 = vpop.f32.mrb[54].mxu1  ;;  %2450 = vmatmul.mubr.f32.gmra.mrb[50].mxu0 %v1510_v30  ;;  %vm1447_vm6 = vcmp.gt.f32.partialorder %v1305_v32, 0.0 }
 0x39d   :  { %v1320_v36 = vadd.f32 %v2377_v35, %v3145_v10  ;;  %v1314_v37 = vpop.f32.mrb[55].mxu1  ;;  %v1512_v39 = vsel %vm1448_vm5, %v1310_v27, %v1480_v22 }
 0x39e   :  { %v1315_v40 = vadd.f32 %v3145_v10, %v1314_v37  ;;  %v1511_v42 = vsel %vm1447_vm6, %v1305_v32, %v1479_v34  ;;  %1544 = vst [vmem:[%s3416_s8 + $0x28] sm:$0xff] %v1512_v39 }
 0x39f   :  { %v1482_v43 = vmul.f32 0.1, %v1320_v36  ;;  %1543 = vst [vmem:[%s3416_s8 + $0x20] sm:$0xff] %v1511_v42  ;;  %2452 = vmatprep.mubr.f32.mxu0 %v1511_v42  ;;  %vm1450_vm7 = vcmp.gt.f32.partialorder %v1320_v36, 0.0 }
 0x3a0   :  { %v1481_v44 = vmul.f32 0.1, %v1315_v40  ;;  %v2380_v31 = vpop.f32.mrb[56].mxu1  ;;  %2453 = vmatmul.mubr.f32.gmra.mrb[52].mxu0 %v1512_v39  ;;  %vm1449_vm8 = vcmp.gt.f32.partialorder %v1315_v40, 0.0 }
 0x3a1   :  { %v1330_v45 = vadd.f32 %v2380_v31, %v3145_v10  ;;  %v1324_v46 = vpop.f32.mrb[57].mxu1  ;;  %v1514_v20 = vsel %vm1450_vm7, %v1320_v36, %v1482_v43 }
 0x3a2   :  { %v1325_v47 = vadd.f32 %v3145_v10, %v1324_v46  ;;  %v1513_v50 = vsel %vm1449_vm8, %v1315_v40, %v1481_v44  ;;  %1546 = vst [vmem:[%s3416_s8 + $0x38] sm:$0xff] %v1514_v20 }
 0x3a3   :  { %v1484_v52 = vmul.f32 0.1, %v1330_v45  ;;  %1545 = vst [vmem:[%s3416_s8 + $0x30] sm:$0xff] %v1513_v50  ;;  %2455 = vmatprep.mubr.f32.mxu0 %v1513_v50  ;;  %vm1452_vm9 = vcmp.gt.f32.partialorder %v1330_v45, 0.0 }
 0x3a4   :  { %v1483_v41 = vmul.f32 0.1, %v1325_v47  ;;  %v2383_v28 = vpop.f32.mrb[58].mxu1  ;;  %2456 = vmatmul.mubr.f32.gmra.mrb[54].mxu0 %v1514_v20  ;;  %vm1451_vm10 = vcmp.gt.f32.partialorder %v1325_v47, 0.0 }
 0x3a5   :  { %v1340_v53 = vadd.f32 %v2383_v28, %v3145_v10  ;;  %v1334_v54 = vpop.f32.mrb[59].mxu1  ;;  %v1516_v55 = vsel %vm1452_vm9, %v1330_v45, %v1484_v52 }
 0x3a6   :  { %v1335_v56 = vadd.f32 %v3145_v10, %v1334_v54  ;;  %v1515_v57 = vsel %vm1451_vm10, %v1325_v47, %v1483_v41  ;;  %1548 = vst [vmem:[%s3416_s8 + $0x48] sm:$0xff] %v1516_v55 }
 0x3a7   :  { %v1486_v49 = vmul.f32 0.1, %v1340_v53  ;;  %1547 = vst [vmem:[%s3416_s8 + $0x40] sm:$0xff] %v1515_v57  ;;  %2458 = vmatprep.mubr.f32.mxu0 %v1515_v57  ;;  %vm1454_vm11 = vcmp.gt.f32.partialorder %v1340_v53, 0.0 }
 0x3a8   :  { %v1485_v38 = vmul.f32 0.1, %v1335_v56  ;;  %v2386_v51 = vpop.f32.mrb[60].mxu1  ;;  %2459 = vmatmul.mubr.f32.gmra.mrb[56].mxu0 %v1516_v55  ;;  %vm1453_vm12 = vcmp.gt.f32.partialorder %v1335_v56, 0.0 }
 0x3a9   :  { %v1350_v59 = vadd.f32 %v2386_v51, %v3145_v10  ;;  %v1344_v60 = vpop.f32.mrb[61].mxu1  ;;  %v1518_v62 = vsel %vm1454_vm11, %v1340_v53, %v1486_v49 }
 0x3aa   :  { %v1345_v63 = vadd.f32 %v3145_v10, %v1344_v60  ;;  %v1517_v48 = vsel %vm1453_vm12, %v1335_v56, %v1485_v38  ;;  %1550 = vst [vmem:[%s3416_s8 + $0x58] sm:$0xff] %v1518_v62 }
 0x3ab   :  { %v1488_v61 = vmul.f32 0.1, %v1350_v59  ;;  %1549 = vst [vmem:[%s3416_s8 + $0x50] sm:$0xff] %v1517_v48  ;;  %2461 = vmatprep.mubr.f32.mxu0 %v1517_v48  ;;  %vm1456_vm13 = vcmp.gt.f32.partialorder %v1350_v59, 0.0 }
 0x3ac   :  { %v1487_v0 = vmul.f32 0.1, %v1345_v63  ;;  %v2389_v1 = vpop.f32.mrb[62].mxu1  ;;  %2462 = vmatmul.mubr.f32.gmra.mrb[58].mxu0 %v1518_v62  ;;  %vm1455_vm14 = vcmp.gt.f32.partialorder %v1345_v63, 0.0 }
 0x3ad   :  { %v1360_v2 = vadd.f32 %v2389_v1, %v3145_v10  ;;  %v1354_v3 = vpop.f32.mrb[63].mxu1  ;;  %v1520_v58 = vsel %vm1456_vm13, %v1350_v59, %v1488_v61 }
 0x3ae   :  { %v1355_v5 = vadd.f32 %v3145_v10, %v1354_v3  ;;  %v1519_v6 = vsel %vm1455_vm14, %v1345_v63, %v1487_v0  ;;  %1552 = vst [vmem:[%s3416_s8 + $0x68] sm:$0xff] %v1520_v58 }
 0x3af   :  { %v1490_v7 = vmul.f32 0.1, %v1360_v2  ;;  %1551 = vst [vmem:[%s3416_s8 + $0x60] sm:$0xff] %v1519_v6  ;;  %2464 = vmatprep.mubr.f32.mxu0 %v1519_v6  ;;  %vm1458_vm15 = vcmp.gt.f32.partialorder %v1360_v2, 0.0 }
 0x3b0   :  { %v1489_v9 = vmul.f32 0.1, %v1355_v5  ;;  %v2392_v4 = vpop.f32.mrb[64].mxu1  ;;  %2465 = vmatmul.mubr.f32.gmra.mrb[60].mxu0 %v1520_v58  ;;  %vm1457_vm0 = vcmp.gt.f32.partialorder %v1355_v5, 0.0 }
 0x3b1   :  { %v1370_v11 = vadd.f32 %v2392_v4, %v3145_v10  ;;  %v1364_v8 = vpop.f32.mrb[65].mxu1  ;;  %v1522_v12 = vsel %vm1458_vm15, %v1360_v2, %v1490_v7 }
 0x3b2   :  { %v1365_v13 = vadd.f32 %v3145_v10, %v1364_v8  ;;  %v1521_v15 = vsel %vm1457_vm0, %v1355_v5, %v1489_v9  ;;  %1554 = vst [vmem:[%s3416_s8 + $0x78] sm:$0xff] %v1522_v12 }
 0x3b3   :  { %v1492_v17 = vmul.f32 0.1, %v1370_v11  ;;  %1553 = vst [vmem:[%s3416_s8 + $0x70] sm:$0xff] %v1521_v15  ;;  %2467 = vmatprep.mubr.f32.mxu0 %v1521_v15  ;;  %vm1460_vm1 = vcmp.gt.f32.partialorder %v1370_v11, 0.0 }
 0x3b4   :  { %v1491_v18 = vmul.f32 0.1, %v1365_v13  ;;  %v2395_v14 = vpop.f32.mrb[66].mxu1  ;;  %2468 = vmatmul.mubr.f32.gmra.mrb[62].mxu0 %v1522_v12  ;;  %vm1459_vm2 = vcmp.gt.f32.partialorder %v1365_v13, 0.0 }
 0x3b5   :  { %v1380_v19 = vadd.f32 %v2395_v14, %v3145_v10  ;;  %v1374_v16 = vpop.f32.mrb[67].mxu1  ;;  %v1524_v21 = vsel %vm1460_vm1, %v1370_v11, %v1492_v17 }
 0x3b6   :  { %v1375_v23 = vadd.f32 %v3145_v10, %v1374_v16  ;;  %v1523_v24 = vsel %vm1459_vm2, %v1365_v13, %v1491_v18  ;;  %1556 = vst [vmem:[%s3416_s8 + $0x88] sm:$0xff] %v1524_v21 }
 0x3b7   :  { %v1494_v25 = vmul.f32 0.1, %v1380_v19  ;;  %1555 = vst [vmem:[%s3416_s8 + $0x80] sm:$0xff] %v1523_v24  ;;  %2470 = vmatprep.mubr.f32.mxu0 %v1523_v24  ;;  %vm1462_vm3 = vcmp.gt.f32.partialorder %v1380_v19, 0.0 }
 0x3b8   :  { %v1493_v26 = vmul.f32 0.1, %v1375_v23  ;;  %v2398_v27 = vpop.f32.mrb[68].mxu1  ;;  %2471 = vmatmul.mubr.f32.gmra.mrb[64].mxu0 %v1524_v21  ;;  %vm1461_vm4 = vcmp.gt.f32.partialorder %v1375_v23, 0.0 }
 0x3b9   :  { %v1390_v29 = vadd.f32 %v2398_v27, %v3145_v10  ;;  %v1384_v30 = vpop.f32.mrb[69].mxu1  ;;  %v1526_v32 = vsel %vm1462_vm3, %v1380_v19, %v1494_v25 }
 0x3ba   :  { %v1385_v33 = vadd.f32 %v3145_v10, %v1384_v30  ;;  %v1525_v22 = vsel %vm1461_vm4, %v1375_v23, %v1493_v26  ;;  %1558 = vst [vmem:[%s3416_s8 + $0x98] sm:$0xff] %v1526_v32 }
 0x3bb   :  { %v1496_v34 = vmul.f32 0.1, %v1390_v29  ;;  %1557 = vst [vmem:[%s3416_s8 + $0x90] sm:$0xff] %v1525_v22  ;;  %2473 = vmatprep.mubr.f32.mxu0 %v1525_v22  ;;  %vm1464_vm5 = vcmp.gt.f32.partialorder %v1390_v29, 0.0 }
 0x3bc   :  { %v1495_v35 = vmul.f32 0.1, %v1385_v33  ;;  %v2401_v36 = vpop.f32.mrb[70].mxu1  ;;  %2474 = vmatmul.mubr.f32.gmra.mrb[66].mxu0 %v1526_v32  ;;  %vm1463_vm6 = vcmp.gt.f32.partialorder %v1385_v33, 0.0 }
 0x3bd   :  { %v1400_v37 = vadd.f32 %v2401_v36, %v3145_v10  ;;  %v1394_v39 = vpop.f32.mrb[71].mxu1  ;;  %v1528_v40 = vsel %vm1464_vm5, %v1390_v29, %v1496_v34 }
 0x3be   :  { %v1395_v42 = vadd.f32 %v3145_v10, %v1394_v39  ;;  %v1527_v43 = vsel %vm1463_vm6, %v1385_v33, %v1495_v35  ;;  %1560 = vst [vmem:[%s3416_s8 + $0xa8] sm:$0xff] %v1528_v40 }
 0x3bf   :  { %v1498_v44 = vmul.f32 0.1, %v1400_v37  ;;  %1559 = vst [vmem:[%s3416_s8 + $0xa0] sm:$0xff] %v1527_v43  ;;  %2476 = vmatprep.mubr.f32.mxu0 %v1527_v43  ;;  %vm1466_vm7 = vcmp.gt.f32.partialorder %v1400_v37, 0.0 }
 0x3c0   :  { %v1497_v31 = vmul.f32 0.1, %v1395_v42  ;;  %v2404_v45 = vpop.f32.mrb[72].mxu1  ;;  %2477 = vmatmul.mubr.f32.gmra.mrb[68].mxu0 %v1528_v40  ;;  %vm1465_vm8 = vcmp.gt.f32.partialorder %v1395_v42, 0.0 }
 0x3c1   :  { %v1410_v46 = vadd.f32 %v2404_v45, %v3145_v10  ;;  %v1404_v20 = vpop.f32.mrb[73].mxu1  ;;  %v1530_v47 = vsel %vm1466_vm7, %v1400_v37, %v1498_v44 }
 0x3c2   :  { %v1405_v50 = vadd.f32 %v3145_v10, %v1404_v20  ;;  %v1529_v52 = vsel %vm1465_vm8, %v1395_v42, %v1497_v31  ;;  %1562 = vst [vmem:[%s3416_s8 + $0xb8] sm:$0xff] %v1530_v47 }
 0x3c3   :  { %v1500_v41 = vmul.f32 0.1, %v1410_v46  ;;  %1561 = vst [vmem:[%s3416_s8 + $0xb0] sm:$0xff] %v1529_v52  ;;  %2479 = vmatprep.mubr.f32.mxu0 %v1529_v52  ;;  %vm1468_vm9 = vcmp.gt.f32.partialorder %v1410_v46, 0.0 }
 0x3c4   :  { %v1499_v28 = vmul.f32 0.1, %v1405_v50  ;;  %v2407_v53 = vpop.f32.mrb[74].mxu1  ;;  %2480 = vmatmul.mubr.f32.gmra.mrb[70].mxu0 %v1530_v47  ;;  %vm1467_vm10 = vcmp.gt.f32.partialorder %v1405_v50, 0.0 }
 0x3c5   :  { %v1420_v54 = vadd.f32 %v2407_v53, %v3145_v10  ;;  %v1414_v55 = vpop.f32.mrb[75].mxu1  ;;  %v1532_v56 = vsel %vm1468_vm9, %v1410_v46, %v1500_v41 }
 0x3c6   :  { %v1415_v57 = vadd.f32 %v3145_v10, %v1414_v55  ;;  %v1531_v49 = vsel %vm1467_vm10, %v1405_v50, %v1499_v28  ;;  %1564 = vst [vmem:[%s3416_s8 + $0xc8] sm:$0xff] %v1532_v56 }
 0x3c7   :  { %v1502_v38 = vmul.f32 0.1, %v1420_v54  ;;  %1563 = vst [vmem:[%s3416_s8 + $0xc0] sm:$0xff] %v1531_v49  ;;  %2482 = vmatprep.mubr.f32.mxu0 %v1531_v49  ;;  %vm1470_vm11 = vcmp.gt.f32.partialorder %v1420_v54, 0.0 }
 0x3c8   :  { %v1501_v51 = vmul.f32 0.1, %v1415_v57  ;;  %v2410_v59 = vpop.f32.mrb[76].mxu1  ;;  %2483 = vmatmul.mubr.f32.gmra.mrb[72].mxu0 %v1532_v56  ;;  %vm1469_vm12 = vcmp.gt.f32.partialorder %v1415_v57, 0.0 }
 0x3c9   :  { %v1430_v60 = vadd.f32 %v2410_v59, %v3145_v10  ;;  %v1424_v62 = vpop.f32.mrb[77].mxu1  ;;  %v1534_v63 = vsel %vm1470_vm11, %v1420_v54, %v1502_v38 }
 0x3ca   :  { %v1425_v48 = vadd.f32 %v3145_v10, %v1424_v62  ;;  %v1533_v61 = vsel %vm1469_vm12, %v1415_v57, %v1501_v51  ;;  %1566 = vst [vmem:[%s3416_s8 + $0xd8] sm:$0xff] %v1534_v63 }
 0x3cb   :  { %v1504_v0 = vmul.f32 0.1, %v1430_v60  ;;  %1565 = vst [vmem:[%s3416_s8 + $0xd0] sm:$0xff] %v1533_v61  ;;  %2485 = vmatprep.mubr.f32.mxu0 %v1533_v61  ;;  %vm1472_vm13 = vcmp.gt.f32.partialorder %v1430_v60, 0.0 }
 0x3cc   :  { %v1503_v1 = vmul.f32 0.1, %v1425_v48  ;;  %v2413_v2 = vpop.f32.mrb[78].mxu1  ;;  %2486 = vmatmul.mubr.f32.gmra.mrb[74].mxu0 %v1534_v63  ;;  %vm1471_vm14 = vcmp.gt.f32.partialorder %v1425_v48, 0.0 }
 0x3cd   :  { %v1440_v3 = vadd.f32 %v2413_v2, %v3145_v10  ;;  %v1434_v58 = vpop.f32.mrb[79].mxu1  ;;  %v1536_v5 = vsel %vm1472_vm13, %v1430_v60, %v1504_v0 }
 0x3ce   :  { %v1435_v6 = vadd.f32 %v3145_v10, %v1434_v58  ;;  %v1535_v7 = vsel %vm1471_vm14, %v1425_v48, %v1503_v1  ;;  %1568 = vst [vmem:[%s3416_s8 + $0xe8] sm:$0xff] %v1536_v5  ;;  %v3278_v10 = vld [vmem:[%s3414_s6 + $0x4] ss:$0 sm:$0xff] }
 0x3cf   :  { %v1506_v9 = vmul.f32 0.1, %v1440_v3  ;;  %1567 = vst [vmem:[%s3416_s8 + $0xe0] sm:$0xff] %v1535_v7  ;;  %2488 = vmatprep.mubr.f32.mxu0 %v1535_v7  ;;  %vm1474_vm15 = vcmp.gt.f32.partialorder %v1440_v3, 0.0 }
 0x3d0   :  { %v1505_v4 = vmul.f32 0.1, %v1435_v6  ;;  %2489 = vmatmul.mubr.f32.gmra.mrb[76].mxu0 %v1536_v5  ;;  %vm1473_vm0 = vcmp.gt.f32.partialorder %v1435_v6, 0.0 }
 0x3d1   :  { %v1538_v11 = vsel %vm1474_vm15, %v1440_v3, %v1506_v9 }
 0x3d2   :  { %v1537_v8 = vsel %vm1473_vm0, %v1435_v6, %v1505_v4  ;;  %1570 = vst [vmem:[%s3416_s8 + $0xf8] sm:$0xff] %v1538_v11 }
 0x3d3   :  { %1569 = vst [vmem:[%s3416_s8 + $0xf0] sm:$0xff] %v1537_v8  ;;  %2491 = vmatprep.mubr.f32.mxu0 %v1537_v8 }
 0x3d4   :  { %2492 = vmatmul.mubr.f32.gmra.mrb[78].mxu0 %v1538_v11 }
 0x46b   :  { %v2448_v12 = vpop.f32.mrb[48].mxu0 }
 0x46c   :  { %v1664_v13 = vadd.f32 %v2448_v12, %v3278_v10  ;;  %v1658_v15 = vpop.f32.mrb[49].mxu0 }
 0x46d   :  { %v1659_v17 = vadd.f32 %v3278_v10, %v1658_v15 }
 0x46e   :  { %1818 = vst [vmem:[%s3415_s7 + $0x8] sm:$0xff] %v1664_v13 }
 0x46f   :  { %1817 = vst [vmem:[%s3415_s7] sm:$0xff] %v1659_v17  ;;  %v2451_v18 = vpop.f32.mrb[50].mxu0 }
 0x470   :  { %v1674_v14 = vadd.f32 %v2451_v18, %v3278_v10  ;;  %v1668_v19 = vpop.f32.mrb[51].mxu0 }
 0x471   :  { %v1669_v16 = vadd.f32 %v3278_v10, %v1668_v19 }
 0x472   :  { %1820 = vst [vmem:[%s3415_s7 + $0x18] sm:$0xff] %v1674_v14 }
 0x473   :  { %1819 = vst [vmem:[%s3415_s7 + $0x10] sm:$0xff] %v1669_v16  ;;  %v2454_v21 = vpop.f32.mrb[52].mxu0 }
 0x474   :  { %v1684_v23 = vadd.f32 %v2454_v21, %v3278_v10  ;;  %v1678_v24 = vpop.f32.mrb[53].mxu0 }
 0x475   :  { %v1679_v25 = vadd.f32 %v3278_v10, %v1678_v24 }
 0x476   :  { %1822 = vst [vmem:[%s3415_s7 + $0x28] sm:$0xff] %v1684_v23 }
 0x477   :  { %1821 = vst [vmem:[%s3415_s7 + $0x20] sm:$0xff] %v1679_v25  ;;  %v2457_v26 = vpop.f32.mrb[54].mxu0 }
 0x478   :  { %v1694_v27 = vadd.f32 %v2457_v26, %v3278_v10  ;;  %v1688_v29 = vpop.f32.mrb[55].mxu0 }
 0x479   :  { %v1689_v30 = vadd.f32 %v3278_v10, %v1688_v29 }
 0x47a   :  { %1824 = vst [vmem:[%s3415_s7 + $0x38] sm:$0xff] %v1694_v27 }
 0x47b   :  { %1823 = vst [vmem:[%s3415_s7 + $0x30] sm:$0xff] %v1689_v30  ;;  %v2460_v32 = vpop.f32.mrb[56].mxu0 }
 0x47c   :  { %v1704_v33 = vadd.f32 %v2460_v32, %v3278_v10  ;;  %v1698_v22 = vpop.f32.mrb[57].mxu0 }
 0x47d   :  { %v1699_v34 = vadd.f32 %v3278_v10, %v1698_v22 }
 0x47e   :  { %1826 = vst [vmem:[%s3415_s7 + $0x48] sm:$0xff] %v1704_v33 }
 0x47f   :  { %1825 = vst [vmem:[%s3415_s7 + $0x40] sm:$0xff] %v1699_v34  ;;  %v2463_v35 = vpop.f32.mrb[58].mxu0 }
 0x480   :  { %v1714_v36 = vadd.f32 %v2463_v35, %v3278_v10  ;;  %v1708_v37 = vpop.f32.mrb[59].mxu0 }
 0x481   :  { %v1709_v39 = vadd.f32 %v3278_v10, %v1708_v37 }
 0x482   :  { %1828 = vst [vmem:[%s3415_s7 + $0x58] sm:$0xff] %v1714_v36 }
 0x483   :  { %1827 = vst [vmem:[%s3415_s7 + $0x50] sm:$0xff] %v1709_v39  ;;  %v2466_v40 = vpop.f32.mrb[60].mxu0 }
 0x484   :  { %v1724_v42 = vadd.f32 %v2466_v40, %v3278_v10  ;;  %v1718_v43 = vpop.f32.mrb[61].mxu0 }
 0x485   :  { %v1719_v44 = vadd.f32 %v3278_v10, %v1718_v43 }
 0x486   :  { %1830 = vst [vmem:[%s3415_s7 + $0x68] sm:$0xff] %v1724_v42 }
 0x487   :  { %1829 = vst [vmem:[%s3415_s7 + $0x60] sm:$0xff] %v1719_v44  ;;  %v2469_v31 = vpop.f32.mrb[62].mxu0 }
 0x488   :  { %v1734_v45 = vadd.f32 %v2469_v31, %v3278_v10  ;;  %v1728_v46 = vpop.f32.mrb[63].mxu0 }
 0x489   :  { %v1729_v20 = vadd.f32 %v3278_v10, %v1728_v46 }
 0x48a   :  { %1832 = vst [vmem:[%s3415_s7 + $0x78] sm:$0xff] %v1734_v45 }
 0x48b   :  { %1831 = vst [vmem:[%s3415_s7 + $0x70] sm:$0xff] %v1729_v20  ;;  %v2472_v47 = vpop.f32.mrb[64].mxu0 }
 0x48c   :  { %v1744_v50 = vadd.f32 %v2472_v47, %v3278_v10  ;;  %v1738_v52 = vpop.f32.mrb[65].mxu0 }
 0x48d   :  { %v1739_v41 = vadd.f32 %v3278_v10, %v1738_v52 }
 0x48e   :  { %1834 = vst [vmem:[%s3415_s7 + $0x88] sm:$0xff] %v1744_v50 }
 0x48f   :  { %1833 = vst [vmem:[%s3415_s7 + $0x80] sm:$0xff] %v1739_v41  ;;  %v2475_v28 = vpop.f32.mrb[66].mxu0 }
 0x490   :  { %v1754_v53 = vadd.f32 %v2475_v28, %v3278_v10  ;;  %v1748_v54 = vpop.f32.mrb[67].mxu0 }
 0x491   :  { %v1749_v55 = vadd.f32 %v3278_v10, %v1748_v54 }
 0x492   :  { %1836 = vst [vmem:[%s3415_s7 + $0x98] sm:$0xff] %v1754_v53 }
 0x493   :  { %1835 = vst [vmem:[%s3415_s7 + $0x90] sm:$0xff] %v1749_v55  ;;  %v2478_v56 = vpop.f32.mrb[68].mxu0 }
 0x494   :  { %v1764_v57 = vadd.f32 %v2478_v56, %v3278_v10  ;;  %v1758_v49 = vpop.f32.mrb[69].mxu0 }
 0x495   :  { %v1759_v38 = vadd.f32 %v3278_v10, %v1758_v49 }
 0x496   :  { %1838 = vst [vmem:[%s3415_s7 + $0xa8] sm:$0xff] %v1764_v57 }
 0x497   :  { %1837 = vst [vmem:[%s3415_s7 + $0xa0] sm:$0xff] %v1759_v38  ;;  %v2481_v51 = vpop.f32.mrb[70].mxu0 }
 0x498   :  { %v1774_v59 = vadd.f32 %v2481_v51, %v3278_v10  ;;  %v1768_v60 = vpop.f32.mrb[71].mxu0 }
 0x499   :  { %v1769_v62 = vadd.f32 %v3278_v10, %v1768_v60 }
 0x49a   :  { %1840 = vst [vmem:[%s3415_s7 + $0xb8] sm:$0xff] %v1774_v59 }
 0x49b   :  { %1839 = vst [vmem:[%s3415_s7 + $0xb0] sm:$0xff] %v1769_v62  ;;  %v2484_v63 = vpop.f32.mrb[72].mxu0 }
 0x49c   :  { %v1784_v48 = vadd.f32 %v2484_v63, %v3278_v10  ;;  %v1778_v61 = vpop.f32.mrb[73].mxu0 }
 0x49d   :  { %v1779_v0 = vadd.f32 %v3278_v10, %v1778_v61 }
 0x49e   :  { %1842 = vst [vmem:[%s3415_s7 + $0xc8] sm:$0xff] %v1784_v48 }
 0x49f   :  { %1841 = vst [vmem:[%s3415_s7 + $0xc0] sm:$0xff] %v1779_v0  ;;  %v2487_v1 = vpop.f32.mrb[74].mxu0 }
 0x4a0   :  { %v1794_v2 = vadd.f32 %v2487_v1, %v3278_v10  ;;  %v1788_v3 = vpop.f32.mrb[75].mxu0 }
 0x4a1   :  { %v1789_v58 = vadd.f32 %v3278_v10, %v1788_v3 }
 0x4a2   :  { %1844 = vst [vmem:[%s3415_s7 + $0xd8] sm:$0xff] %v1794_v2 }
 0x4a3   :  { %1843 = vst [vmem:[%s3415_s7 + $0xd0] sm:$0xff] %v1789_v58  ;;  %v2490_v5 = vpop.f32.mrb[76].mxu0 }
 0x4a4   :  { %v1804_v6 = vadd.f32 %v2490_v5, %v3278_v10  ;;  %v1798_v7 = vpop.f32.mrb[77].mxu0 }
 0x4a5   :  { %v1799_v9 = vadd.f32 %v3278_v10, %v1798_v7 }
 0x4a6   :  { %1846 = vst [vmem:[%s3415_s7 + $0xe8] sm:$0xff] %v1804_v6 }
 0x4a7   :  { %1845 = vst [vmem:[%s3415_s7 + $0xe0] sm:$0xff] %v1799_v9  ;;  %v2493_v4 = vpop.f32.mrb[78].mxu0 }
 0x4a8   :  { %v1814_v11 = vadd.f32 %v2493_v4, %v3278_v10  ;;  %v1808_v8 = vpop.f32.mrb[79].mxu0 }
 0x4a9   :  { %v1809_v12 = vadd.f32 %v3278_v10, %v1808_v8 }
 0x4aa   :  { %1848 = vst [vmem:[%s3415_s7 + $0xf8] sm:$0xff] %v1814_v11 }
 0x4ab   :  { %1847 = vst [vmem:[%s3415_s7 + $0xf0] sm:$0xff] %v1809_v12 }
 0x4ac   :  { %1857 = vsyncpa [#allocation3], 1 }
 0x4ad   :  { %1858 = vsyncpa [#allocation5], 1 }

</bundles_post_ra>
